<compile_context>
chip_gen: v7x
topology: tpu7x:2x2x1
jax: 0.10.0
libtpu: 0.0.40
codegen_flags: <defaults>
</compile_context>

<pallas_src>
import functools

import jax
import jax.numpy as jnp
from jax import lax
from jax.experimental import pallas as pl
from jax.experimental.pallas import tpu as pltpu


def _mha_fused_kernel(x_ref, wqkv_ref, wp_ref, b_ref, o_ref, *,
                      n_heads, head_size, inv_scale):
    """Fused multi-head causal attention + projection for one batch element.

    x_ref    : (1, T, C)   input block (compute dtype, e.g. bf16)
    wqkv_ref : (C, 3C)     packed pre-transposed [Wq | Wk | Wv] (compute dtype)
    wp_ref   : (C, C)      pre-transposed projection weight (compute dtype)
    b_ref    : (1, C)      projection bias (f32)
    o_ref    : (1, T, C)   output block (x.dtype), lane-dense (last dim = C)
    """
    T = x_ref.shape[1]
    C = n_heads * head_size
    cdtype = x_ref.dtype

    x = x_ref[0]                                                    # (T, C)

    # One wide MXU pass for Q/K/V of every head: (T, C) @ (C, 3C) -> (T, 3C) f32.
    qkv = jnp.dot(x, wqkv_ref[...], preferred_element_type=jnp.float32)

    # Causal mask: built once per batch element, reused by every head.
    row = lax.broadcasted_iota(jnp.int32, (T, T), 0)
    col = lax.broadcasted_iota(jnp.int32, (T, T), 1)
    causal = col <= row

    head_outs = []
    for h in range(n_heads):
        lo = h * head_size
        # Fold 1/sqrt(C) into q: scales a (T, hs) tensor instead of (T, T).
        # (masked entries are -inf, which is scale-invariant -> equivalent to
        #  the torch order masked_fill -> /= sqrt(C) -> softmax.)
        q = (qkv[:, lo:lo + head_size] * inv_scale).astype(cdtype)
        k = qkv[:, C + lo:C + lo + head_size].astype(cdtype)
        v = qkv[:, 2 * C + lo:2 * C + lo + head_size].astype(cdtype)

        wei = jnp.einsum('td,sd->ts', q, k,
                         preferred_element_type=jnp.float32)        # (T, T)
        wei = jnp.where(causal, wei, -jnp.inf)

        # Softmax kept in f32 on VPU/EUP (mandatory on v5e: no bf16 VPU path).
        m = jnp.max(wei, axis=-1, keepdims=True)
        e = jnp.exp(wei - m)
        s = jnp.sum(e, axis=-1, keepdims=True)
        p = e * pl.reciprocal(s, approx=True)

        head_outs.append(
            jnp.dot(p.astype(cdtype), v, preferred_element_type=jnp.float32))

    # torch.cat([...], dim=-1) over heads — stays in vregs/VMEM, never to HBM.
    y = jnp.concatenate(head_outs, axis=-1)                          # (T, C) f32

    # Output projection (weight pre-transposed in the wrapper) + bias, lane-dense.
    out = jnp.dot(y.astype(cdtype), wp_ref[...],
                  preferred_element_type=jnp.float32) + b_ref[...]
    o_ref[0] = out.astype(o_ref.dtype)


def multi_head_attention(x, wq, wk, wv, wp, bp, *, compute_dtype=jnp.bfloat16):
    """Pallas implementation of MultiHeadAttention.forward (eval mode).

    x : (B, T, C)                      C = n_heads * head_size
    wq, wk, wv : (n_heads, head_size, C)   (PyTorch Linear layout: (out, in))
    wp : (C, C), bp : (C,)
    compute_dtype: dtype fed to the MXU matmuls (accumulation stays f32).
    """
    B, T, C = x.shape
    n_heads, head_size, _ = wq.shape
    assert n_heads * head_size == C

    inv_scale = 1.0 / (float(C) ** 0.5)   # torch code divides by C**0.5 (C = n_embed)

    # Pack & pre-transpose the static weights once in the wrapper (XLA folds it):
    # columns [0:C)=Q, [C:2C)=K, [2C:3C)=V; head h occupies columns h*hs:(h+1)*hs.
    w_qkv = jnp.concatenate(
        [wq.reshape(C, C).T, wk.reshape(C, C).T, wv.reshape(C, C).T], axis=1)

    xc = x.astype(compute_dtype)
    w_qkv = w_qkv.astype(compute_dtype)
    wp_t = wp.T.astype(compute_dtype)
    bias = bp.reshape(1, C).astype(jnp.float32)

    kernel = functools.partial(_mha_fused_kernel, n_heads=n_heads,
                               head_size=head_size, inv_scale=inv_scale)

    return pl.pallas_call(
        kernel,
        out_shape=jax.ShapeDtypeStruct((B, T, C), x.dtype),
        grid=(B,),
        in_specs=[
            pl.BlockSpec((1, T, C), lambda b: (b, 0, 0)),
            pl.BlockSpec((C, 3 * C), lambda b: (0, 0)),
            pl.BlockSpec((C, C), lambda b: (0, 0)),
            pl.BlockSpec((1, C), lambda b: (0, 0)),
        ],
        out_specs=pl.BlockSpec((1, T, C), lambda b: (b, 0, 0)),
        compiler_params=pltpu.CompilerParams(
            dimension_semantics=("parallel",)),   # v7x: 2 TCs split the batch
    )(xc, w_qkv, wp_t, bias)


def _reference(x, wq, wk, wv, wp, bp):
    """Pure-JAX f32 reference mirroring the PyTorch forward (eval mode)."""
    B, T, C = x.shape
    n_heads, head_size, _ = wq.shape
    xf = x.astype(jnp.float32)
    outs = []
    for h in range(n_heads):
        q = xf @ wq[h].T
        k = xf @ wk[h].T
        v = xf @ wv[h].T
        wei = q @ jnp.swapaxes(k, -2, -1)
        mask = jnp.tril(jnp.ones((T, T), dtype=bool))
        wei = jnp.where(mask, wei, -jnp.inf)
        wei = wei / (C ** 0.5)
        wei = jax.nn.softmax(wei, axis=-1)
        outs.append(wei @ v)
    cat = jnp.concatenate(outs, axis=-1)
    return cat @ wp.T + bp


if __name__ == "__main__":
    # Module defaults: n_heads=8, head_size=16 -> n_embed=128, block_size=64.
    B, n_heads, head_size = 2, 8, 16
    C = n_heads * head_size          # 128
    T = 64                           # = block_size (causal mask covers full T)

    key = jax.random.PRNGKey(0)
    kx, kq, kk, kv, kp, kb = jax.random.split(key, 6)

    # Deterministic synthetic parameters (PyTorch Linear layout: (out, in)).
    x = jax.random.normal(kx, (B, T, C), dtype=jnp.float32)
    s = 1.0 / (C ** 0.5)
    wq = jax.random.uniform(kq, (n_heads, head_size, C), jnp.float32, -s, s)
    wk = jax.random.uniform(kk, (n_heads, head_size, C), jnp.float32, -s, s)
    wv = jax.random.uniform(kv, (n_heads, head_size, C), jnp.float32, -s, s)
    wp = jax.random.uniform(kp, (C, C), jnp.float32, -s, s)
    bp = jax.random.uniform(kb, (C,), jnp.float32, -s, s)

    ref = _reference(x, wq, wk, wv, wp, bp)

    # Default (bf16-on-MXU) path — what you'd run on v6e/v7x.
    out_bf16 = jax.block_until_ready(
        multi_head_attention(x, wq, wk, wv, wp, bp))
    assert out_bf16.shape == (B, T, C)
    assert jnp.allclose(out_bf16, ref, atol=5e-2, rtol=5e-2), \
        "bf16-compute path mismatch vs reference"

    # Full-precision path — tight check of the fused-kernel semantics.
    out_f32 = jax.block_until_ready(
        multi_head_attention(x, wq, wk, wv, wp, bp, compute_dtype=jnp.float32))
    assert jnp.allclose(out_f32, ref, atol=5e-3, rtol=5e-3), \
        "f32-compute path mismatch vs reference"

    print("KERNEL_OK")
</pallas_src>

<mosaic_0001>
module attributes {stable_mosaic.version = 11 : i64} {
  func.func @_mha_fused_kernel(%arg0: i32, %arg1: memref<1x64x128xbf16, #tpu.memory_space<vmem>>, %arg2: memref<128x384xbf16, #tpu.memory_space<vmem>>, %arg3: memref<128x128xbf16, #tpu.memory_space<vmem>>, %arg4: memref<1x128xf32, #tpu.memory_space<vmem>>, %arg5: memref<1x64x128xf32, #tpu.memory_space<vmem>>) attributes {dimension_semantics = [#tpu.dimension_semantics<parallel>], iteration_bounds = array<i64: 2>, scalar_prefetch = 0 : i64, scratch_operands = 0 : i64, tpu.core_type = #tpu.core_type<tc>, window_params = [{transform_indices = @transform_0, window_bounds = array<i64: 1, 64, 128>}, {pipeline_mode = #tpu.pipeline_mode<synchronous>, transform_indices = @transform_1, window_bounds = array<i64: 128, 384>}, {pipeline_mode = #tpu.pipeline_mode<synchronous>, transform_indices = @transform_2, window_bounds = array<i64: 128, 128>}, {pipeline_mode = #tpu.pipeline_mode<synchronous>, transform_indices = @transform_3, window_bounds = array<i64: 1, 128>}, {transform_indices = @transform_4, window_bounds = array<i64: 1, 64, 128>}]} {
    %c0 = arith.constant 0 : index
    %c0_0 = arith.constant 0 : index
    %c0_1 = arith.constant 0 : index
    %0 = vector.load %arg1[%c0, %c0_0, %c0_1] : memref<1x64x128xbf16, #tpu.memory_space<vmem>>, vector<1x64x128xbf16>
    %1 = vector.shape_cast %0 : vector<1x64x128xbf16> to vector<64x128xbf16>
    %c0_2 = arith.constant 0 : index
    %c0_3 = arith.constant 0 : index
    %2 = vector.load %arg2[%c0_2, %c0_3] : memref<128x384xbf16, #tpu.memory_space<vmem>>, vector<128x384xbf16>
    %cst = arith.constant dense<0.000000e+00> : vector<64x384xf32>
    %3 = tpu.matmul %1, %2, %cst {dimension_numbers = #tpu.dot_dimension_numbers<[1], [0], [0], [1], [0, 0, 1, 1], [], []>} : vector<64x128xbf16>, vector<128x384xbf16>, vector<64x384xf32> -> vector<64x384xf32>
    %4 = tpu.iota {dimensions = array<i32: 0>} : vector<64x64xi32>
    %5 = tpu.iota {dimensions = array<i32: 1>} : vector<64x64xi32>
    %6 = arith.cmpi sle, %5, %4 : vector<64x64xi32>
    %7 = vector.extract_strided_slice %3 {offsets = [0, 0], sizes = [64, 16], strides = [1, 1]} : vector<64x384xf32> to vector<64x16xf32>
    %cst_4 = arith.constant 0.0883883461 : f32
    %8 = vector.broadcast %cst_4 : f32 to vector<64x16xf32>
    %9 = arith.mulf %7, %8 : vector<64x16xf32>
    %10 = arith.truncf %9 : vector<64x16xf32> to vector<64x16xbf16>
    %11 = vector.extract_strided_slice %3 {offsets = [0, 128], sizes = [64, 16], strides = [1, 1]} : vector<64x384xf32> to vector<64x16xf32>
    %12 = arith.truncf %11 : vector<64x16xf32> to vector<64x16xbf16>
    %13 = vector.extract_strided_slice %3 {offsets = [0, 256], sizes = [64, 16], strides = [1, 1]} : vector<64x384xf32> to vector<64x16xf32>
    %14 = arith.truncf %13 : vector<64x16xf32> to vector<64x16xbf16>
    "tpu.trace_start"() <{level = 10 : i32, message = "td,sd->ts"}> : () -> ()
    %cst_5 = arith.constant dense<0.000000e+00> : vector<64x64xf32>
    %15 = tpu.matmul %10, %12, %cst_5 {dimension_numbers = #tpu.dot_dimension_numbers<[1], [1], [0], [0], [0, 0, 1, 0], [], []>} : vector<64x16xbf16>, vector<64x16xbf16>, vector<64x64xf32> -> vector<64x64xf32>
    %cst_6 = arith.constant 0xFF800000 : f32
    "tpu.trace_stop"() : () -> ()
    %16 = vector.broadcast %cst_6 : f32 to vector<64x64xf32>
    %17 = arith.select %6, %15, %16 : vector<64x64xi1>, vector<64x64xf32>
    %cst_7 = arith.constant dense<0xFF800000> : vector<64xf32>
    %18 = vector.multi_reduction <maximumf>, %17, %cst_7 [1] : vector<64x64xf32> to vector<64xf32>
    %19 = vector.shape_cast %18 : vector<64xf32> to vector<64x1xf32>
    %20 = vector.broadcast %19 : vector<64x1xf32> to vector<64x64xf32>
    %21 = arith.subf %17, %20 : vector<64x64xf32>
    %22 = math.exp %21 : vector<64x64xf32>
    %cst_8 = arith.constant dense<0.000000e+00> : vector<64xf32>
    %23 = vector.multi_reduction <add>, %22, %cst_8 [1] : vector<64x64xf32> to vector<64xf32>
    %24 = vector.shape_cast %23 : vector<64xf32> to vector<64x1xf32>
    %25 = tpu.reciprocal %24 {approx = true} : vector<64x1xf32> -> vector<64x1xf32>
    %26 = vector.broadcast %25 : vector<64x1xf32> to vector<64x64xf32>
    %27 = arith.mulf %22, %26 : vector<64x64xf32>
    %28 = arith.truncf %27 : vector<64x64xf32> to vector<64x64xbf16>
    %cst_9 = arith.constant dense<0.000000e+00> : vector<64x16xf32>
    %29 = tpu.matmul %28, %14, %cst_9 {dimension_numbers = #tpu.dot_dimension_numbers<[1], [0], [0], [1], [0, 0, 1, 1], [], []>} : vector<64x64xbf16>, vector<64x16xbf16>, vector<64x16xf32> -> vector<64x16xf32>
    %30 = vector.extract_strided_slice %3 {offsets = [0, 16], sizes = [64, 16], strides = [1, 1]} : vector<64x384xf32> to vector<64x16xf32>
    %cst_10 = arith.constant 0.0883883461 : f32
    %31 = vector.broadcast %cst_10 : f32 to vector<64x16xf32>
    %32 = arith.mulf %30, %31 : vector<64x16xf32>
    %33 = arith.truncf %32 : vector<64x16xf32> to vector<64x16xbf16>
    %34 = vector.extract_strided_slice %3 {offsets = [0, 144], sizes = [64, 16], strides = [1, 1]} : vector<64x384xf32> to vector<64x16xf32>
    %35 = arith.truncf %34 : vector<64x16xf32> to vector<64x16xbf16>
    %36 = vector.extract_strided_slice %3 {offsets = [0, 272], sizes = [64, 16], strides = [1, 1]} : vector<64x384xf32> to vector<64x16xf32>
    %37 = arith.truncf %36 : vector<64x16xf32> to vector<64x16xbf16>
    "tpu.trace_start"() <{level = 10 : i32, message = "td,sd->ts"}> : () -> ()
    %cst_11 = arith.constant dense<0.000000e+00> : vector<64x64xf32>
    %38 = tpu.matmul %33, %35, %cst_11 {dimension_numbers = #tpu.dot_dimension_numbers<[1], [1], [0], [0], [0, 0, 1, 0], [], []>} : vector<64x16xbf16>, vector<64x16xbf16>, vector<64x64xf32> -> vector<64x64xf32>
    %cst_12 = arith.constant 0xFF800000 : f32
    "tpu.trace_stop"() : () -> ()
    %39 = vector.broadcast %cst_12 : f32 to vector<64x64xf32>
    %40 = arith.select %6, %38, %39 : vector<64x64xi1>, vector<64x64xf32>
    %cst_13 = arith.constant dense<0xFF800000> : vector<64xf32>
    %41 = vector.multi_reduction <maximumf>, %40, %cst_13 [1] : vector<64x64xf32> to vector<64xf32>
    %42 = vector.shape_cast %41 : vector<64xf32> to vector<64x1xf32>
    %43 = vector.broadcast %42 : vector<64x1xf32> to vector<64x64xf32>
    %44 = arith.subf %40, %43 : vector<64x64xf32>
    %45 = math.exp %44 : vector<64x64xf32>
    %cst_14 = arith.constant dense<0.000000e+00> : vector<64xf32>
    %46 = vector.multi_reduction <add>, %45, %cst_14 [1] : vector<64x64xf32> to vector<64xf32>
    %47 = vector.shape_cast %46 : vector<64xf32> to vector<64x1xf32>
    %48 = tpu.reciprocal %47 {approx = true} : vector<64x1xf32> -> vector<64x1xf32>
    %49 = vector.broadcast %48 : vector<64x1xf32> to vector<64x64xf32>
    %50 = arith.mulf %45, %49 : vector<64x64xf32>
    %51 = arith.truncf %50 : vector<64x64xf32> to vector<64x64xbf16>
    %cst_15 = arith.constant dense<0.000000e+00> : vector<64x16xf32>
    %52 = tpu.matmul %51, %37, %cst_15 {dimension_numbers = #tpu.dot_dimension_numbers<[1], [0], [0], [1], [0, 0, 1, 1], [], []>} : vector<64x64xbf16>, vector<64x16xbf16>, vector<64x16xf32> -> vector<64x16xf32>
    %53 = vector.extract_strided_slice %3 {offsets = [0, 32], sizes = [64, 16], strides = [1, 1]} : vector<64x384xf32> to vector<64x16xf32>
    %cst_16 = arith.constant 0.0883883461 : f32
    %54 = vector.broadcast %cst_16 : f32 to vector<64x16xf32>
    %55 = arith.mulf %53, %54 : vector<64x16xf32>
    %56 = arith.truncf %55 : vector<64x16xf32> to vector<64x16xbf16>
    %57 = vector.extract_strided_slice %3 {offsets = [0, 160], sizes = [64, 16], strides = [1, 1]} : vector<64x384xf32> to vector<64x16xf32>
    %58 = arith.truncf %57 : vector<64x16xf32> to vector<64x16xbf16>
    %59 = vector.extract_strided_slice %3 {offsets = [0, 288], sizes = [64, 16], strides = [1, 1]} : vector<64x384xf32> to vector<64x16xf32>
    %60 = arith.truncf %59 : vector<64x16xf32> to vector<64x16xbf16>
    "tpu.trace_start"() <{level = 10 : i32, message = "td,sd->ts"}> : () -> ()
    %cst_17 = arith.constant dense<0.000000e+00> : vector<64x64xf32>
    %61 = tpu.matmul %56, %58, %cst_17 {dimension_numbers = #tpu.dot_dimension_numbers<[1], [1], [0], [0], [0, 0, 1, 0], [], []>} : vector<64x16xbf16>, vector<64x16xbf16>, vector<64x64xf32> -> vector<64x64xf32>
    %cst_18 = arith.constant 0xFF800000 : f32
    "tpu.trace_stop"() : () -> ()
    %62 = vector.broadcast %cst_18 : f32 to vector<64x64xf32>
    %63 = arith.select %6, %61, %62 : vector<64x64xi1>, vector<64x64xf32>
    %cst_19 = arith.constant dense<0xFF800000> : vector<64xf32>
    %64 = vector.multi_reduction <maximumf>, %63, %cst_19 [1] : vector<64x64xf32> to vector<64xf32>
    %65 = vector.shape_cast %64 : vector<64xf32> to vector<64x1xf32>
    %66 = vector.broadcast %65 : vector<64x1xf32> to vector<64x64xf32>
    %67 = arith.subf %63, %66 : vector<64x64xf32>
    %68 = math.exp %67 : vector<64x64xf32>
    %cst_20 = arith.constant dense<0.000000e+00> : vector<64xf32>
    %69 = vector.multi_reduction <add>, %68, %cst_20 [1] : vector<64x64xf32> to vector<64xf32>
    %70 = vector.shape_cast %69 : vector<64xf32> to vector<64x1xf32>
    %71 = tpu.reciprocal %70 {approx = true} : vector<64x1xf32> -> vector<64x1xf32>
    %72 = vector.broadcast %71 : vector<64x1xf32> to vector<64x64xf32>
    %73 = arith.mulf %68, %72 : vector<64x64xf32>
    %74 = arith.truncf %73 : vector<64x64xf32> to vector<64x64xbf16>
    %cst_21 = arith.constant dense<0.000000e+00> : vector<64x16xf32>
    %75 = tpu.matmul %74, %60, %cst_21 {dimension_numbers = #tpu.dot_dimension_numbers<[1], [0], [0], [1], [0, 0, 1, 1], [], []>} : vector<64x64xbf16>, vector<64x16xbf16>, vector<64x16xf32> -> vector<64x16xf32>
    %76 = vector.extract_strided_slice %3 {offsets = [0, 48], sizes = [64, 16], strides = [1, 1]} : vector<64x384xf32> to vector<64x16xf32>
    %cst_22 = arith.constant 0.0883883461 : f32
    %77 = vector.broadcast %cst_22 : f32 to vector<64x16xf32>
    %78 = arith.mulf %76, %77 : vector<64x16xf32>
    %79 = arith.truncf %78 : vector<64x16xf32> to vector<64x16xbf16>
    %80 = vector.extract_strided_slice %3 {offsets = [0, 176], sizes = [64, 16], strides = [1, 1]} : vector<64x384xf32> to vector<64x16xf32>
    %81 = arith.truncf %80 : vector<64x16xf32> to vector<64x16xbf16>
    %82 = vector.extract_strided_slice %3 {offsets = [0, 304], sizes = [64, 16], strides = [1, 1]} : vector<64x384xf32> to vector<64x16xf32>
    %83 = arith.truncf %82 : vector<64x16xf32> to vector<64x16xbf16>
    "tpu.trace_start"() <{level = 10 : i32, message = "td,sd->ts"}> : () -> ()
    %cst_23 = arith.constant dense<0.000000e+00> : vector<64x64xf32>
    %84 = tpu.matmul %79, %81, %cst_23 {dimension_numbers = #tpu.dot_dimension_numbers<[1], [1], [0], [0], [0, 0, 1, 0], [], []>} : vector<64x16xbf16>, vector<64x16xbf16>, vector<64x64xf32> -> vector<64x64xf32>
    %cst_24 = arith.constant 0xFF800000 : f32
    "tpu.trace_stop"() : () -> ()
    %85 = vector.broadcast %cst_24 : f32 to vector<64x64xf32>
    %86 = arith.select %6, %84, %85 : vector<64x64xi1>, vector<64x64xf32>
    %cst_25 = arith.constant dense<0xFF800000> : vector<64xf32>
    %87 = vector.multi_reduction <maximumf>, %86, %cst_25 [1] : vector<64x64xf32> to vector<64xf32>
    %88 = vector.shape_cast %87 : vector<64xf32> to vector<64x1xf32>
    %89 = vector.broadcast %88 : vector<64x1xf32> to vector<64x64xf32>
    %90 = arith.subf %86, %89 : vector<64x64xf32>
    %91 = math.exp %90 : vector<64x64xf32>
    %cst_26 = arith.constant dense<0.000000e+00> : vector<64xf32>
    %92 = vector.multi_reduction <add>, %91, %cst_26 [1] : vector<64x64xf32> to vector<64xf32>
    %93 = vector.shape_cast %92 : vector<64xf32> to vector<64x1xf32>
    %94 = tpu.reciprocal %93 {approx = true} : vector<64x1xf32> -> vector<64x1xf32>
    %95 = vector.broadcast %94 : vector<64x1xf32> to vector<64x64xf32>
    %96 = arith.mulf %91, %95 : vector<64x64xf32>
    %97 = arith.truncf %96 : vector<64x64xf32> to vector<64x64xbf16>
    %cst_27 = arith.constant dense<0.000000e+00> : vector<64x16xf32>
    %98 = tpu.matmul %97, %83, %cst_27 {dimension_numbers = #tpu.dot_dimension_numbers<[1], [0], [0], [1], [0, 0, 1, 1], [], []>} : vector<64x64xbf16>, vector<64x16xbf16>, vector<64x16xf32> -> vector<64x16xf32>
    %99 = vector.extract_strided_slice %3 {offsets = [0, 64], sizes = [64, 16], strides = [1, 1]} : vector<64x384xf32> to vector<64x16xf32>
    %cst_28 = arith.constant 0.0883883461 : f32
    %100 = vector.broadcast %cst_28 : f32 to vector<64x16xf32>
    %101 = arith.mulf %99, %100 : vector<64x16xf32>
    %102 = arith.truncf %101 : vector<64x16xf32> to vector<64x16xbf16>
    %103 = vector.extract_strided_slice %3 {offsets = [0, 192], sizes = [64, 16], strides = [1, 1]} : vector<64x384xf32> to vector<64x16xf32>
    %104 = arith.truncf %103 : vector<64x16xf32> to vector<64x16xbf16>
    %105 = vector.extract_strided_slice %3 {offsets = [0, 320], sizes = [64, 16], strides = [1, 1]} : vector<64x384xf32> to vector<64x16xf32>
    %106 = arith.truncf %105 : vector<64x16xf32> to vector<64x16xbf16>
    "tpu.trace_start"() <{level = 10 : i32, message = "td,sd->ts"}> : () -> ()
    %cst_29 = arith.constant dense<0.000000e+00> : vector<64x64xf32>
    %107 = tpu.matmul %102, %104, %cst_29 {dimension_numbers = #tpu.dot_dimension_numbers<[1], [1], [0], [0], [0, 0, 1, 0], [], []>} : vector<64x16xbf16>, vector<64x16xbf16>, vector<64x64xf32> -> vector<64x64xf32>
    %cst_30 = arith.constant 0xFF800000 : f32
    "tpu.trace_stop"() : () -> ()
    %108 = vector.broadcast %cst_30 : f32 to vector<64x64xf32>
    %109 = arith.select %6, %107, %108 : vector<64x64xi1>, vector<64x64xf32>
    %cst_31 = arith.constant dense<0xFF800000> : vector<64xf32>
    %110 = vector.multi_reduction <maximumf>, %109, %cst_31 [1] : vector<64x64xf32> to vector<64xf32>
    %111 = vector.shape_cast %110 : vector<64xf32> to vector<64x1xf32>
    %112 = vector.broadcast %111 : vector<64x1xf32> to vector<64x64xf32>
    %113 = arith.subf %109, %112 : vector<64x64xf32>
    %114 = math.exp %113 : vector<64x64xf32>
    %cst_32 = arith.constant dense<0.000000e+00> : vector<64xf32>
    %115 = vector.multi_reduction <add>, %114, %cst_32 [1] : vector<64x64xf32> to vector<64xf32>
    %116 = vector.shape_cast %115 : vector<64xf32> to vector<64x1xf32>
    %117 = tpu.reciprocal %116 {approx = true} : vector<64x1xf32> -> vector<64x1xf32>
    %118 = vector.broadcast %117 : vector<64x1xf32> to vector<64x64xf32>
    %119 = arith.mulf %114, %118 : vector<64x64xf32>
    %120 = arith.truncf %119 : vector<64x64xf32> to vector<64x64xbf16>
    %cst_33 = arith.constant dense<0.000000e+00> : vector<64x16xf32>
    %121 = tpu.matmul %120, %106, %cst_33 {dimension_numbers = #tpu.dot_dimension_numbers<[1], [0], [0], [1], [0, 0, 1, 1], [], []>} : vector<64x64xbf16>, vector<64x16xbf16>, vector<64x16xf32> -> vector<64x16xf32>
    %122 = vector.extract_strided_slice %3 {offsets = [0, 80], sizes = [64, 16], strides = [1, 1]} : vector<64x384xf32> to vector<64x16xf32>
    %cst_34 = arith.constant 0.0883883461 : f32
    %123 = vector.broadcast %cst_34 : f32 to vector<64x16xf32>
    %124 = arith.mulf %122, %123 : vector<64x16xf32>
    %125 = arith.truncf %124 : vector<64x16xf32> to vector<64x16xbf16>
    %126 = vector.extract_strided_slice %3 {offsets = [0, 208], sizes = [64, 16], strides = [1, 1]} : vector<64x384xf32> to vector<64x16xf32>
    %127 = arith.truncf %126 : vector<64x16xf32> to vector<64x16xbf16>
    %128 = vector.extract_strided_slice %3 {offsets = [0, 336], sizes = [64, 16], strides = [1, 1]} : vector<64x384xf32> to vector<64x16xf32>
    %129 = arith.truncf %128 : vector<64x16xf32> to vector<64x16xbf16>
    "tpu.trace_start"() <{level = 10 : i32, message = "td,sd->ts"}> : () -> ()
    %cst_35 = arith.constant dense<0.000000e+00> : vector<64x64xf32>
    %130 = tpu.matmul %125, %127, %cst_35 {dimension_numbers = #tpu.dot_dimension_numbers<[1], [1], [0], [0], [0, 0, 1, 0], [], []>} : vector<64x16xbf16>, vector<64x16xbf16>, vector<64x64xf32> -> vector<64x64xf32>
    %cst_36 = arith.constant 0xFF800000 : f32
    "tpu.trace_stop"() : () -> ()
    %131 = vector.broadcast %cst_36 : f32 to vector<64x64xf32>
    %132 = arith.select %6, %130, %131 : vector<64x64xi1>, vector<64x64xf32>
    %cst_37 = arith.constant dense<0xFF800000> : vector<64xf32>
    %133 = vector.multi_reduction <maximumf>, %132, %cst_37 [1] : vector<64x64xf32> to vector<64xf32>
    %134 = vector.shape_cast %133 : vector<64xf32> to vector<64x1xf32>
    %135 = vector.broadcast %134 : vector<64x1xf32> to vector<64x64xf32>
    %136 = arith.subf %132, %135 : vector<64x64xf32>
    %137 = math.exp %136 : vector<64x64xf32>
    %cst_38 = arith.constant dense<0.000000e+00> : vector<64xf32>
    %138 = vector.multi_reduction <add>, %137, %cst_38 [1] : vector<64x64xf32> to vector<64xf32>
    %139 = vector.shape_cast %138 : vector<64xf32> to vector<64x1xf32>
    %140 = tpu.reciprocal %139 {approx = true} : vector<64x1xf32> -> vector<64x1xf32>
    %141 = vector.broadcast %140 : vector<64x1xf32> to vector<64x64xf32>
    %142 = arith.mulf %137, %141 : vector<64x64xf32>
    %143 = arith.truncf %142 : vector<64x64xf32> to vector<64x64xbf16>
    %cst_39 = arith.constant dense<0.000000e+00> : vector<64x16xf32>
    %144 = tpu.matmul %143, %129, %cst_39 {dimension_numbers = #tpu.dot_dimension_numbers<[1], [0], [0], [1], [0, 0, 1, 1], [], []>} : vector<64x64xbf16>, vector<64x16xbf16>, vector<64x16xf32> -> vector<64x16xf32>
    %145 = vector.extract_strided_slice %3 {offsets = [0, 96], sizes = [64, 16], strides = [1, 1]} : vector<64x384xf32> to vector<64x16xf32>
    %cst_40 = arith.constant 0.0883883461 : f32
    %146 = vector.broadcast %cst_40 : f32 to vector<64x16xf32>
    %147 = arith.mulf %145, %146 : vector<64x16xf32>
    %148 = arith.truncf %147 : vector<64x16xf32> to vector<64x16xbf16>
    %149 = vector.extract_strided_slice %3 {offsets = [0, 224], sizes = [64, 16], strides = [1, 1]} : vector<64x384xf32> to vector<64x16xf32>
    %150 = arith.truncf %149 : vector<64x16xf32> to vector<64x16xbf16>
    %151 = vector.extract_strided_slice %3 {offsets = [0, 352], sizes = [64, 16], strides = [1, 1]} : vector<64x384xf32> to vector<64x16xf32>
    %152 = arith.truncf %151 : vector<64x16xf32> to vector<64x16xbf16>
    "tpu.trace_start"() <{level = 10 : i32, message = "td,sd->ts"}> : () -> ()
    %cst_41 = arith.constant dense<0.000000e+00> : vector<64x64xf32>
    %153 = tpu.matmul %148, %150, %cst_41 {dimension_numbers = #tpu.dot_dimension_numbers<[1], [1], [0], [0], [0, 0, 1, 0], [], []>} : vector<64x16xbf16>, vector<64x16xbf16>, vector<64x64xf32> -> vector<64x64xf32>
    %cst_42 = arith.constant 0xFF800000 : f32
    "tpu.trace_stop"() : () -> ()
    %154 = vector.broadcast %cst_42 : f32 to vector<64x64xf32>
    %155 = arith.select %6, %153, %154 : vector<64x64xi1>, vector<64x64xf32>
    %cst_43 = arith.constant dense<0xFF800000> : vector<64xf32>
    %156 = vector.multi_reduction <maximumf>, %155, %cst_43 [1] : vector<64x64xf32> to vector<64xf32>
    %157 = vector.shape_cast %156 : vector<64xf32> to vector<64x1xf32>
    %158 = vector.broadcast %157 : vector<64x1xf32> to vector<64x64xf32>
    %159 = arith.subf %155, %158 : vector<64x64xf32>
    %160 = math.exp %159 : vector<64x64xf32>
    %cst_44 = arith.constant dense<0.000000e+00> : vector<64xf32>
    %161 = vector.multi_reduction <add>, %160, %cst_44 [1] : vector<64x64xf32> to vector<64xf32>
    %162 = vector.shape_cast %161 : vector<64xf32> to vector<64x1xf32>
    %163 = tpu.reciprocal %162 {approx = true} : vector<64x1xf32> -> vector<64x1xf32>
    %164 = vector.broadcast %163 : vector<64x1xf32> to vector<64x64xf32>
    %165 = arith.mulf %160, %164 : vector<64x64xf32>
    %166 = arith.truncf %165 : vector<64x64xf32> to vector<64x64xbf16>
    %cst_45 = arith.constant dense<0.000000e+00> : vector<64x16xf32>
    %167 = tpu.matmul %166, %152, %cst_45 {dimension_numbers = #tpu.dot_dimension_numbers<[1], [0], [0], [1], [0, 0, 1, 1], [], []>} : vector<64x64xbf16>, vector<64x16xbf16>, vector<64x16xf32> -> vector<64x16xf32>
    %168 = vector.extract_strided_slice %3 {offsets = [0, 112], sizes = [64, 16], strides = [1, 1]} : vector<64x384xf32> to vector<64x16xf32>
    %cst_46 = arith.constant 0.0883883461 : f32
    %169 = vector.broadcast %cst_46 : f32 to vector<64x16xf32>
    %170 = arith.mulf %168, %169 : vector<64x16xf32>
    %171 = arith.truncf %170 : vector<64x16xf32> to vector<64x16xbf16>
    %172 = vector.extract_strided_slice %3 {offsets = [0, 240], sizes = [64, 16], strides = [1, 1]} : vector<64x384xf32> to vector<64x16xf32>
    %173 = arith.truncf %172 : vector<64x16xf32> to vector<64x16xbf16>
    %174 = vector.extract_strided_slice %3 {offsets = [0, 368], sizes = [64, 16], strides = [1, 1]} : vector<64x384xf32> to vector<64x16xf32>
    %175 = arith.truncf %174 : vector<64x16xf32> to vector<64x16xbf16>
    "tpu.trace_start"() <{level = 10 : i32, message = "td,sd->ts"}> : () -> ()
    %cst_47 = arith.constant dense<0.000000e+00> : vector<64x64xf32>
    %176 = tpu.matmul %171, %173, %cst_47 {dimension_numbers = #tpu.dot_dimension_numbers<[1], [1], [0], [0], [0, 0, 1, 0], [], []>} : vector<64x16xbf16>, vector<64x16xbf16>, vector<64x64xf32> -> vector<64x64xf32>
    %cst_48 = arith.constant 0xFF800000 : f32
    "tpu.trace_stop"() : () -> ()
    %177 = vector.broadcast %cst_48 : f32 to vector<64x64xf32>
    %178 = arith.select %6, %176, %177 : vector<64x64xi1>, vector<64x64xf32>
    %cst_49 = arith.constant dense<0xFF800000> : vector<64xf32>
    %179 = vector.multi_reduction <maximumf>, %178, %cst_49 [1] : vector<64x64xf32> to vector<64xf32>
    %180 = vector.shape_cast %179 : vector<64xf32> to vector<64x1xf32>
    %181 = vector.broadcast %180 : vector<64x1xf32> to vector<64x64xf32>
    %182 = arith.subf %178, %181 : vector<64x64xf32>
    %183 = math.exp %182 : vector<64x64xf32>
    %cst_50 = arith.constant dense<0.000000e+00> : vector<64xf32>
    %184 = vector.multi_reduction <add>, %183, %cst_50 [1] : vector<64x64xf32> to vector<64xf32>
    %185 = vector.shape_cast %184 : vector<64xf32> to vector<64x1xf32>
    %186 = tpu.reciprocal %185 {approx = true} : vector<64x1xf32> -> vector<64x1xf32>
    %187 = vector.broadcast %186 : vector<64x1xf32> to vector<64x64xf32>
    %188 = arith.mulf %183, %187 : vector<64x64xf32>
    %189 = arith.truncf %188 : vector<64x64xf32> to vector<64x64xbf16>
    %cst_51 = arith.constant dense<0.000000e+00> : vector<64x16xf32>
    %190 = tpu.matmul %189, %175, %cst_51 {dimension_numbers = #tpu.dot_dimension_numbers<[1], [0], [0], [1], [0, 0, 1, 1], [], []>} : vector<64x64xbf16>, vector<64x16xbf16>, vector<64x16xf32> -> vector<64x16xf32>
    %191 = tpu.concatenate %29, %52, %75, %98, %121, %144, %167, %190 in 1 : vector<64x16xf32>, vector<64x16xf32>, vector<64x16xf32>, vector<64x16xf32>, vector<64x16xf32>, vector<64x16xf32>, vector<64x16xf32>, vector<64x16xf32> -> vector<64x128xf32>
    %192 = arith.truncf %191 : vector<64x128xf32> to vector<64x128xbf16>
    %c0_52 = arith.constant 0 : index
    %c0_53 = arith.constant 0 : index
    %193 = vector.load %arg3[%c0_52, %c0_53] : memref<128x128xbf16, #tpu.memory_space<vmem>>, vector<128x128xbf16>
    %cst_54 = arith.constant dense<0.000000e+00> : vector<64x128xf32>
    %194 = tpu.matmul %192, %193, %cst_54 {dimension_numbers = #tpu.dot_dimension_numbers<[1], [0], [0], [1], [0, 0, 1, 1], [], []>} : vector<64x128xbf16>, vector<128x128xbf16>, vector<64x128xf32> -> vector<64x128xf32>
    %c0_55 = arith.constant 0 : index
    %c0_56 = arith.constant 0 : index
    %195 = vector.load %arg4[%c0_55, %c0_56] : memref<1x128xf32, #tpu.memory_space<vmem>>, vector<1x128xf32>
    %196 = vector.broadcast %195 : vector<1x128xf32> to vector<64x128xf32>
    %197 = arith.addf %194, %196 : vector<64x128xf32>
    %c0_57 = arith.constant 0 : index
    %c0_58 = arith.constant 0 : index
    %c0_59 = arith.constant 0 : index
    %198 = vector.load %arg5[%c0_57, %c0_58, %c0_59] : memref<1x64x128xf32, #tpu.memory_space<vmem>>, vector<1x64x128xf32>
    %199 = vector.shape_cast %198 : vector<1x64x128xf32> to vector<64x128xf32>
    %200 = vector.shape_cast %197 : vector<64x128xf32> to vector<1x64x128xf32>
    tpu.vector_store %arg5[%c0_57, %c0_58, %c0_59], %200 {strides = array<i32>} : memref<1x64x128xf32, #tpu.memory_space<vmem>>, vector<1x64x128xf32>,
    return
  }
  func.func @transform_0(%arg0: i32) -> (i32, i32, i32) {
    %c0_i32 = arith.constant 0 : i32
    %c0_i32_0 = arith.constant 0 : i32
    %c0_i32_1 = arith.constant 0 : i32
    return %arg0, %c0_i32, %c0_i32_0 : i32, i32, i32
  }
  func.func @transform_1(%arg0: i32) -> (i32, i32) {
    %c0_i32 = arith.constant 0 : i32
    %c0_i32_0 = arith.constant 0 : i32
    %c0_i32_1 = arith.constant 0 : i32
    return %c0_i32, %c0_i32_0 : i32, i32
  }
  func.func @transform_2(%arg0: i32) -> (i32, i32) {
    %c0_i32 = arith.constant 0 : i32
    %c0_i32_0 = arith.constant 0 : i32
    %c0_i32_1 = arith.constant 0 : i32
    return %c0_i32, %c0_i32_0 : i32, i32
  }
  func.func @transform_3(%arg0: i32) -> (i32, i32) {
    %c0_i32 = arith.constant 0 : i32
    %c0_i32_0 = arith.constant 0 : i32
    %c0_i32_1 = arith.constant 0 : i32
    return %c0_i32, %c0_i32_0 : i32, i32
  }
  func.func @transform_4(%arg0: i32) -> (i32, i32, i32) {
    %c0_i32 = arith.constant 0 : i32
    %c0_i32_0 = arith.constant 0 : i32
    %c0_i32_1 = arith.constant 0 : i32
    return %arg0, %c0_i32, %c0_i32_0 : i32, i32, i32
  }
}

</mosaic_0001>

<bundles_post_ra>
// kernel: tpu_custom_call.1
= control target key start
LH: loop header
LB: loop body
LE: loop exit
PB: predicated region body
PF: predicated region fallthrough
CT: control target
= control target key end

     0   :  { %9 = vsyncpa [#allocation3], 0  ;;  %s6401_s0 = inlined_call_operand.hbm [shape: bf16[2,64,128], index: 0, kind: input, shape index: {}]   ;;  %s6402_s1 = inlined_call_operand.hbm [shape: bf16[128,384], index: 1, kind: input, shape index: {}]   ;;  %s6403_s2 = inlined_call_operand.hbm [shape: bf16[128,128], index: 2, kind: input, shape index: {}]   ;;  %s6404_s3 = inlined_call_operand.vmem [shape: f32[1,128], index: 3, kind: input, shape index: {}]   ;;  %s6405_s4 = inlined_call_operand.hbm [shape: f32[2,64,128], index: 4, kind: output, shape index: {}]  }
   0x1   :  { %11 = vsyncpa [#allocation3 + $0x1], 0 }
   0x2   :  { %12 = vsyncpa [#allocation6], 0 }
   0x3   :  { %13 = vsyncpa [#allocation4], 0 }
   0x4   :  { %15 = vsyncpa [#allocation4 + $0x1], 0  ;;  %s4823_s15 = smov 0   ;;  %s4825_s16 = smov 0  }
   0x5   :  { %s4827_s17 = smov 0   ;;  %s4829_s18 = smov 0  }
   0x6 LB: > { %s4844_s19 = sadd.s32 4294967295, %s4778_s18   ;;  %s3492_s20 = sadd.s32 4294967294, %s4778_s18   ;;  %s4778_s18 = sphi %s4829_s18, %s6537_s18   ;;  %s4774_s17 = sphi %s4827_s17, %s6536_s17   ;;  %s4770_s16 = sphi %s4825_s16, %s6535_s16   ;;  %s4766_s15 = sphi %s4823_s15, %s6534_s15  }
   0x7   : > { %p41_p0 = scmp.ne.s32.totalorder %s4770_s16, %s4766_s15  ;;  %p6406_p1 = scmp.eq.s32.totalorder %s4844_s19, 0 }
   0x8   : > { %p134_p3 = scmp.eq.s32.totalorder %s3492_s20, 1  ;;  %p3493_p5 = scmp.ge.s32.totalorder %s4778_s18, 1 }
   0x9   : > { %p4853_p4 = por %p6406_p1, %p41_p0  ;;  %p141_p7 = scmp.lt.s32.totalorder %s4778_s18, 3 }
   0xa   : > { %p4858_p6 = por %p134_p3, %p41_p0  ;;  %s4780_s24 = smov [#allocation5]  }
   0xb   : > { %s6429_s21 = scalar_select %p4853_p4, 1, 0 }
   0xc   : > { %s6430_s22 = scalar_select %p4858_p6, 1, 0 }
   0xd   : > { %p4863_p8 = pnand %p3493_p5, %p141_p7  ;;  %s153_s25 = sshll.u32 %s4780_s24, 4  ;;  %s4867_s25 = int_to_ptr.vmem [resolvable:$true] %s153_s25 }
   0xe   : > { %s4781_s27 = smov [#allocation7]   ;;  %s4622_s5 = scalar_lea.hbm %s6402_s1, 3072 }
   0xf   : > { %p4113_p9 = pneg %p4863_p8  ;;  %s166_s28 = sshll.u32 %s4781_s27, 4  ;;  %s4878_s28 = int_to_ptr.vmem [resolvable:$true] %s166_s28 }
  0x10   : > { %p4623_p12 = scmp.ne.s32.totalorder %s6402_s1, %s4622_s5  ;;  %p4629_p5 = scmp.lt.u32.totalorder %s4622_s5, %s6402_s1 }
  0x11   : > { %p4874_p11 = pnand %p4113_p9, %p6406_p1 }
  0x13   : > { %p4624_p13 = pneg %p4874_p11 }
  0x15   : > { %p4625_p0 = pnand %p4624_p13, %p4623_p12 }
  0x17   : > { %p4626_p3 = pneg %p4625_p0 }
  0x19   : > { %p4631_p7 = pnand %p4629_p5, %p4626_p3 }
  0x1b   : > { %4634 = shalt.err (!%p4631_p7)
}
  0x1c   : > { %s4635_s10 = scalar_lea.vmem %s4867_s25, 3072  ;;  %p4643_p2 = scmp.lt.s32.totalorder %s4867_s25, %s4867_s25 }
  0x1d   : > { %p4636_p9 = scmp.ne.s32.totalorder %s4867_s25, %s4635_s10  ;;  %p4644_p12 = scmp.lt.s32.totalorder %s4635_s10, %s4635_s10 }
  0x1f   : > { %p4638_p10 = pnand %p4636_p9, %p4624_p13  ;;  %p4645_p0 = por %p4644_p12, %p4643_p2 }
  0x21   : > { %p4639_p1 = pneg %p4638_p10 }
  0x23   : > { %p4646_p6 = pnand %p4645_p0, %p4639_p1 }
  0x25   : > { %4649 = shalt.err (!%p4646_p6)
}
  0x26   : > { %s4782_s11 = smov 192   ;;  %s4783_s12 = smov 12  }
  0x27   : > { %4116 = dma.hbm_to_vmem [thread:$0]  (!%p4874_p11), %s6402_s1, 3072, %s4867_s25, [#allocation6], %s4782_s11, %s4782_s11, %s4783_s12  }
  0x28   : > { %s4650_s27 = scalar_lea.hbm %s6403_s2, 1024 }
  0x29   : > { %p4651_p2 = scmp.ne.s32.totalorder %s6403_s2, %s4650_s27  ;;  %p4657_p10 = scmp.lt.u32.totalorder %s4650_s27, %s6403_s2 }
  0x2b   : > { %p4653_p1 = pnand %p4651_p2, %p4624_p13 }
  0x2d   : > { %p4654_p6 = pneg %p4653_p1 }
  0x2f   : > { %p4659_p3 = pnand %p4657_p10, %p4654_p6 }
  0x31   : > { %4662 = shalt.err (!%p4659_p3)
}
  0x32   : > { %s4663_s25 = scalar_lea.vmem %s4878_s28, 1024  ;;  %p4671_p12 = scmp.lt.s32.totalorder %s4878_s28, %s4878_s28 }
  0x33   : > { %p4664_p5 = scmp.ne.s32.totalorder %s4878_s28, %s4663_s25  ;;  %p4672_p0 = scmp.lt.s32.totalorder %s4663_s25, %s4663_s25 }
  0x35   : > { %p4666_p7 = pnand %p4664_p5, %p4624_p13  ;;  %p4673_p2 = por %p4672_p0, %p4671_p12 }
  0x37   : > { %p4667_p9 = pneg %p4666_p7 }
  0x39   : > { %p4674_p1 = pnand %p4673_p2, %p4667_p9 }
  0x3b   : > { %4677 = shalt.err (!%p4674_p1)
}
  0x3c   : > { %s4784_s7 = smov 64   ;;  %s4785_s8 = smov 4  }
  0x3d   : > { %4119 = dma.hbm_to_vmem [thread:$0]  (!%p4874_p11), %s6403_s2, 1024, %s4878_s28, [#allocation6], %s4784_s7, %s4784_s7, %s4785_s8  }
  0x3e   : > { %s4936_s11 = sadd.s32 1, %s4778_s18   ;;  %s28_s13 = sadd.s32 1, %s4774_s17 }
  0x3f   : > { %s25_s12 = ssub.s32 %s4778_s18, %s4936_s11  ;;  %p35_p6 = scmp.ne.s32.totalorder %s4774_s17, %s4770_s16 }
  0x40   : > { %p26_p13 = scmp.eq.s32.totalorder %s25_s12, 0  ;;  %p36_p10 = scmp.eq.s32.totalorder %s4778_s18, 0 }
  0x41   : > { %p6433_p5 = scmp.eq.s32.totalorder %s4844_s19, 1  ;;  %p4130_p9 = scmp.lt.s32.totalorder %s4778_s18, 2 }
  0x42   : > { %s4945_s14 = scalar_select %p26_p13, %s4774_s17, %s28_s13  }
  0x43   : > { %p37_p3 = por %p36_p10, %p35_p6  ;;  %p4949_p7 = por %p6433_p5, %p35_p6 }
  0x44   : > { %s183_s20 = sand.u32 1, %s4774_s17   ;;  %s3611_s28 = sshll.u32 %s4778_s18, 9 }
  0x45   : > { %s6434_s26 = scalar_select %p4949_p7, 1, 0 }
  0x46   : > { %s3497_s24 = sshll.u32 %s183_s20, 5  ;;  %s4959_s30 = scalar_lea.hbm %s6401_s0, %s3611_s28 }
  0x47   : > { %s187_s5 = scalar_lea.vmem [#allocation2], %s3497_s24  ;;  %p4963_p11 = pnand %p4130_p9, %p37_p3 }
  0x48   : > { %s194_s6 = sshll.u32 %s187_s5, 4  ;;  %s4967_s9 = scalar_lea.sflag [#allocation3], %s183_s20  ;;  %s4961_s6 = int_to_ptr.vmem [resolvable:$true] %s194_s6 }
  0x49   : > { %s4678_s10 = scalar_lea.hbm %s4959_s30, 512  ;;  %p4680_p0 = pneg %p4963_p11 }
  0x4a   : > { %p4679_p12 = scmp.ne.s32.totalorder %s4959_s30, %s4678_s10  ;;  %s4683_s24 = scalar_lea.hbm %s6401_s0, 1024 }
  0x4b   : > { %p4684_p13 = scmp.lt.u32.totalorder %s4959_s30, %s6401_s0  ;;  %p4685_p6 = scmp.lt.u32.totalorder %s4683_s24, %s4678_s10 }
  0x4c   : > { %p4681_p2 = pnand %p4680_p0, %p4679_p12  ;;  %p4687_p3 = scmp.lt.u32.totalorder %s4678_s10, %s4959_s30 }
  0x4d   : > { %p4686_p10 = por %p4685_p6, %p4684_p13 }
  0x4e   : > { %p4682_p1 = pneg %p4681_p2 }
  0x4f   : > { %p4688_p5 = por %p4687_p3, %p4686_p10 }
  0x51   : > { %p4689_p9 = pnand %p4688_p5, %p4682_p1 }
  0x53   : > { %4692 = shalt.err (!%p4689_p9)
}
  0x54   : > { %s4693_s20 = scalar_lea.vmem %s4961_s6, 512  ;;  %s4786_s29 = smov [#allocation2]  }
  0x55   : > { %p4694_p12 = scmp.ne.s32.totalorder %s4961_s6, %s4693_s20  ;;  %s4698_s5 = sshll.u32 %s4786_s29, 4  ;;  %s4699_s5 = int_to_ptr.vmem [resolvable:$false] %s4698_s5 }
  0x56   : > { %s4700_s12 = scalar_lea.vmem %s4699_s5, 1024  ;;  %p4701_p4 = scmp.lt.s32.totalorder %s4961_s6, %s4699_s5 }
  0x57   : > { %p4696_p2 = pnand %p4694_p12, %p4680_p0  ;;  %p4702_p13 = scmp.lt.s32.totalorder %s4700_s12, %s4693_s20 }
  0x59   : > { %p4697_p7 = pneg %p4696_p2  ;;  %p4703_p6 = por %p4702_p13, %p4701_p4 }
  0x5b   : > { %p4704_p10 = pnand %p4703_p6, %p4697_p7 }
  0x5d   : > { %4707 = shalt.err (!%p4704_p10)
}
  0x5e   : > { %4123 = dma.hbm_to_vmem [thread:$0]  (!%p4963_p11), %s4959_s30, 512, %s4961_s6, %s4967_s9, %s4784_s7, %s4784_s7, %s4785_s8  }
  0x5f   : > { %206 = sbr.rel (%p4863_p8) target bundleno = 5423 (0x152f), region = 36 }
  0x66   : > { %s5001_s10 = sand.u32 1, %s4770_s16   ;;  %p6436_p4 = scmp.ne.s32.totalorder %s6429_s21, 0 }
  0x67   : > { %s3501_s13 = sshll.u32 %s5001_s10, 5  ;;  %s209_s24 = scalar_lea.sflag [#allocation3], %s5001_s10 }
  0x68   : > { %s5005_s28 = scalar_lea.vmem [#allocation2], %s3501_s13 }
  0x69   : > { %4753 = dma.done.wait (%p6436_p4), %s209_s24, 512  }
  0x6a   : > { %4755 = vsyncadd (%p6436_p4), %s209_s24, 4294966784  ;;  %p6437_p7 = scmp.eq.s32.totalorder %s4844_s19, 0 }
  0x6c   : > { %4757 = dma.done.wait (%p6437_p7), [#allocation6], 4096   ;;  %p6438_p8 = pmov %p6437_p7 }
  0x6d   : > { %v4787_v0 = vmov 0   ;;  %v4322_v1 = vld [vmem:[#allocation5 + $0x4] ss:$12 sps:$4 sm:$0xff]   ;;  %v4324_v2 = vld [vmem:[#allocation5] ss:$12 sps:$4 sm:$0xff]   ;;  %v5025_v20 = vld [vmem:[%s5005_s28 + $0x18] sm:$0xff]  }
  0x6e   : > { %4759 = vsyncadd (%p6438_p8), [#allocation6], 4294963200  ;;  %470 = vmatprep.mubr.bf16.mxu0 %v4787_v0  ;;  %438 = vmatprep.subr.bf16.mxu0 %v4322_v1  ;;  %v4325_v3 = vld [vmem:[#allocation5 + $0x1c] ss:$12 sps:$4 sm:$0xff]   ;;  %v4327_v4 = vld [vmem:[#allocation5 + $0x18] ss:$12 sps:$4 sm:$0xff]   ;;  %v576_v1 = vlaneseq }
  0x6f   : > { %439 = vmatpush1.bf16.msra.mxu0 %v4324_v2  ;;  %v4328_v5 = vld [vmem:[#allocation5 + $0x34] ss:$12 sps:$4 sm:$0xff]   ;;  %v4330_v6 = vld [vmem:[#allocation5 + $0x30] ss:$12 sps:$4 sm:$0xff]   ;;  %v4331_v7 = vld [vmem:[#allocation5 + $0x4c] ss:$12 sps:$4 sm:$0xff]  }
  0x70   : > { %440 = vmatprep.subr.bf16.mxu0 %v4325_v3  ;;  %v4333_v8 = vld [vmem:[#allocation5 + $0x48] ss:$12 sps:$4 sm:$0xff]   ;;  %v4346_v9 = vld [vmem:[%s5005_s28] sm:$0xff]   ;;  %v4342_v15 = vld [vmem:[#allocation5 + $0x90] ss:$12 sps:$4 sm:$0xff]   ;;  %vm615_vm0 = vcmask 130048  }
  0x71   : > { %v4334_v10 = vld [vmem:[#allocation5 + $0x64] ss:$12 sps:$4 sm:$0xff]   ;;  %v4336_v11 = vld [vmem:[#allocation5 + $0x60] ss:$12 sps:$4 sm:$0xff]   ;;  %3781 = vmatprep.mubr.bf16.mxu1 %v4346_v9  ;;  %v4337_v12 = vld [vmem:[#allocation5 + $0x7c] ss:$12 sps:$4 sm:$0xff]  }
  0x72   : > { %v4339_v13 = vld [vmem:[#allocation5 + $0x78] ss:$12 sps:$4 sm:$0xff]   ;;  %v4340_v14 = vld [vmem:[#allocation5 + $0x94] ss:$12 sps:$4 sm:$0xff]   ;;  %v5017_v18 = vld [vmem:[%s5005_s28 + $0x8] sm:$0xff]   ;;  %v577_v2 = vshrl.u32 %v576_v1, 7 }
  0x73   : > { %441 = vmatpush1.bf16.msra.mxu0 %v4327_v4  ;;  %v4343_v16 = vld [vmem:[#allocation5 + $0xac] ss:$12 sps:$4 sm:$0xff]   ;;  %v4345_v17 = vld [vmem:[#allocation5 + $0xa8] ss:$12 sps:$4 sm:$0xff]   ;;  %v4353_v60 = vld [vmem:[#allocation5 + $0x50] ss:$12 sps:$4 sm:$0xff]  }
  0x74   : > { %442 = vmatprep.subr.bf16.mxu0 %v4328_v5  ;;  %v5021_v19 = vld [vmem:[%s5005_s28 + $0x10] sm:$0xff]   ;;  %v4351_v58 = vld [vmem:[#allocation5 + $0x20] ss:$12 sps:$4 sm:$0xff]   ;;  %v4352_v59 = vld [vmem:[#allocation5 + $0x38] ss:$12 sps:$4 sm:$0xff]   ;;  %v579_v3 = vadd.s32 16, %v577_v2 }
  0x75   : > { %v4350_v57 = vld [vmem:[#allocation5 + $0x8] ss:$12 sps:$4 sm:$0xff]   ;;  %v4355_v62 = vld [vmem:[#allocation5 + $0x80] ss:$12 sps:$4 sm:$0xff]   ;;  %v4356_v63 = vld [vmem:[#allocation5 + $0x98] ss:$12 sps:$4 sm:$0xff]  }
  0x76   : > { %3765 = vmatprep.subr.bf16.mxu1 %v4350_v57  ;;  %v4354_v61 = vld [vmem:[#allocation5 + $0x68] ss:$12 sps:$4 sm:$0xff]   ;;  %v586_v4 = vand.u32 127, %v576_v1  ;;  %v580_v5 = vadd.s32 24, %v577_v2  ;;  %vm713_vm3 = vcmask 523264   ;;  %s4788_s21 = smov 112  }
  0x77   : > { %443 = vmatpush1.bf16.msra.mxu0 %v4330_v6  ;;  %3766 = vmatpush3.bf16.msra.mxu1 %v4350_v57  ;;  %v578_v6 = vadd.s32 8, %v577_v2  ;;  %s4789_s23 = smov 96   ;;  %s4790_s7 = smov 80   ;;  %vm3185_vm10 = vcmask 261120   ;;  %vm3194_vm11 = vcmask 392192   ;;  %vm3211_vm12 = vcmask 654336  }
  0x78   : > { %444 = vmatprep.subr.bf16.mxu0 %v4331_v7  ;;  %3767 = vmatprep.subr.bf16.mxu1 %v4351_v58  ;;  %vm5071_vm1 = vcmp.le.s32.totalorder %v586_v4, %v579_v3  ;;  %vm5075_vm2 = vcmp.le.s32.totalorder %v586_v4, %v577_v2  ;;  %vm5079_vm4 = vcmp.le.s32.totalorder %v586_v4, %v580_v5  ;;  %s4791_s8 = smov 64   ;;  %s4792_s30 = smov 48   ;;  %vm3220_vm13 = vcmask 785408  }
  0x79   : > { %vm5085_vm5 = vcmp.le.s32.totalorder %v586_v4, %v578_v6  ;;  %s4793_s6 = smov 32   ;;  %s4794_s25 = smov 16   ;;  %vm3229_vm14 = vcmask 916480  }
  0x7a   : > { %s3504_s9 = sshll.u32 %s5001_s10, 6  ;;  %s3612_s12 = sshll.u32 %s4844_s19, 10 }
  0x7b   : > { %445 = vmatpush1.bf16.msra.mxu0 %v4333_v8  ;;  %3768 = vmatpush3.bf16.msra.mxu1 %v4351_v58  ;;  %s244_s29 = scalar_lea.vmem [#allocation8], %s3504_s9  ;;  %s6357_s28 = scalar_lea.hbm %s6405_s4, %s3612_s12 }
  0x7c   : > { %446 = vmatprep.subr.bf16.mxu0 %v4334_v10  ;;  %3769 = vmatprep.subr.bf16.mxu1 %v4352_v59  ;;  %s3400_s5 = sshll.u32 %s244_s29, 4  ;;  %s3387_s19 = scalar_lea.sflag [#allocation4], %s5001_s10  ;;  %s6352_s5 = int_to_ptr.vmem [resolvable:$true] %s3400_s5 }
  0x7d   : > { %p6531_p0 = scmp.ne.s32.totalorder %s6434_s26, 0 }
  0x7f   : > { %447 = vmatpush1.bf16.msra.mxu0 %v4336_v11  ;;  %3770 = vmatpush3.bf16.msra.mxu1 %v4352_v59 }
  0x80   : > { %448 = vmatprep.subr.bf16.mxu0 %v4337_v12  ;;  %3771 = vmatprep.subr.bf16.mxu1 %v4353_v60 }
  0x83   : > { %449 = vmatpush1.bf16.msra.mxu0 %v4339_v13  ;;  %3772 = vmatpush3.bf16.msra.mxu1 %v4353_v60 }
  0x84   : > { %450 = vmatprep.subr.bf16.mxu0 %v4340_v14  ;;  %3773 = vmatprep.subr.bf16.mxu1 %v4354_v61 }
  0x87   : > { %451 = vmatpush1.bf16.msra.mxu0 %v4342_v15  ;;  %3774 = vmatpush3.bf16.msra.mxu1 %v4354_v61 }
  0x88   : > { %452 = vmatprep.subr.bf16.mxu0 %v4343_v16  ;;  %3775 = vmatprep.subr.bf16.mxu1 %v4355_v62 }
  0x8b   : > { %453 = vmatpush1.bf16.msra.mxu0 %v4345_v17  ;;  %3776 = vmatpush3.bf16.msra.mxu1 %v4355_v62 }
  0x8c   : > { %3777 = vmatprep.subr.bf16.mxu1 %v4356_v63 }
  0x8e   : > { %471 = vmatmul.mubr.bf16.vlgmr.msra.gmra.mrb[0].mxu0 %v4346_v9 }
  0x8f   : > { %480 = vmatprep.mubr.bf16.mxu0 %v4787_v0  ;;  %3778 = vmatpush3.bf16.msra.mxu1 %v4356_v63 }
  0x96   : > { %481 = vmatmul.mubr.bf16.gmra.mrb[4].mxu0 %v5017_v18 }
  0x97   : > { %490 = vmatprep.mubr.bf16.mxu0 %v4787_v0 }
  0x9e   : > { %491 = vmatmul.mubr.bf16.gmra.mrb[8].mxu0 %v5021_v19 }
  0x9f   : > { %500 = vmatprep.mubr.bf16.mxu0 %v4787_v0  ;;  %v4357_v0 = vld [vmem:[#allocation5 + $0xb0] ss:$12 sps:$4 sm:$0xff]  }
  0xa0   : > { %3779 = vmatprep.subr.bf16.mxu1 %v4357_v0 }
  0xa1   : > { %3780 = vmatpush3.bf16.msra.mxu1 %v4357_v0 }
  0xa4   : > { %3782 = vmatmul.mubr.bf16.vlgmr.msra.gmra.mrb[0].mxu1 %v5017_v18 }
  0xa5   : > { %3785 = vmatprep.mubr.bf16.mxu1 %v5021_v19 }
  0xa6   : > { %501 = vmatmul.mubr.bf16.gmra.mrb[12].mxu0 %v5025_v20 }
  0xac   : > { %3786 = vmatmul.mubr.bf16.gmra.mrb[4].mxu1 %v5025_v20  ;;  %v581_v20 = vadd.s32 32, %v577_v2 }
  0xae   : > { %vm5099_vm6 = vcmp.le.s32.totalorder %v586_v4, %v581_v20 }
 0x161   : > { %v472_v21 = vpop.f32.mrb[0].mxu0 }
 0x162   : > { %v474_v22 = vpop.f32.mrb[1].mxu0  ;;  %v595_v24 = vmul.f32 0.088388346, %v472_v21 }
 0x163   : > { %v476_v23 = vpop.f32.mrb[2].mxu0 }
 0x164   : > { %v596_v25 = vmul.f32 0.088388346, %v476_v23  ;;  %v478_v26 = vpop.f32.mrb[3].mxu0  ;;  %v583_v23 = vadd.s32 48, %v577_v2 }
 0x165   : > { %v5028_v27 = vpack.c.bf16 %v478_v26, %v474_v22  ;;  %v584_v22 = vadd.s32 56, %v577_v2 }
 0x166   : > { %v5030_v28 = vpack.c.bf16 %v596_v25, %v595_v24  ;;  %v582_v25 = vadd.s32 40, %v577_v2  ;;  %vm5107_vm8 = vcmp.le.s32.totalorder %v586_v4, %v583_v23 }
 0x167   : > { %4069 = vmatprep.subr.msk.bf16.mxu0 %vm615_vm0, %v5028_v27  ;;  %v629_v29 = vsel %vm615_vm0, %v5028_v27, 0  ;;  %vm5103_vm7 = vcmp.le.s32.totalorder %v586_v4, %v584_v22 }
 0x168   : > { %3790 = vmatpush3.bf16.xpose.msra.mxu0 %v629_v29  ;;  %3797 = vmatprep.mubr.msk.bf16.mxu0 %vm615_vm0, %v5030_v28  ;;  %vm5115_vm9 = vcmp.le.s32.totalorder %v586_v4, %v582_v25 }
 0x169   : > { %v482_v30 = vpop.f32.mrb[4].mxu0 }
 0x16a   : > { %v484_v31 = vpop.f32.mrb[5].mxu0  ;;  %v597_v33 = vmul.f32 0.088388346, %v482_v30 }
 0x16b   : > { %v486_v32 = vpop.f32.mrb[6].mxu0 }
 0x16c   : > { %v598_v34 = vmul.f32 0.088388346, %v486_v32  ;;  %v488_v35 = vpop.f32.mrb[7].mxu0 }
 0x16d   : > { %v5038_v36 = vpack.c.bf16 %v488_v35, %v484_v31 }
 0x16e   : > { %v5040_v37 = vpack.c.bf16 %v598_v34, %v597_v33 }
 0x16f   : > { %4070 = vmatprep.subr.msk.bf16.mxu0 %vm615_vm0, %v5038_v36  ;;  %v632_v38 = vsel %vm615_vm0, %v5038_v36, 0 }
 0x170   : > { %3792 = vmatpush3.bf16.xpose.msra.mxu0 %v632_v38 }
 0x171   : > { %v492_v39 = vpop.f32.mrb[8].mxu0 }
 0x172   : > { %v494_v40 = vpop.f32.mrb[9].mxu0  ;;  %v599_v42 = vmul.f32 0.088388346, %v492_v39 }
 0x173   : > { %v496_v41 = vpop.f32.mrb[10].mxu0 }
 0x174   : > { %v600_v43 = vmul.f32 0.088388346, %v496_v41  ;;  %v498_v44 = vpop.f32.mrb[11].mxu0 }
 0x175   : > { %v5046_v45 = vpack.c.bf16 %v498_v44, %v494_v40 }
 0x176   : > { %v5048_v46 = vpack.c.bf16 %v600_v43, %v599_v42 }
 0x177   : > { %4071 = vmatprep.subr.msk.bf16.mxu0 %vm615_vm0, %v5046_v45  ;;  %v635_v47 = vsel %vm615_vm0, %v5046_v45, 0  ;;  %v3783_v63 = vpop.f32.mrb[0].mxu1 }
 0x178   : > { %3794 = vmatpush3.bf16.xpose.msra.mxu0 %v635_v47  ;;  %v545_v0 = vpop.f32.mrb[1].mxu1 }
 0x179   : > { %v502_v48 = vpop.f32.mrb[12].mxu0  ;;  %v3784_v1 = vpop.f32.mrb[2].mxu1 }
 0x17a   : > { %v504_v49 = vpop.f32.mrb[13].mxu0  ;;  %v601_v51 = vmul.f32 0.088388346, %v502_v48  ;;  %v5143_v2 = vpack.c.bf16 %v3784_v1, %v3783_v63  ;;  %v548_v3 = vpop.f32.mrb[3].mxu1 }
 0x17b   : > { %v506_v50 = vpop.f32.mrb[14].mxu0  ;;  %v5147_v5 = vpack.c.bf16 %v548_v3, %v545_v0 }
 0x17c   : > { %v602_v52 = vmul.f32 0.088388346, %v506_v50  ;;  %v508_v53 = vpop.f32.mrb[15].mxu0 }
 0x17d   : > { %v5054_v54 = vpack.c.bf16 %v508_v53, %v504_v49  ;;  %3805 = vmatprep.subr.bf16.mxu1 %v5147_v5 }
 0x17e   : > { %v5056_v55 = vpack.c.bf16 %v602_v52, %v601_v51  ;;  %3806 = vmatpush3.bf16.msra.mxu1 %v5147_v5 }
 0x17f   : > { %4072 = vmatprep.subr.msk.bf16.mxu0 %vm615_vm0, %v5054_v54  ;;  %v638_v56 = vsel %vm615_vm0, %v5054_v54, 0  ;;  %3807 = vmatprep.subr.bf16.mxu1 %v5143_v2 }
 0x180   : > { %3796 = vmatpush3.bf16.xpose.msra.mxu0 %v638_v56 }
 0x182   : > { %3808 = vmatpush3.bf16.msra.mxu1 %v5143_v2 }
 0x187   : > { %3798 = vmatmul.mubr.msk.bf16.vlgmr.msra.gmra.mrb[16].mxu0 %vm615_vm0, %v5040_v37 }
 0x188   : > { %3801 = vmatprep.mubr.msk.bf16.mxu0 %vm615_vm0, %v5048_v46 }
 0x18f   : > { %3802 = vmatmul.mubr.msk.bf16.gmra.mrb[20].mxu0 %vm615_vm0, %v5056_v55 }
 0x25a   : > { %v3799_v9 = vpop.f32.mrb[16].mxu0 }
 0x25b   : > { %v707_v11 = vsel %vm5071_vm1, %v3799_v9, -inf  ;;  %v674_v12 = vpop.f32.mrb[17].mxu0 }
 0x25c   : > { %v705_v14 = vsel %vm5075_vm2, %v674_v12, -inf  ;;  %v3800_v15 = vpop.f32.mrb[18].mxu0  ;;  %v720_v16 = vsel %vm713_vm3, %v707_v11, -inf  ;;  %v3787_v12 = vpop.f32.mrb[4].mxu1 }
 0x25d   : > { %v708_v17 = vsel %vm5079_vm4, %v3800_v15, -inf  ;;  %721 = vmax.xlane.f32.xlu1 %v720_v16  ;;  %v677_v18 = vpop.f32.mrb[19].mxu0  ;;  %v714_v19 = vsel %vm713_vm3, %v705_v14, -inf  ;;  %v561_v16 = vpop.f32.mrb[5].mxu1 }
 0x25e   : > { %v706_v21 = vsel %vm5085_vm5, %v677_v18, -inf  ;;  %715 = vmax.xlane.f32.xlu0 %v714_v19  ;;  %v723_v24 = vsel %vm713_vm3, %v708_v17, -inf  ;;  %v3788_v18 = vpop.f32.mrb[6].mxu1 }
 0x25f   : > { %v717_v26 = vsel %vm713_vm3, %v706_v21, -inf  ;;  %v5164_v19 = vpack.c.bf16 %v3788_v18, %v3787_v12  ;;  %v564_v20 = vpop.f32.mrb[7].mxu1 }
 0x261   : > { %724 = vmax.xlane.f32.xlu1 %v723_v24 }
 0x262   : > { %718 = vmax.xlane.f32.xlu0 %v717_v26  ;;  %v3803_v30 = vpop.f32.mrb[20].mxu0 }
 0x263   : > { %v690_v33 = vpop.f32.mrb[21].mxu0  ;;  %v5127_v42 = vsel %vm5107_vm8, %v3803_v30, -inf }
 0x264   : > { %v5113_v34 = vsel %vm5099_vm6, %v690_v33, -inf  ;;  %v3804_v35 = vpop.f32.mrb[22].mxu0  ;;  %v732_v47 = vsel %vm713_vm3, %v5127_v42, -inf }
 0x265   : > { %v5121_v39 = vsel %vm5103_vm7, %v3804_v35, -inf  ;;  %v693_v40 = vpop.f32.mrb[23].mxu0  ;;  %v726_v41 = vsel %vm713_vm3, %v5113_v34, -inf }
 0x266   : > { %727 = vmax.xlane.f32.xlu0 %v726_v41  ;;  %v735_v43 = vsel %vm713_vm3, %v5121_v39, -inf  ;;  %v5133_v44 = vsel %vm5115_vm9, %v693_v40, -inf }
 0x267   : > { %736 = vmax.xlane.f32.xlu1 %v735_v43  ;;  %v729_v48 = vsel %vm713_vm3, %v5133_v44, -inf }
 0x26a   : > { %733 = vmax.xlane.f32.xlu0 %v732_v47 }
 0x26b   : > { %730 = vmax.xlane.f32.xlu1 %v729_v48 }
 0x27c   : > { %901 = vrot.lane.b32.xlu1 %v5038_v36, %s4788_s21 }
 0x280   : > { %903 = vrot.lane.b32.xlu1 %v5046_v45, %s4788_s21 }
 0x2ea   : > { %v722_v49 = vpop.xlane.xlu1 %721 }
 0x2eb   : > { %v740_v50 = vsub.f32 %v707_v11, %v722_v49  ;;  %v716_v51 = vpop.xlane.xlu0 %715 }
 0x2ec   : > { %v738_v52 = vsub.f32 %v705_v14, %v716_v51 }
 0x2ed   : > { %v750_v53 = vmul.f32 1.442695, %v740_v50 }
 0x2ee   : > { %v746_v56 = vmul.f32 1.442695, %v738_v52  ;;  %v725_v57 = vpop.xlane.xlu1 %724 }
 0x2ef   : > { %4366 = vpow2.f32 %v750_v53  ;;  %v741_v58 = vsub.f32 %v708_v17, %v725_v57  ;;  %v719_v59 = vpop.xlane.xlu0 %718 }
 0x2f0   : > { %v739_v60 = vsub.f32 %v706_v21, %v719_v59  ;;  %4368 = vpow2.f32 %v746_v56  ;;  %v5167_v21 = vpack.c.bf16 %v564_v20, %v561_v16 }
 0x2f1   : > { %v752_v61 = vmul.f32 1.442695, %v741_v58 }
 0x2f2   : > { %v748_v62 = vmul.f32 1.442695, %v739_v60  ;;  %3809 = vmatprep.subr.bf16.mxu1 %v5167_v21 }
 0x2f3   : > { %4370 = vpow2.f32 %v752_v61  ;;  %3810 = vmatpush3.bf16.msra.mxu1 %v5167_v21  ;;  %v728_v23 = vpop.xlane.xlu0 %727 }
 0x2f4   : > { %4372 = vpow2.f32 %v748_v62  ;;  %3811 = vmatprep.subr.bf16.mxu1 %v5164_v19  ;;  %v737_v25 = vpop.xlane.xlu1 %736  ;;  %v742_v30 = vsub.f32 %v5113_v34, %v728_v23 }
 0x2f5   : > { %v745_v33 = vsub.f32 %v5121_v39, %v737_v25 }
 0x2f6   : > { %v754_v41 = vmul.f32 1.442695, %v742_v30 }
 0x2f7   : > { %3812 = vmatpush3.bf16.msra.mxu1 %v5164_v19  ;;  %v734_v24 = vpop.xlane.xlu0 %733  ;;  %v760_v43 = vmul.f32 1.442695, %v745_v33 }
 0x2f8   : > { %v744_v26 = vsub.f32 %v5127_v42, %v734_v24  ;;  %v731_v40 = vpop.xlane.xlu1 %730 }
 0x2f9   : > { %v5145_v4 = vpop.eup %4366  ;;  %v743_v47 = vsub.f32 %v5133_v44, %v731_v40 }
 0x2fa   : > { %v768_v6 = vsel %vm713_vm3, %v5145_v4, 0.0  ;;  %v5151_v9 = vpop.eup %4368  ;;  %v758_v35 = vmul.f32 1.442695, %v744_v26 }
 0x2fb   : > { %769 = vadd.xlane.f32.xlu0 %v768_v6  ;;  %v762_v14 = vsel %vm713_vm3, %v5151_v9, 0.0  ;;  %v756_v48 = vmul.f32 1.442695, %v743_v47 }
 0x2fc   : > { %4374 = vpow2.f32 %v758_v35  ;;  %v902_v53 = vpop.permute.xlu1 %901 }
 0x2fd   : > { %v5155_v11 = vpop.eup %4370  ;;  %4376 = vpow2.f32 %v754_v41  ;;  %v923_v23 = vsel %vm615_vm0, %v902_v53, 0 }
 0x2fe   : > { %v771_v15 = vsel %vm713_vm3, %v5155_v11, 0.0  ;;  %v5162_v17 = vpop.eup %4372  ;;  %4378 = vpow2.f32 %v760_v43 }
 0x2ff   : > { %763 = vadd.xlane.f32.xlu0 %v762_v14  ;;  %772 = vadd.xlane.f32.xlu1 %v771_v15  ;;  %v765_v22 = vsel %vm713_vm3, %v5162_v17, 0.0  ;;  %4380 = vpow2.f32 %v756_v48 }
 0x300   : > { %v904_v56 = vpop.permute.xlu1 %903 }
 0x303   : > { %766 = vadd.xlane.f32.xlu1 %v765_v22 }
 0x306   : > { %v5183_v49 = vpop.eup %4374 }
 0x307   : > { %v5185_v50 = vpop.eup %4376  ;;  %v780_v34 = vsel %vm713_vm3, %v5183_v49, 0.0 }
 0x308   : > { %v5189_v42 = vpop.eup %4378  ;;  %v774_v39 = vsel %vm713_vm3, %v5185_v50, 0.0 }
 0x309   : > { %v783_v44 = vsel %vm713_vm3, %v5189_v42, 0.0  ;;  %v5195_v51 = vpop.eup %4380 }
 0x30a   : > { %v777_v52 = vsel %vm713_vm3, %v5195_v51, 0.0 }
 0x314   : > { %1197 = vrot.lane.b32.xlu1 %v5028_v27, %s4789_s23 }
 0x315   : > { %899 = vrot.lane.b32.xlu0 %v5028_v27, %s4788_s21 }
 0x334   : > { %781 = vadd.xlane.f32.xlu0 %v780_v34 }
 0x338   : > { %775 = vadd.xlane.f32.xlu0 %v774_v39  ;;  %784 = vadd.xlane.f32.xlu1 %v783_v44 }
 0x33c   : > { %778 = vadd.xlane.f32.xlu1 %v777_v52 }
 0x34d   : > { %1199 = vrot.lane.b32.xlu1 %v5038_v36, %s4789_s23 }
 0x34e   : > { %905 = vrot.lane.b32.xlu0 %v5054_v54, %s4788_s21 }
 0x351   : > { %889 = vrot.lane.b32.xlu1 %v5040_v37, %s4788_s21 }
 0x352   : > { %887 = vrot.lane.b32.xlu0 %v5030_v28, %s4788_s21 }
 0x355   : > { %891 = vrot.lane.b32.xlu1 %v5048_v46, %s4788_s21 }
 0x356   : > { %1201 = vrot.lane.b32.xlu0 %v5046_v45, %s4789_s23 }
 0x359   : > { %1203 = vrot.lane.b32.xlu1 %v5054_v54, %s4789_s23 }
 0x35a   : > { %893 = vrot.lane.b32.xlu0 %v5056_v55, %s4788_s21 }
 0x35d   : > { %1191 = vrot.lane.b32.xlu1 %v5040_v37, %s4789_s23 }
 0x35e   : > { %1189 = vrot.lane.b32.xlu0 %v5030_v28, %s4789_s23 }
 0x361   : > { %1195 = vrot.lane.b32.xlu1 %v5056_v55, %s4789_s23 }
 0x362   : > { %1193 = vrot.lane.b32.xlu0 %v5048_v46, %s4789_s23 }
 0x388   : > { %v770_v57 = vpop.xlane.xlu0 %769 }
 0x38c   : > { %v764_v58 = vpop.xlane.xlu0 %763  ;;  %v773_v59 = vpop.xlane.xlu1 %772 }
 0x38d   : > { %4382 = vrcp.f32 %v773_v59 }
 0x38e   : > { %4384 = vrcp.f32 %v764_v58 }
 0x38f   : > { %4386 = vrcp.f32 %v770_v57 }
 0x390   : > { %v900_v60 = vpop.permute.xlu0 %899  ;;  %v767_v61 = vpop.xlane.xlu1 %766 }
 0x391   : > { %4388 = vrcp.f32 %v767_v61  ;;  %4073 = vmatprep.subr.msk.bf16.mxu1 %vm615_vm0, %v900_v60  ;;  %v920_v22 = vsel %vm615_vm0, %v900_v60, 0 }
 0x394   : > { %v1198_v62 = vpop.permute.xlu1 %1197 }
 0x395   : > { %4077 = vmatprep.subr.msk.bf16.mxu0 %vm615_vm0, %v1198_v62  ;;  %v1218_v63 = vsel %vm615_vm0, %v1198_v62, 0 }
 0x396   : > { %3854 = vmatpush3.bf16.xpose.msra.mxu0 %v1218_v63 }
 0x397   : > { %v4383_v0 = vpop.eup %4382 }
 0x398   : > { %v4385_v1 = vpop.eup %4384  ;;  %v797_v12 = vmul.f32 %v4383_v0, %v5155_v11 }
 0x399   : > { %v4387_v3 = vpop.eup %4386  ;;  %v794_v14 = vmul.f32 %v4385_v1, %v5151_v9  ;;  %v926_v9 = vsel %vm615_vm0, %v904_v56, 0 }
 0x39a   : > { %v796_v16 = vmul.f32 %v4387_v3, %v5145_v4 }
 0x39b   : > { %v4389_v6 = vpop.eup %4388 }
 0x39c   : > { %v795_v15 = vmul.f32 %v4389_v6, %v5162_v17  ;;  %v803_v20 = vpack.c.bf16 %v797_v12, %v796_v16 }
 0x39e   : > { %v802_v18 = vpack.c.bf16 %v795_v15, %v794_v14 }
 0x3a0   : > { %3813 = vmatprep.mubr.msk.bf16.mxu1 %vm713_vm3, %v802_v18 }
 0x3a1   : > { %3814 = vmatmul.mubr.msk.bf16.vlgmr.msra.gmra.mrb[8].mxu1 %vm713_vm3, %v803_v20 }
 0x3a2   : > { %3822 = vmatpush3.bf16.xpose.msra.mxu1 %v920_v22 }
 0x3a3   : > { %4074 = vmatprep.subr.msk.bf16.mxu1 %vm615_vm0, %v902_v53 }
 0x3aa   : > { %3824 = vmatpush3.bf16.xpose.msra.mxu1 %v923_v23 }
 0x3ab   : > { %4075 = vmatprep.subr.msk.bf16.mxu1 %vm615_vm0, %v904_v56 }
 0x3b2   : > { %3826 = vmatpush3.bf16.xpose.msra.mxu1 %v926_v9 }
 0x3c1   : > { %v782_v4 = vpop.xlane.xlu0 %781 }
 0x3c5   : > { %v776_v11 = vpop.xlane.xlu0 %775  ;;  %v785_v17 = vpop.xlane.xlu1 %784 }
 0x3c6   : > { %4390 = vrcp.f32 %v785_v17 }
 0x3c7   : > { %4392 = vrcp.f32 %v776_v11 }
 0x3c8   : > { %4394 = vrcp.f32 %v782_v4 }
 0x3c9   : > { %v906_v24 = vpop.permute.xlu0 %905  ;;  %v779_v25 = vpop.xlane.xlu1 %778 }
 0x3ca   : > { %4396 = vrcp.f32 %v779_v25  ;;  %4076 = vmatprep.subr.msk.bf16.mxu1 %vm615_vm0, %v906_v24  ;;  %v929_v26 = vsel %vm615_vm0, %v906_v24, 0 }
 0x3cb   : > { %3828 = vmatpush3.bf16.xpose.msra.mxu1 %v929_v26 }
 0x3cd   : > { %v888_v30 = vpop.permute.xlu0 %887  ;;  %v1200_v33 = vpop.permute.xlu1 %1199 }
 0x3ce   : > { %4078 = vmatprep.subr.msk.bf16.mxu0 %vm615_vm0, %v1200_v33  ;;  %v1221_v35 = vsel %vm615_vm0, %v1200_v33, 0 }
 0x3cf   : > { %3856 = vmatpush3.bf16.xpose.msra.mxu0 %v1221_v35 }
 0x3d0   : > { %v4391_v40 = vpop.eup %4390 }
 0x3d1   : > { %v1202_v41 = vpop.permute.xlu0 %1201  ;;  %v890_v43 = vpop.permute.xlu1 %889  ;;  %v801_v39 = vmul.f32 %v4391_v40, %v5189_v42 }
 0x3d2   : > { %v4393_v47 = vpop.eup %4392  ;;  %4079 = vmatprep.subr.msk.bf16.mxu0 %vm615_vm0, %v1202_v41  ;;  %v1224_v57 = vsel %vm615_vm0, %v1202_v41, 0 }
 0x3d3   : > { %v4395_v48 = vpop.eup %4394  ;;  %v798_v53 = vmul.f32 %v4393_v47, %v5185_v50 }
 0x3d4   : > { %v4397_v34 = vpop.eup %4396  ;;  %v800_v58 = vmul.f32 %v4395_v48, %v5183_v49 }
 0x3d5   : > { %v894_v44 = vpop.permute.xlu0 %893  ;;  %v892_v52 = vpop.permute.xlu1 %891  ;;  %v799_v56 = vmul.f32 %v4397_v34, %v5195_v51 }
 0x3d6   : > { %v805_v60 = vpack.c.bf16 %v801_v39, %v800_v58 }
 0x3d7   : > { %3858 = vmatpush3.bf16.xpose.msra.mxu0 %v1224_v57  ;;  %v804_v59 = vpack.c.bf16 %v799_v56, %v798_v53 }
 0x3d9   : > { %v1190_v61 = vpop.permute.xlu0 %1189  ;;  %3817 = vmatprep.mubr.msk.bf16.mxu1 %vm713_vm3, %v804_v59  ;;  %v1204_v62 = vpop.permute.xlu1 %1203 }
 0x3da   : > { %3818 = vmatmul.mubr.msk.bf16.gmra.mrb[12].mxu1 %vm713_vm3, %v805_v60  ;;  %4080 = vmatprep.subr.msk.bf16.mxu0 %vm615_vm0, %v1204_v62  ;;  %v1227_v50 = vsel %vm615_vm0, %v1204_v62, 0 }
 0x3db   : > { %3861 = vmatprep.mubr.msk.bf16.mxu0 %vm615_vm0, %v1190_v61  ;;  %3829 = vmatprep.mubr.msk.bf16.mxu1 %vm615_vm0, %v888_v30 }
 0x3dd   : > { %v1192_v49 = vpop.permute.xlu1 %1191  ;;  %v1194_v42 = vpop.permute.xlu0 %1193 }
 0x3df   : > { %3860 = vmatpush3.bf16.xpose.msra.mxu0 %v1227_v50 }
 0x3e1   : > { %v1196_v51 = vpop.permute.xlu1 %1195 }
 0x3e2   : > { %3830 = vmatmul.mubr.msk.bf16.vlgmr.msra.gmra.mrb[16].mxu1 %vm615_vm0, %v890_v43 }
 0x3e3   : > { %3833 = vmatprep.mubr.msk.bf16.mxu1 %vm615_vm0, %v892_v52 }
 0x3e6   : > { %3862 = vmatmul.mubr.msk.bf16.vlgmr.msra.gmra.mrb[24].mxu0 %vm615_vm0, %v1192_v49 }
 0x3e7   : > { %3865 = vmatprep.mubr.msk.bf16.mxu0 %vm615_vm0, %v1194_v42 }
 0x3ea   : > { %3834 = vmatmul.mubr.msk.bf16.gmra.mrb[20].mxu1 %vm615_vm0, %v894_v44 }
 0x3ee   : > { %3866 = vmatmul.mubr.msk.bf16.gmra.mrb[28].mxu0 %vm615_vm0, %v1196_v51 }
 0x474   : > { %v5259_v63 = vpop.f32.mrb[8].mxu1 }
 0x475   : > { %6455 = vst [vmem:[#allocation12_spill] sm:$0xff] %v5259_v63  ;;  %v5261_v0 = vpop.f32.mrb[9].mxu1 }
 0x476   : > { %6456 = vst [vmem:[#allocation13_spill] sm:$0xff] %v5261_v0  ;;  %v5263_v1 = vpop.f32.mrb[10].mxu1 }
 0x477   : > { %6457 = vst [vmem:[#allocation14_spill] sm:$0xff] %v5263_v1  ;;  %v5265_v3 = vpop.f32.mrb[11].mxu1 }
 0x478   : > { %6458 = vst [vmem:[#allocation15_spill] sm:$0xff] %v5265_v3 }
 0x4ad   : > { %v5267_v6 = vpop.f32.mrb[12].mxu1 }
 0x4ae   : > { %6459 = vst [vmem:[#allocation16_spill] sm:$0xff] %v5267_v6  ;;  %v5269_v12 = vpop.f32.mrb[13].mxu1 }
 0x4af   : > { %6460 = vst [vmem:[#allocation17_spill] sm:$0xff] %v5269_v12  ;;  %v5271_v14 = vpop.f32.mrb[14].mxu1 }
 0x4b0   : > { %6461 = vst [vmem:[#allocation18_spill] sm:$0xff] %v5271_v14  ;;  %v5273_v15 = vpop.f32.mrb[15].mxu1 }
 0x4b1   : > { %6462 = vst [vmem:[#allocation19_spill] sm:$0xff] %v5273_v15 }
 0x4b5   : > { %v3831_v16 = vpop.f32.mrb[16].mxu1 }
 0x4b6   : > { %v965_v18 = vpop.f32.mrb[17].mxu1  ;;  %v998_v50 = vsel %vm5071_vm1, %v3831_v16, -inf }
 0x4b7   : > { %v3832_v20 = vpop.f32.mrb[18].mxu1  ;;  %v1010_v42 = vsel %vm713_vm3, %v998_v50, -inf  ;;  %v5328_v51 = vsel %vm5075_vm2, %v965_v18, -inf }
 0x4b8   : > { %v968_v22 = vpop.f32.mrb[19].mxu1  ;;  %v5336_v16 = vsel %vm5079_vm4, %v3832_v20, -inf }
 0x4b9   : > { %v3863_v23 = vpop.f32.mrb[24].mxu0  ;;  %v5323_v49 = vsel %vm5085_vm5, %v968_v22, -inf  ;;  %v1013_v22 = vsel %vm713_vm3, %v5336_v16, -inf }
 0x4ba   : > { %v1263_v9 = vpop.f32.mrb[25].mxu0  ;;  %v1296_v25 = vsel %vm5071_vm1, %v3863_v23, -inf  ;;  %v1007_v23 = vsel %vm713_vm3, %v5323_v49, -inf }
 0x4bb   : > { %v1294_v4 = vsel %vm5075_vm2, %v1263_v9, -inf  ;;  %v3864_v11 = vpop.f32.mrb[26].mxu0  ;;  %v1308_v47 = vsel %vm713_vm3, %v1296_v25, -inf  ;;  %v1004_v9 = vsel %vm713_vm3, %v5328_v51, -inf }
 0x4bc   : > { %v1266_v17 = vpop.f32.mrb[27].mxu0  ;;  %v1302_v24 = vsel %vm713_vm3, %v1294_v4, -inf  ;;  %v1297_v40 = vsel %vm5079_vm4, %v3864_v11, -inf }
 0x4bd   : > { %v1295_v26 = vsel %vm5085_vm5, %v1266_v17, -inf  ;;  %v3835_v30 = vpop.f32.mrb[20].mxu1  ;;  %1303 = vmax.xlane.f32.xlu0 %v1302_v24  ;;  %v1311_v39 = vsel %vm713_vm3, %v1297_v40, -inf }
 0x4be   : > { %v981_v33 = vpop.f32.mrb[21].mxu1  ;;  %v1305_v35 = vsel %vm713_vm3, %v1295_v26, -inf  ;;  %v5342_v18 = vsel %vm5107_vm8, %v3835_v30, -inf }
 0x4bf   : > { %v5285_v41 = vpop.f32.mrb[22].mxu1  ;;  %1306 = vmax.xlane.f32.xlu1 %v1305_v35  ;;  %v1022_v11 = vsel %vm713_vm3, %v5342_v18, -inf  ;;  %v5348_v17 = vsel %vm5099_vm6, %v981_v33, -inf }
 0x4c0   : > { %v5287_v43 = vpop.f32.mrb[23].mxu1  ;;  %v1016_v20 = vsel %vm713_vm3, %v5348_v17, -inf }
 0x4c1   : > { %1309 = vmax.xlane.f32.xlu0 %v1308_v47  ;;  %v3867_v48 = vpop.f32.mrb[28].mxu0 }
 0x4c2   : > { %v1279_v34 = vpop.f32.mrb[29].mxu0  ;;  %v5299_v57 = vsel %vm5107_vm8, %v3867_v48, -inf }
 0x4c3   : > { %v5293_v44 = vsel %vm5099_vm6, %v1279_v34, -inf  ;;  %1312 = vmax.xlane.f32.xlu1 %v1311_v39  ;;  %v3868_v52 = vpop.f32.mrb[30].mxu0  ;;  %v1320_v61 = vsel %vm713_vm3, %v5299_v57, -inf }
 0x4c4   : > { %v1282_v53 = vpop.f32.mrb[31].mxu0  ;;  %v1314_v56 = vsel %vm713_vm3, %v5293_v44, -inf  ;;  %v5309_v60 = vsel %vm5103_vm7, %v3868_v52, -inf }
 0x4c5   : > { %v5303_v58 = vsel %vm5115_vm9, %v1282_v53, -inf  ;;  %1315 = vmax.xlane.f32.xlu0 %v1314_v56  ;;  %v1323_v62 = vsel %vm713_vm3, %v5309_v60, -inf }
 0x4c6   : > { %v1317_v59 = vsel %vm713_vm3, %v5303_v58, -inf }
 0x4c7   : > { %1318 = vmax.xlane.f32.xlu1 %v1317_v59 }
 0x4c9   : > { %1321 = vmax.xlane.f32.xlu0 %v1320_v61 }
 0x4cb   : > { %1324 = vmax.xlane.f32.xlu1 %v1323_v62 }
 0x4dc   : > { %1102 = vrot.lane.b32.xlu1 %v5143_v2, %s4788_s21 }
 0x4df   : > { %1100 = vrot.lane.b32.xlu0 %v5147_v5, %s4788_s21 }
 0x4fe   : > { %1011 = vmax.xlane.f32.xlu0 %v1010_v42 }
 0x500   : > { %1008 = vmax.xlane.f32.xlu1 %v1007_v23 }
 0x502   : > { %1005 = vmax.xlane.f32.xlu0 %v1004_v9 }
 0x506   : > { %1014 = vmax.xlane.f32.xlu0 %v1013_v22 }
 0x50a   : > { %1023 = vmax.xlane.f32.xlu0 %v1022_v11 }
 0x50e   : > { %1017 = vmax.xlane.f32.xlu0 %v1016_v20 }
 0x524   : > { %1104 = vrot.lane.b32.xlu0 %v5167_v21, %s4788_s21 }
 0x54a   : > { %v1304_v24 = vpop.xlane.xlu0 %1303 }
 0x54b   : > { %v1326_v35 = vsub.f32 %v1294_v4, %v1304_v24 }
 0x54c   : > { %v1307_v30 = vpop.xlane.xlu1 %1306 }
 0x54d   : > { %v1334_v47 = vmul.f32 1.442695, %v1326_v35  ;;  %v1327_v48 = vsub.f32 %v1295_v26, %v1307_v30 }
 0x54e   : > { %v1310_v34 = vpop.xlane.xlu0 %1309 }
 0x54f   : > { %4398 = vpow2.f32 %v1334_v47  ;;  %v1336_v39 = vmul.f32 1.442695, %v1327_v48  ;;  %v1328_v52 = vsub.f32 %v1296_v25, %v1310_v34  ;;  %v5383_v47 = vsel %vm5103_vm7, %v5285_v41, -inf }
 0x550   : > { %v1313_v53 = vpop.xlane.xlu1 %1312 }
 0x551   : > { %4400 = vpow2.f32 %v1336_v39  ;;  %v1338_v33 = vmul.f32 1.442695, %v1328_v52  ;;  %v1329_v56 = vsub.f32 %v1297_v40, %v1313_v53  ;;  %v1025_v52 = vsel %vm713_vm3, %v5383_v47, -inf }
 0x552   : > { %v5354_v59 = vpop.xlane.xlu0 %1315  ;;  %v5390_v53 = vsel %vm5115_vm9, %v5287_v43, -inf }
 0x553   : > { %4402 = vpow2.f32 %v1338_v33  ;;  %v1340_v61 = vmul.f32 1.442695, %v1329_v56  ;;  %v1019_v41 = vsel %vm713_vm3, %v5390_v53, -inf }
 0x554   : > { %v5356_v62 = vpop.xlane.xlu1 %1318 }
 0x555   : > { %4404 = vpow2.f32 %v1340_v61 }
 0x556   : > { %v5358_v42 = vpop.xlane.xlu0 %1321 }
 0x558   : > { %v5360_v4 = vpop.xlane.xlu1 %1324 }
 0x559   : > { %v5362_v26 = vpop.eup %4398 }
 0x55a   : > { %v1101_v23 = vpop.permute.xlu0 %1100  ;;  %v1350_v25 = vsel %vm713_vm3, %v5362_v26, 0.0 }
 0x55b   : > { %v5366_v9 = vpop.eup %4400  ;;  %3837 = vmatprep.subr.bf16.mxu1 %v1101_v23  ;;  %1351 = vadd.xlane.f32.xlu1 %v1350_v25 }
 0x55c   : > { %3838 = vmatpush3.bf16.msra.mxu1 %v1101_v23  ;;  %v1103_v40 = vpop.permute.xlu1 %1102  ;;  %v1353_v22 = vsel %vm713_vm3, %v5366_v9, 0.0 }
 0x55d   : > { %v5370_v11 = vpop.eup %4402  ;;  %1354 = vadd.xlane.f32.xlu0 %v1353_v22  ;;  %3839 = vmatprep.subr.bf16.mxu1 %v1103_v40 }
 0x55e   : > { %v1356_v20 = vsel %vm713_vm3, %v5370_v11, 0.0 }
 0x55f   : > { %v5374_v24 = vpop.eup %4404 }
 0x560   : > { %3840 = vmatpush3.bf16.msra.mxu1 %v1103_v40  ;;  %v1359_v35 = vsel %vm713_vm3, %v5374_v24, 0.0 }
 0x561   : > { %1357 = vadd.xlane.f32.xlu0 %v1356_v20 }
 0x565   : > { %1360 = vadd.xlane.f32.xlu0 %v1359_v35 }
 0x56c   : > { %1106 = vrot.lane.b32.xlu1 %v5164_v19, %s4788_s21 }
 0x58b   : > { %v1012_v30 = vpop.xlane.xlu0 %1011 }
 0x58c   : > { %v1030_v48 = vsub.f32 %v998_v50, %v1012_v30 }
 0x58d   : > { %v1009_v35 = vpop.xlane.xlu1 %1008 }
 0x58e   : > { %v1040_v34 = vmul.f32 1.442695, %v1030_v48  ;;  %v1029_v30 = vsub.f32 %v5323_v49, %v1009_v35 }
 0x58f   : > { %v1006_v39 = vpop.xlane.xlu0 %1005 }
 0x590   : > { %4406 = vpow2.f32 %v1040_v34  ;;  %v1028_v33 = vsub.f32 %v5328_v51, %v1006_v39  ;;  %1026 = vmax.xlane.f32.xlu1 %v1025_v52  ;;  %v1038_v39 = vmul.f32 1.442695, %v1029_v30 }
 0x592   : > { %v1036_v56 = vmul.f32 1.442695, %v1028_v33 }
 0x593   : > { %v1015_v61 = vpop.xlane.xlu0 %1014 }
 0x594   : > { %4408 = vpow2.f32 %v1036_v56  ;;  %1020 = vmax.xlane.f32.xlu1 %v1019_v41  ;;  %v1031_v20 = vsub.f32 %v5336_v16, %v1015_v61  ;;  %v1330_v56 = vsub.f32 %v5293_v44, %v5354_v59  ;;  %v1332_v16 = vsub.f32 %v5299_v57, %v5358_v42 }
 0x595   : > { %v1333_v61 = vsub.f32 %v5309_v60, %v5360_v4 }
 0x596   : > { %v1042_v48 = vmul.f32 1.442695, %v1031_v20 }
 0x597   : > { %v1024_v50 = vpop.xlane.xlu0 %1023  ;;  %v1348_v44 = vmul.f32 1.442695, %v1333_v61 }
 0x598   : > { %v1034_v34 = vsub.f32 %v5342_v18, %v1024_v50  ;;  %4410 = vpow2.f32 %v1042_v48  ;;  %v1346_v18 = vmul.f32 1.442695, %v1332_v16 }
 0x599   : > { %4412 = vpow2.f32 %v1038_v39 }
 0x59a   : > { %v5395_v23 = vpop.eup %4406  ;;  %v1048_v33 = vmul.f32 1.442695, %v1034_v34 }
 0x59b   : > { %v1018_v25 = vpop.xlane.xlu0 %1017  ;;  %v1058_v40 = vsel %vm713_vm3, %v5395_v23, 0.0 }
 0x59c   : > { %1059 = vadd.xlane.f32.xlu0 %v1058_v40  ;;  %v1032_v52 = vsub.f32 %v5348_v17, %v1018_v25  ;;  %4414 = vpow2.f32 %v1048_v33  ;;  %v1342_v40 = vmul.f32 1.442695, %v1330_v56 }
 0x59e   : > { %v5399_v43 = vpop.eup %4408  ;;  %v1044_v41 = vmul.f32 1.442695, %v1032_v52 }
 0x59f   : > { %v1105_v22 = vpop.permute.xlu0 %1104  ;;  %v1052_v51 = vsel %vm713_vm3, %v5399_v43, 0.0 }
 0x5a0   : > { %1053 = vadd.xlane.f32.xlu0 %v1052_v51  ;;  %3841 = vmatprep.subr.bf16.mxu1 %v1105_v22  ;;  %4416 = vpow2.f32 %v1044_v41 }
 0x5a1   : > { %3842 = vmatpush3.bf16.msra.mxu1 %v1105_v22  ;;  %4418 = vpow2.f32 %v1342_v40 }
 0x5a2   : > { %v5417_v49 = vpop.eup %4410  ;;  %4420 = vpow2.f32 %v1346_v18 }
 0x5a3   : > { %v1061_v17 = vsel %vm713_vm3, %v5417_v49, 0.0  ;;  %v5423_v50 = vpop.eup %4412  ;;  %4422 = vpow2.f32 %v1348_v44 }
 0x5a4   : > { %v1055_v57 = vsel %vm713_vm3, %v5423_v50, 0.0 }
 0x5a5   : > { %1396 = vrot.lane.b32.xlu1 %v5143_v2, %s4789_s23 }
 0x5a6   : > { %v5425_v59 = vpop.eup %4414 }
 0x5a7   : > { %v1070_v4 = vsel %vm713_vm3, %v5425_v59, 0.0 }
 0x5a9   : > { %1398 = vrot.lane.b32.xlu1 %v5167_v21, %s4789_s23 }
 0x5aa   : > { %v5429_v42 = vpop.eup %4416 }
 0x5ab   : > { %v1064_v60 = vsel %vm713_vm3, %v5429_v42, 0.0  ;;  %v5435_v25 = vpop.eup %4418 }
 0x5ac   : > { %v1362_v22 = vsel %vm713_vm3, %v5435_v25, 0.0  ;;  %v5439_v51 = vpop.eup %4420 }
 0x5ad   : > { %v1368_v20 = vsel %vm713_vm3, %v5439_v51, 0.0  ;;  %v5443_v35 = vpop.eup %4422 }
 0x5ae   : > { %v1371_v30 = vsel %vm713_vm3, %v5443_v35, 0.0 }
 0x5b6   : > { %1394 = vrot.lane.b32.xlu0 %v5147_v5, %s4789_s23 }
 0x5cd   : > { %1062 = vadd.xlane.f32.xlu1 %v1061_v17 }
 0x5d1   : > { %1056 = vadd.xlane.f32.xlu1 %v1055_v57 }
 0x5d5   : > { %1065 = vadd.xlane.f32.xlu0 %v1064_v60  ;;  %1071 = vadd.xlane.f32.xlu1 %v1070_v4 }
 0x5d9   : > { %1363 = vadd.xlane.f32.xlu0 %v1362_v22 }
 0x5dd   : > { %1369 = vadd.xlane.f32.xlu0 %v1368_v20  ;;  %v1331_v20 = vsub.f32 %v5303_v58, %v5356_v62 }
 0x5e1   : > { %1372 = vadd.xlane.f32.xlu0 %v1371_v30  ;;  %v1344_v30 = vmul.f32 1.442695, %v1331_v20 }
 0x5e8   : > { %v5447_v48 = vpop.xlane.xlu1 %1351 }
 0x5ea   : > { %v5455_v39 = vpop.xlane.xlu0 %1354 }
 0x5ec   : > { %v1107_v34 = vpop.permute.xlu1 %1106 }
 0x5ed   : > { %3843 = vmatprep.subr.bf16.mxu1 %v1107_v34 }
 0x5ee   : > { %3844 = vmatpush3.bf16.msra.mxu1 %v1107_v34  ;;  %v5458_v56 = vpop.xlane.xlu0 %1357 }
 0x5f2   : > { %v5461_v61 = vpop.xlane.xlu0 %1360 }
 0x5f7   : > { %1491 = vrot.lane.b32.xlu0 %v5028_v27, %s4790_s7 }
 0x5fb   : > { %1483 = vrot.lane.b32.xlu0 %v5030_v28, %s4790_s7 }
 0x5ff   : > { %1487 = vrot.lane.b32.xlu0 %v5048_v46, %s4790_s7 }
 0x61d   : > { %v1027_v52 = vpop.xlane.xlu1 %1026 }
 0x61e   : > { %v1035_v33 = vsub.f32 %v5383_v47, %v1027_v52 }
 0x620   : > { %v1050_v41 = vmul.f32 1.442695, %v1035_v33 }
 0x621   : > { %v1021_v40 = vpop.xlane.xlu1 %1020 }
 0x622   : > { %4424 = vpow2.f32 %v1050_v41  ;;  %v1033_v16 = vsub.f32 %v5390_v53, %v1021_v40 }
 0x624   : > { %v1046_v18 = vmul.f32 1.442695, %v1033_v16 }
 0x625   : > { %v1397_v53 = vpop.permute.xlu1 %1396 }
 0x626   : > { %4426 = vpow2.f32 %v1046_v18 }
 0x627   : > { %4428 = vpow2.f32 %v1344_v30 }
 0x629   : > { %v1060_v17 = vpop.xlane.xlu0 %1059  ;;  %v1399_v34 = vpop.permute.xlu1 %1398 }
 0x62c   : > { %v5463_v44 = vpop.eup %4424 }
 0x62d   : > { %v1054_v57 = vpop.xlane.xlu0 %1053  ;;  %v1073_v60 = vsel %vm713_vm3, %v5463_v44, 0.0 }
 0x62e   : > { %1074 = vadd.xlane.f32.xlu1 %v1073_v60 }
 0x630   : > { %v5467_v47 = vpop.eup %4426 }
 0x631   : > { %v1395_v4 = vpop.permute.xlu0 %1394  ;;  %v1067_v22 = vsel %vm713_vm3, %v5467_v47, 0.0  ;;  %v5475_v41 = vpop.eup %4428 }
 0x632   : > { %3869 = vmatprep.subr.bf16.mxu1 %v1395_v4  ;;  %1068 = vadd.xlane.f32.xlu1 %v1067_v22  ;;  %v1365_v16 = vsel %vm713_vm3, %v5475_v41, 0.0 }
 0x643   : > { %1400 = vrot.lane.b32.xlu1 %v5164_v19, %s4789_s23 }
 0x65a   : > { %v1063_v52 = vpop.xlane.xlu1 %1062 }
 0x65b   : > { %4430 = vrcp.f32 %v1063_v52 }
 0x65c   : > { %4432 = vrcp.f32 %v1054_v57 }
 0x65d   : > { %4434 = vrcp.f32 %v1060_v17 }
 0x65e   : > { %v1057_v33 = vpop.xlane.xlu1 %1056 }
 0x65f   : > { %4436 = vrcp.f32 %v1057_v33 }
 0x660   : > { %4438 = vrcp.f32 %v5447_v48 }
 0x661   : > { %4440 = vrcp.f32 %v5455_v39 }
 0x665   : > { %v4431_v40 = vpop.eup %4430 }
 0x666   : > { %v4433_v18 = vpop.eup %4432  ;;  %v1087_v58 = vmul.f32 %v4431_v40, %v5417_v49  ;;  %v1072_v49 = vpop.xlane.xlu1 %1071 }
 0x667   : > { %1366 = vadd.xlane.f32.xlu1 %v1365_v16  ;;  %v4435_v60 = vpop.eup %4434  ;;  %v1084_v62 = vmul.f32 %v4433_v18, %v5399_v43 }
 0x668   : > { %v1086_v17 = vmul.f32 %v4435_v60, %v5395_v23  ;;  %v1066_v23 = vpop.xlane.xlu0 %1065 }
 0x669   : > { %v4437_v22 = vpop.eup %4436 }
 0x66a   : > { %v1085_v20 = vmul.f32 %v4437_v22, %v5423_v50  ;;  %v1093_v30 = vpack.c.bf16 %v1087_v58, %v1086_v17  ;;  %v4439_v33 = vpop.eup %4438 }
 0x66b   : > { %v4441_v16 = vpop.eup %4440 }
 0x66c   : > { %v1092_v57 = vpack.c.bf16 %v1085_v20, %v1084_v62  ;;  %v1364_v43 = vpop.xlane.xlu0 %1363  ;;  %v1383_v20 = vmul.f32 %v4441_v16, %v5366_v9 }
 0x66e   : > { %3845 = vmatprep.mubr.msk.bf16.mxu1 %vm713_vm3, %v1092_v57  ;;  %v1382_v57 = vmul.f32 %v4439_v33, %v5362_v26 }
 0x66f   : > { %3846 = vmatmul.mubr.msk.bf16.vlgmr.msra.gmra.mrb[24].mxu1 %vm713_vm3, %v1093_v30 }
 0x670   : > { %3870 = vmatpush3.bf16.msra.mxu1 %v1395_v4  ;;  %v1370_v50 = vpop.xlane.xlu0 %1369 }
 0x671   : > { %3871 = vmatprep.subr.bf16.mxu1 %v1397_v53 }
 0x674   : > { %3872 = vmatpush3.bf16.msra.mxu1 %v1397_v53  ;;  %v1373_v53 = vpop.xlane.xlu0 %1372 }
 0x675   : > { %3873 = vmatprep.subr.bf16.mxu1 %v1399_v34 }
 0x678   : > { %3874 = vmatpush3.bf16.msra.mxu1 %v1399_v34  ;;  %1493 = vrot.lane.b32.xlu1 %v5038_v36, %s4790_s7  ;;  %v1492_v40 = vpop.permute.xlu0 %1491 }
 0x67c   : > { %1495 = vrot.lane.b32.xlu1 %v5046_v45, %s4790_s7 }
 0x680   : > { %1497 = vrot.lane.b32.xlu1 %v5054_v54, %s4790_s7 }
 0x684   : > { %1485 = vrot.lane.b32.xlu1 %v5040_v37, %s4790_s7 }
 0x688   : > { %1489 = vrot.lane.b32.xlu1 %v5056_v55, %s4790_s7 }
 0x6bb   : > { %v1075_v4 = vpop.xlane.xlu1 %1074 }
 0x6bc   : > { %4442 = vrcp.f32 %v1075_v4 }
 0x6bd   : > { %4444 = vrcp.f32 %v1066_v23 }
 0x6be   : > { %4446 = vrcp.f32 %v1072_v49 }
 0x6bf   : > { %v1069_v34 = vpop.xlane.xlu1 %1068 }
 0x6c0   : > { %4448 = vrcp.f32 %v1069_v34 }
 0x6c1   : > { %4450 = vrcp.f32 %v5461_v61 }
 0x6c2   : > { %4452 = vrcp.f32 %v5458_v56  ;;  %v1390_v56 = vpack.c.bf16 %v1383_v20, %v1382_v57 }
 0x6c3   : > { %v1401_v52 = vpop.permute.xlu1 %1400  ;;  %4454 = vrcp.f32 %v1373_v53 }
 0x6c4   : > { %3875 = vmatprep.subr.bf16.mxu1 %v1401_v52  ;;  %4456 = vrcp.f32 %v1364_v43 }
 0x6c5   : > { %3876 = vmatpush3.bf16.msra.mxu1 %v1401_v52  ;;  %4458 = vrcp.f32 %v1370_v50 }
 0x6c6   : > { %4081 = vmatprep.subr.msk.bf16.mxu1 %vm615_vm0, %v1492_v40  ;;  %v4443_v48 = vpop.eup %4442 }
 0x6c7   : > { %v4445_v39 = vpop.eup %4444  ;;  %v1091_v22 = vmul.f32 %v4443_v48, %v5463_v44 }
 0x6c8   : > { %v4447_v18 = vpop.eup %4446  ;;  %v1088_v58 = vmul.f32 %v4445_v39, %v5429_v42 }
 0x6c9   : > { %v1090_v61 = vmul.f32 %v4447_v18, %v5425_v59  ;;  %v1512_v59 = vsel %vm615_vm0, %v1492_v40, 0 }
 0x6ca   : > { %v4449_v60 = vpop.eup %4448 }
 0x6cb   : > { %v1089_v62 = vmul.f32 %v4449_v60, %v5467_v47  ;;  %v1095_v30 = vpack.c.bf16 %v1091_v22, %v1090_v61  ;;  %v4451_v23 = vpop.eup %4450  ;;  %v1484_v60 = vpop.permute.xlu0 %1483 }
 0x6cc   : > { %v4453_v49 = vpop.eup %4452  ;;  %v1385_v42 = vmul.f32 %v4451_v23, %v5374_v24 }
 0x6cd   : > { %v1094_v17 = vpack.c.bf16 %v1089_v62, %v1088_v58  ;;  %v1384_v44 = vmul.f32 %v4453_v49, %v5370_v11  ;;  %v4455_v24 = vpop.eup %4454 }
 0x6ce   : > { %v4457_v11 = vpop.eup %4456  ;;  %v1389_v40 = vmul.f32 %v4455_v24, %v5443_v35 }
 0x6cf   : > { %3849 = vmatprep.mubr.msk.bf16.mxu1 %vm713_vm3, %v1094_v17  ;;  %v1391_v9 = vpack.c.bf16 %v1385_v42, %v1384_v44  ;;  %v4459_v52 = vpop.eup %4458  ;;  %v1386_v43 = vmul.f32 %v4457_v11, %v5435_v25 }
 0x6d0   : > { %3850 = vmatmul.mubr.msk.bf16.gmra.mrb[28].mxu1 %vm713_vm3, %v1095_v30  ;;  %v1388_v16 = vmul.f32 %v4459_v52, %v5439_v51 }
 0x6d1   : > { %3877 = vmatprep.mubr.msk.bf16.mxu1 %vm713_vm3, %v1390_v56 }
 0x6d2   : > { %v1393_v18 = vpack.c.bf16 %v1389_v40, %v1388_v16 }
 0x6d8   : > { %3878 = vmatmul.mubr.msk.bf16.vlgmr.msra.gmra.mrb[32].mxu1 %vm713_vm3, %v1391_v9 }
 0x6d9   : > { %3886 = vmatpush3.bf16.xpose.msra.mxu1 %v1512_v59 }
 0x6f4   : > { %v1367_v26 = vpop.xlane.xlu1 %1366 }
 0x6f5   : > { %4460 = vrcp.f32 %v1367_v26 }
 0x6f8   : > { %v1494_v47 = vpop.permute.xlu1 %1493 }
 0x6f9   : > { %4082 = vmatprep.subr.msk.bf16.mxu1 %vm615_vm0, %v1494_v47  ;;  %v1515_v4 = vsel %vm615_vm0, %v1494_v47, 0 }
 0x6fa   : > { %3888 = vmatpush3.bf16.xpose.msra.mxu1 %v1515_v4 }
 0x6fc   : > { %v1496_v34 = vpop.permute.xlu1 %1495 }
 0x6fd   : > { %4083 = vmatprep.subr.msk.bf16.mxu1 %vm615_vm0, %v1496_v34  ;;  %v1518_v53 = vsel %vm615_vm0, %v1496_v34, 0 }
 0x6ff   : > { %v4461_v33 = vpop.eup %4460 }
 0x700   : > { %v1387_v50 = vmul.f32 %v4461_v33, %v5475_v41  ;;  %v1498_v48 = vpop.permute.xlu1 %1497  ;;  %v1488_v41 = vpop.permute.xlu0 %1487 }
 0x701   : > { %v1521_v25 = vsel %vm615_vm0, %v1498_v48, 0 }
 0x702   : > { %3890 = vmatpush3.bf16.xpose.msra.mxu1 %v1518_v53  ;;  %v1392_v39 = vpack.c.bf16 %v1387_v50, %v1386_v43 }
 0x703   : > { %4084 = vmatprep.subr.msk.bf16.mxu1 %vm615_vm0, %v1498_v48 }
 0x704   : > { %3881 = vmatprep.mubr.msk.bf16.mxu1 %vm713_vm3, %v1392_v39  ;;  %v1486_v35 = vpop.permute.xlu1 %1485 }
 0x705   : > { %3882 = vmatmul.mubr.msk.bf16.gmra.mrb[36].mxu1 %vm713_vm3, %v1393_v18 }
 0x706   : > { %3893 = vmatprep.mubr.msk.bf16.mxu1 %vm615_vm0, %v1484_v60 }
 0x708   : > { %v1490_v51 = vpop.permute.xlu1 %1489 }
 0x70a   : > { %3892 = vmatpush3.bf16.xpose.msra.mxu1 %v1521_v25 }
 0x711   : > { %3894 = vmatmul.mubr.msk.bf16.vlgmr.msra.gmra.mrb[40].mxu1 %vm615_vm0, %v1486_v35 }
 0x712   : > { %3897 = vmatprep.mubr.msk.bf16.mxu1 %vm615_vm0, %v1488_v41 }
 0x719   : > { %3898 = vmatmul.mubr.msk.bf16.gmra.mrb[44].mxu1 %vm615_vm0, %v1490_v51 }
 0x742   : > { %v5529_v22 = vpop.f32.mrb[24].mxu1 }
 0x743   : > { %6463 = vst [vmem:[#allocation20_spill] sm:$0xff] %v5529_v22  ;;  %v5531_v58 = vpop.f32.mrb[25].mxu1 }
 0x744   : > { %v5533_v62 = vpop.f32.mrb[26].mxu1 }
 0x745   : > { %6464 = vst [vmem:[#allocation21_spill] sm:$0xff] %v5533_v62  ;;  %v5537_v61 = vpop.f32.mrb[27].mxu1 }
 0x7a3   : > { %v5541_v57 = vpop.f32.mrb[28].mxu1 }
 0x7a4   : > { %6465 = vst [vmem:[#allocation22_spill] sm:$0xff] %v5541_v57  ;;  %v5543_v30 = vpop.f32.mrb[29].mxu1 }
 0x7a5   : > { %v5545_v23 = vpop.f32.mrb[30].mxu1 }
 0x7a6   : > { %6466 = vst [vmem:[#allocation23_spill] sm:$0xff] %v5545_v23  ;;  %v5549_v49 = vpop.f32.mrb[31].mxu1 }
 0x7ab   : > { %v5553_v44 = vpop.f32.mrb[32].mxu1 }
 0x7ac   : > { %6467 = vst [vmem:[#allocation24_spill] sm:$0xff] %v5553_v44  ;;  %v5555_v9 = vpop.f32.mrb[33].mxu1 }
 0x7ad   : > { %v5557_v59 = vpop.f32.mrb[34].mxu1 }
 0x7ae   : > { %6468 = vst [vmem:[#allocation25_spill] sm:$0xff] %v5557_v59  ;;  %v5561_v47 = vpop.f32.mrb[35].mxu1 }
 0x7d8   : > { %v5565_v24 = vpop.f32.mrb[36].mxu1 }
 0x7d9   : > { %6469 = vst [vmem:[#allocation26_spill] sm:$0xff] %v5565_v24  ;;  %v5567_v34 = vpop.f32.mrb[37].mxu1 }
 0x7da   : > { %v5569_v11 = vpop.f32.mrb[38].mxu1 }
 0x7db   : > { %6470 = vst [vmem:[#allocation27_spill] sm:$0xff] %v5569_v11  ;;  %v5573_v33 = vpop.f32.mrb[39].mxu1 }
 0x7e4   : > { %v3895_v43 = vpop.f32.mrb[40].mxu1 }
 0x7e5   : > { %v1590_v50 = vsel %vm5071_vm1, %v3895_v43, -inf  ;;  %v1557_v53 = vpop.f32.mrb[41].mxu1 }
 0x7e6   : > { %v3896_v16 = vpop.f32.mrb[42].mxu1  ;;  %v1602_v48 = vsel %vm713_vm3, %v1590_v50, -inf  ;;  %v1588_v39 = vsel %vm5075_vm2, %v1557_v53, -inf }
 0x7e7   : > { %1603 = vmax.xlane.f32.xlu0 %v1602_v48  ;;  %v1560_v18 = vpop.f32.mrb[43].mxu1  ;;  %v1596_v35 = vsel %vm713_vm3, %v1588_v39, -inf  ;;  %v1591_v41 = vsel %vm5079_vm4, %v3896_v16, -inf }
 0x7e8   : > { %v1589_v60 = vsel %vm5085_vm5, %v1560_v18, -inf  ;;  %v1605_v56 = vsel %vm713_vm3, %v1591_v41, -inf }
 0x7e9   : > { %v1599_v25 = vsel %vm713_vm3, %v1589_v60, -inf }
 0x7ea   : > { %1600 = vmax.xlane.f32.xlu1 %v1599_v25 }
 0x7eb   : > { %1597 = vmax.xlane.f32.xlu0 %v1596_v35 }
 0x7ec   : > { %v3899_v51 = vpop.f32.mrb[44].mxu1 }
 0x7ed   : > { %v1573_v43 = vpop.f32.mrb[45].mxu1  ;;  %v1594_v53 = vsel %vm5107_vm8, %v3899_v51, -inf }
 0x7ee   : > { %v3900_v52 = vpop.f32.mrb[46].mxu1  ;;  %v1614_v18 = vsel %vm713_vm3, %v1594_v53, -inf  ;;  %v1592_v25 = vsel %vm5099_vm6, %v1573_v43, -inf }
 0x7ef   : > { %1606 = vmax.xlane.f32.xlu0 %v1605_v56  ;;  %v1576_v48 = vpop.f32.mrb[47].mxu1  ;;  %v1608_v26 = vsel %vm713_vm3, %v1592_v25, -inf  ;;  %v5603_v56 = vsel %vm5103_vm7, %v3900_v52, -inf }
 0x7f0   : > { %v1617_v16 = vsel %vm713_vm3, %v5603_v56, -inf  ;;  %v5609_v35 = vsel %vm5115_vm9, %v1576_v48, -inf }
 0x7f3   : > { %1615 = vmax.xlane.f32.xlu0 %v1614_v18 }
 0x7f7   : > { %1609 = vmax.xlane.f32.xlu0 %v1608_v26  ;;  %v1611_v26 = vsel %vm713_vm3, %v5609_v35, -inf }
 0x7fb   : > { %1690 = vrot.lane.b32.xlu1 %v5143_v2, %s4790_s7 }
 0x7ff   : > { %1692 = vrot.lane.b32.xlu1 %v5167_v21, %s4790_s7 }
 0x80d   : > { %1688 = vrot.lane.b32.xlu0 %v5147_v5, %s4790_s7 }
 0x823   : > { %1618 = vmax.xlane.f32.xlu1 %v1617_v16 }
 0x827   : > { %1612 = vmax.xlane.f32.xlu1 %v1611_v26 }
 0x838   : > { %1694 = vrot.lane.b32.xlu1 %v5164_v19, %s4790_s7 }
 0x874   : > { %v1604_v51 = vpop.xlane.xlu0 %1603 }
 0x875   : > { %v1622_v43 = vsub.f32 %v1590_v50, %v1604_v51 }
 0x877   : > { %v1632_v18 = vmul.f32 1.442695, %v1622_v43  ;;  %v1601_v52 = vpop.xlane.xlu1 %1600 }
 0x878   : > { %v1598_v20 = vpop.xlane.xlu0 %1597  ;;  %v1621_v42 = vsub.f32 %v1589_v60, %v1601_v52 }
 0x879   : > { %4462 = vpow2.f32 %v1632_v18  ;;  %v1620_v40 = vsub.f32 %v1588_v39, %v1598_v20 }
 0x87a   : > { %v1630_v16 = vmul.f32 1.442695, %v1621_v42 }
 0x87b   : > { %v1628_v4 = vmul.f32 1.442695, %v1620_v40 }
 0x87c   : > { %v1607_v17 = vpop.xlane.xlu0 %1606 }
 0x87d   : > { %4464 = vpow2.f32 %v1628_v4  ;;  %v1623_v48 = vsub.f32 %v1591_v41, %v1607_v17  ;;  %v1691_v17 = vpop.permute.xlu1 %1690 }
 0x87f   : > { %v1634_v6 = vmul.f32 1.442695, %v1623_v48 }
 0x880   : > { %v1616_v14 = vpop.xlane.xlu0 %1615 }
 0x881   : > { %4466 = vpow2.f32 %v1634_v6  ;;  %v1626_v26 = vsub.f32 %v1594_v53, %v1616_v14 }
 0x882   : > { %4468 = vpow2.f32 %v1630_v16 }
 0x883   : > { %v5615_v63 = vpop.eup %4462  ;;  %v1640_v1 = vmul.f32 1.442695, %v1626_v26 }
 0x884   : > { %v1610_v50 = vpop.xlane.xlu0 %1609  ;;  %v1650_v51 = vsel %vm713_vm3, %v5615_v63, 0.0 }
 0x885   : > { %4470 = vpow2.f32 %v1640_v1  ;;  %v1624_v20 = vsub.f32 %v1592_v25, %v1610_v50  ;;  %1651 = vadd.xlane.f32.xlu0 %v1650_v51  ;;  %v1693_v1 = vpop.permute.xlu1 %1692 }
 0x887   : > { %v5619_v40 = vpop.eup %4464  ;;  %v1636_v4 = vmul.f32 1.442695, %v1624_v20 }
 0x888   : > { %v1689_v42 = vpop.permute.xlu0 %1688  ;;  %v1644_v6 = vsel %vm713_vm3, %v5619_v40, 0.0 }
 0x889   : > { %4472 = vpow2.f32 %v1636_v4  ;;  %1645 = vadd.xlane.f32.xlu0 %v1644_v6  ;;  %3901 = vmatprep.subr.bf16.mxu0 %v1689_v42 }
 0x88a   : > { %3902 = vmatpush3.bf16.msra.mxu0 %v1689_v42 }
 0x88b   : > { %v4467_v14 = vpop.eup %4466  ;;  %3903 = vmatprep.subr.bf16.mxu0 %v1691_v17 }
 0x88c   : > { %v1653_v39 = vsel %vm713_vm3, %v4467_v14, 0.0  ;;  %v4469_v60 = vpop.eup %4468 }
 0x88d   : > { %1654 = vadd.xlane.f32.xlu1 %v1653_v39  ;;  %v1647_v25 = vsel %vm713_vm3, %v4469_v60, 0.0 }
 0x88e   : > { %3904 = vmatpush3.bf16.msra.mxu0 %v1691_v17 }
 0x88f   : > { %v5624_v41 = vpop.eup %4470  ;;  %3905 = vmatprep.subr.bf16.mxu0 %v1693_v1 }
 0x890   : > { %v1662_v53 = vsel %vm713_vm3, %v5624_v41, 0.0 }
 0x891   : > { %1663 = vadd.xlane.f32.xlu0 %v1662_v53  ;;  %1648 = vadd.xlane.f32.xlu1 %v1647_v25 }
 0x892   : > { %3906 = vmatpush3.bf16.msra.mxu0 %v1693_v1 }
 0x893   : > { %v5629_v43 = vpop.eup %4472 }
 0x894   : > { %v1656_v18 = vsel %vm713_vm3, %v5629_v43, 0.0 }
 0x895   : > { %1657 = vadd.xlane.f32.xlu0 %v1656_v18 }
 0x8a2   : > { %1787 = vrot.lane.b32.xlu1 %v5038_v36, %s4791_s8 }
 0x8a6   : > { %1789 = vrot.lane.b32.xlu1 %v5046_v45, %s4791_s8 }
 0x8b0   : > { %v1619_v52 = vpop.xlane.xlu1 %1618 }
 0x8b1   : > { %v1627_v48 = vsub.f32 %v5603_v56, %v1619_v52 }
 0x8b3   : > { %v1642_v16 = vmul.f32 1.442695, %v1627_v48 }
 0x8b4   : > { %v1613_v26 = vpop.xlane.xlu1 %1612 }
 0x8b5   : > { %4474 = vpow2.f32 %v1642_v16  ;;  %v1625_v50 = vsub.f32 %v5609_v35, %v1613_v26 }
 0x8b7   : > { %v1638_v51 = vmul.f32 1.442695, %v1625_v50 }
 0x8b8   : > { %v1695_v20 = vpop.permute.xlu1 %1694 }
 0x8b9   : > { %3907 = vmatprep.subr.bf16.mxu0 %v1695_v20  ;;  %4476 = vpow2.f32 %v1638_v51 }
 0x8ba   : > { %3908 = vmatpush3.bf16.msra.mxu0 %v1695_v20 }
 0x8bf   : > { %v4475_v4 = vpop.eup %4474 }
 0x8c0   : > { %v1665_v17 = vsel %vm713_vm3, %v4475_v4, 0.0 }
 0x8c1   : > { %1666 = vadd.xlane.f32.xlu0 %v1665_v17 }
 0x8c3   : > { %v4477_v42 = vpop.eup %4476 }
 0x8c4   : > { %v1659_v6 = vsel %vm713_vm3, %v4477_v42, 0.0 }
 0x8ca   : > { %1660 = vadd.xlane.f32.xlu1 %v1659_v6 }
 0x8d7   : > { %1785 = vrot.lane.b32.xlu0 %v5028_v27, %s4791_s8 }
 0x8db   : > { %1777 = vrot.lane.b32.xlu0 %v5030_v28, %s4791_s8  ;;  %1791 = vrot.lane.b32.xlu1 %v5054_v54, %s4791_s8 }
 0x8df   : > { %1781 = vrot.lane.b32.xlu0 %v5048_v46, %s4791_s8  ;;  %1779 = vrot.lane.b32.xlu1 %v5040_v37, %s4791_s8 }
 0x8e3   : > { %1783 = vrot.lane.b32.xlu1 %v5056_v55, %s4791_s8 }
 0x912   : > { %v1652_v56 = vpop.xlane.xlu0 %1651 }
 0x916   : > { %v1646_v39 = vpop.xlane.xlu0 %1645 }
 0x91a   : > { %v1655_v35 = vpop.xlane.xlu1 %1654 }
 0x91b   : > { %4478 = vrcp.f32 %v1655_v35 }
 0x91c   : > { %4480 = vrcp.f32 %v1646_v39 }
 0x91d   : > { %4482 = vrcp.f32 %v1652_v56 }
 0x91e   : > { %v1649_v1 = vpop.xlane.xlu1 %1648  ;;  %v1664_v17 = vpop.xlane.xlu0 %1663 }
 0x91f   : > { %4484 = vrcp.f32 %v1649_v1 }
 0x922   : > { %v1658_v6 = vpop.xlane.xlu0 %1657  ;;  %v1788_v56 = vpop.permute.xlu1 %1787 }
 0x925   : > { %v4479_v53 = vpop.eup %4478 }
 0x926   : > { %v4481_v25 = vpop.eup %4480  ;;  %v1679_v48 = vmul.f32 %v4479_v53, %v4467_v14  ;;  %v1790_v1 = vpop.permute.xlu1 %1789 }
 0x927   : > { %v4483_v18 = vpop.eup %4482  ;;  %v1676_v16 = vmul.f32 %v4481_v25, %v5619_v40  ;;  %v1809_v40 = vsel %vm615_vm0, %v1788_v56, 0 }
 0x928   : > { %v1678_v50 = vmul.f32 %v4483_v18, %v5615_v63 }
 0x929   : > { %v4485_v52 = vpop.eup %4484 }
 0x92a   : > { %v1677_v26 = vmul.f32 %v4485_v52, %v4469_v60  ;;  %v1685_v20 = vpack.c.bf16 %v1679_v48, %v1678_v50  ;;  %v1812_v48 = vsel %vm615_vm0, %v1790_v1, 0 }
 0x92c   : > { %v1684_v51 = vpack.c.bf16 %v1677_v26, %v1676_v16 }
 0x92e   : > { %3909 = vmatprep.mubr.msk.bf16.mxu0 %vm713_vm3, %v1684_v51 }
 0x92f   : > { %3910 = vmatmul.mubr.msk.bf16.vlgmr.msra.gmra.mrb[32].mxu0 %vm713_vm3, %v1685_v20 }
 0x94e   : > { %v1667_v35 = vpop.xlane.xlu0 %1666 }
 0x94f   : > { %4486 = vrcp.f32 %v1667_v35 }
 0x950   : > { %4488 = vrcp.f32 %v1658_v6 }
 0x951   : > { %4490 = vrcp.f32 %v1664_v17 }
 0x952   : > { %v1786_v39 = vpop.permute.xlu0 %1785 }
 0x953   : > { %4085 = vmatprep.subr.msk.bf16.mxu0 %vm615_vm0, %v1786_v39  ;;  %v1806_v14 = vsel %vm615_vm0, %v1786_v39, 0 }
 0x954   : > { %3918 = vmatpush3.bf16.xpose.msra.mxu0 %v1806_v14 }
 0x955   : > { %4086 = vmatprep.subr.msk.bf16.mxu0 %vm615_vm0, %v1788_v56 }
 0x956   : > { %v1778_v6 = vpop.permute.xlu0 %1777 }
 0x957   : > { %v1661_v63 = vpop.xlane.xlu1 %1660 }
 0x958   : > { %4492 = vrcp.f32 %v1661_v63 }
 0x959   : > { %v4487_v60 = vpop.eup %4486 }
 0x95a   : > { %v4489_v53 = vpop.eup %4488  ;;  %v1683_v52 = vmul.f32 %v4487_v60, %v4475_v4 }
 0x95b   : > { %v4491_v25 = vpop.eup %4490  ;;  %v1680_v16 = vmul.f32 %v4489_v53, %v5629_v43  ;;  %v1792_v50 = vpop.permute.xlu1 %1791 }
 0x95c   : > { %3920 = vmatpush3.bf16.xpose.msra.mxu0 %v1809_v40  ;;  %v1682_v51 = vmul.f32 %v4491_v25, %v5624_v41  ;;  %v1815_v4 = vsel %vm615_vm0, %v1792_v50, 0 }
 0x95d   : > { %4087 = vmatprep.subr.msk.bf16.mxu0 %vm615_vm0, %v1790_v1 }
 0x95e   : > { %v1687_v17 = vpack.c.bf16 %v1683_v52, %v1682_v51 }
 0x95f   : > { %v1780_v43 = vpop.permute.xlu1 %1779 }
 0x962   : > { %v4493_v18 = vpop.eup %4492 }
 0x963   : > { %v1681_v26 = vmul.f32 %v4493_v18, %v4477_v42  ;;  %v1782_v42 = vpop.permute.xlu0 %1781  ;;  %v1784_v41 = vpop.permute.xlu1 %1783 }
 0x964   : > { %3922 = vmatpush3.bf16.xpose.msra.mxu0 %v1812_v48 }
 0x965   : > { %4088 = vmatprep.subr.msk.bf16.mxu0 %vm615_vm0, %v1792_v50  ;;  %v1686_v20 = vpack.c.bf16 %v1681_v26, %v1680_v16 }
 0x967   : > { %3913 = vmatprep.mubr.msk.bf16.mxu0 %vm713_vm3, %v1686_v20 }
 0x968   : > { %3914 = vmatmul.mubr.msk.bf16.gmra.mrb[36].mxu0 %vm713_vm3, %v1687_v17 }
 0x969   : > { %3925 = vmatprep.mubr.msk.bf16.mxu0 %vm615_vm0, %v1778_v6 }
 0x96c   : > { %3924 = vmatpush3.bf16.xpose.msra.mxu0 %v1815_v4 }
 0x973   : > { %3926 = vmatmul.mubr.msk.bf16.vlgmr.msra.gmra.mrb[40].mxu0 %vm615_vm0, %v1780_v43 }
 0x974   : > { %3929 = vmatprep.mubr.msk.bf16.mxu0 %vm615_vm0, %v1782_v42 }
 0x97b   : > { %3930 = vmatmul.mubr.msk.bf16.gmra.mrb[44].mxu0 %vm615_vm0, %v1784_v41 }
 0xa02   : > { %v5673_v56 = vpop.f32.mrb[32].mxu0 }
 0xa03   : > { %6471 = vst [vmem:[#allocation28_spill] sm:$0xff] %v5673_v56  ;;  %v5675_v35 = vpop.f32.mrb[33].mxu0 }
 0xa04   : > { %v5677_v39 = vpop.f32.mrb[34].mxu0 }
 0xa05   : > { %6472 = vst [vmem:[#allocation29_spill] sm:$0xff] %v5677_v39  ;;  %v5681_v14 = vpop.f32.mrb[35].mxu0 }
 0xa3b   : > { %v5685_v40 = vpop.f32.mrb[36].mxu0 }
 0xa3c   : > { %6473 = vst [vmem:[#allocation30_spill] sm:$0xff] %v5685_v40  ;;  %v5687_v60 = vpop.f32.mrb[37].mxu0 }
 0xa3d   : > { %v5689_v53 = vpop.f32.mrb[38].mxu0 }
 0xa3e   : > { %6474 = vst [vmem:[#allocation31_spill] sm:$0xff] %v5689_v53  ;;  %v5693_v18 = vpop.f32.mrb[39].mxu0 }
 0xa46   : > { %v3927_v48 = vpop.f32.mrb[40].mxu0 }
 0xa47   : > { %v1884_v16 = vsel %vm5071_vm1, %v3927_v48, -inf  ;;  %v1851_v26 = vpop.f32.mrb[41].mxu0 }
 0xa48   : > { %v1896_v50 = vsel %vm713_vm3, %v1884_v16, -inf  ;;  %v3928_v51 = vpop.f32.mrb[42].mxu0  ;;  %v1882_v20 = vsel %vm5075_vm2, %v1851_v26, -inf }
 0xa49   : > { %1897 = vmax.xlane.f32.xlu0 %v1896_v50  ;;  %v1854_v17 = vpop.f32.mrb[43].mxu0  ;;  %v1890_v43 = vsel %vm713_vm3, %v1882_v20, -inf  ;;  %v1885_v42 = vsel %vm5079_vm4, %v3928_v51, -inf }
 0xa4a   : > { %v1883_v6 = vsel %vm5085_vm5, %v1854_v17, -inf  ;;  %v1899_v25 = vsel %vm713_vm3, %v1885_v42, -inf }
 0xa4b   : > { %v1893_v4 = vsel %vm713_vm3, %v1883_v6, -inf }
 0xa4c   : > { %1894 = vmax.xlane.f32.xlu1 %v1893_v4 }
 0xa4d   : > { %1891 = vmax.xlane.f32.xlu0 %v1890_v43 }
 0xa4e   : > { %v3931_v41 = vpop.f32.mrb[44].mxu0 }
 0xa4f   : > { %v1867_v48 = vpop.f32.mrb[45].mxu0  ;;  %v1888_v26 = vsel %vm5107_vm8, %v3931_v41, -inf }
 0xa50   : > { %v3932_v1 = vpop.f32.mrb[46].mxu0  ;;  %v1908_v17 = vsel %vm713_vm3, %v1888_v26, -inf  ;;  %v1886_v52 = vsel %vm5099_vm6, %v1867_v48, -inf }
 0xa51   : > { %1900 = vmax.xlane.f32.xlu0 %v1899_v25  ;;  %v1870_v50 = vpop.f32.mrb[47].mxu0  ;;  %v1902_v4 = vsel %vm713_vm3, %v1886_v52, -inf  ;;  %v5723_v25 = vsel %vm5103_vm7, %v3932_v1, -inf }
 0xa52   : > { %v1911_v51 = vsel %vm713_vm3, %v5723_v25, -inf  ;;  %v5729_v43 = vsel %vm5115_vm9, %v1870_v50, -inf }
 0xa53   : > { %v1905_v41 = vsel %vm713_vm3, %v5729_v43, -inf }
 0xa55   : > { %1909 = vmax.xlane.f32.xlu0 %v1908_v17 }
 0xa59   : > { %1903 = vmax.xlane.f32.xlu0 %v1902_v4 }
 0xa5d   : > { %1984 = vrot.lane.b32.xlu1 %v5143_v2, %s4791_s8 }
 0xa61   : > { %1986 = vrot.lane.b32.xlu1 %v5167_v21, %s4791_s8 }
 0xa6f   : > { %1982 = vrot.lane.b32.xlu0 %v5147_v5, %s4791_s8 }
 0xa85   : > { %1912 = vmax.xlane.f32.xlu1 %v1911_v51 }
 0xa89   : > { %1906 = vmax.xlane.f32.xlu1 %v1905_v41 }
 0xa9a   : > { %1988 = vrot.lane.b32.xlu1 %v5164_v19, %s4791_s8 }
 0xad6   : > { %v1898_v48 = vpop.xlane.xlu0 %1897 }
 0xad7   : > { %v1916_v17 = vsub.f32 %v1884_v16, %v1898_v48 }
 0xad9   : > { %v1926_v4 = vmul.f32 1.442695, %v1916_v17  ;;  %v1895_v1 = vpop.xlane.xlu1 %1894 }
 0xada   : > { %v1892_v63 = vpop.xlane.xlu0 %1891  ;;  %v1915_v15 = vsub.f32 %v1883_v6, %v1895_v1 }
 0xadb   : > { %4494 = vpow2.f32 %v1926_v4  ;;  %v1914_v12 = vsub.f32 %v1882_v20, %v1892_v63 }
 0xadc   : > { %v1924_v51 = vmul.f32 1.442695, %v1915_v15 }
 0xadd   : > { %v1922_v0 = vmul.f32 1.442695, %v1914_v12 }
 0xade   : > { %v1901_v3 = vpop.xlane.xlu0 %1900 }
 0xadf   : > { %4496 = vpow2.f32 %v1922_v0  ;;  %v1917_v50 = vsub.f32 %v1885_v42, %v1901_v3  ;;  %v1985_v3 = vpop.permute.xlu1 %1984 }
 0xae1   : > { %v1928_v40 = vmul.f32 1.442695, %v1917_v50 }
 0xae2   : > { %v1910_v53 = vpop.xlane.xlu0 %1909 }
 0xae3   : > { %4498 = vpow2.f32 %v1928_v40  ;;  %v1920_v41 = vsub.f32 %v1888_v26, %v1910_v53 }
 0xae4   : > { %4500 = vpow2.f32 %v1924_v51 }
 0xae5   : > { %v5735_v24 = vpop.eup %4494  ;;  %v1934_v11 = vmul.f32 1.442695, %v1920_v41 }
 0xae6   : > { %v1904_v16 = vpop.xlane.xlu0 %1903  ;;  %v1944_v48 = vsel %vm713_vm3, %v5735_v24, 0.0 }
 0xae7   : > { %4502 = vpow2.f32 %v1934_v11  ;;  %v1918_v63 = vsub.f32 %v1886_v52, %v1904_v16  ;;  %1945 = vadd.xlane.f32.xlu0 %v1944_v48  ;;  %v1987_v11 = vpop.permute.xlu1 %1986 }
 0xae9   : > { %v5739_v12 = vpop.eup %4496  ;;  %v1930_v0 = vmul.f32 1.442695, %v1918_v63 }
 0xaea   : > { %v1983_v15 = vpop.permute.xlu0 %1982  ;;  %v1938_v40 = vsel %vm713_vm3, %v5739_v12, 0.0 }
 0xaeb   : > { %4504 = vpow2.f32 %v1930_v0  ;;  %1939 = vadd.xlane.f32.xlu0 %v1938_v40  ;;  %3933 = vmatprep.subr.bf16.mxu1 %v1983_v15 }
 0xaec   : > { %3934 = vmatpush3.bf16.msra.mxu1 %v1983_v15 }
 0xaed   : > { %v4499_v53 = vpop.eup %4498  ;;  %3935 = vmatprep.subr.bf16.mxu1 %v1985_v3 }
 0xaee   : > { %v1947_v20 = vsel %vm713_vm3, %v4499_v53, 0.0  ;;  %v4501_v6 = vpop.eup %4500 }
 0xaef   : > { %1948 = vadd.xlane.f32.xlu1 %v1947_v20  ;;  %v1941_v26 = vsel %vm713_vm3, %v4501_v6, 0.0 }
 0xaf0   : > { %3936 = vmatpush3.bf16.msra.mxu1 %v1985_v3 }
 0xaf1   : > { %v5744_v52 = vpop.eup %4502  ;;  %3937 = vmatprep.subr.bf16.mxu1 %v1987_v11 }
 0xaf2   : > { %v1956_v42 = vsel %vm713_vm3, %v5744_v52, 0.0 }
 0xaf3   : > { %1957 = vadd.xlane.f32.xlu0 %v1956_v42  ;;  %1942 = vadd.xlane.f32.xlu1 %v1941_v26 }
 0xaf4   : > { %3938 = vmatpush3.bf16.msra.mxu1 %v1987_v11 }
 0xaf5   : > { %v5749_v17 = vpop.eup %4504 }
 0xaf6   : > { %v1950_v4 = vsel %vm713_vm3, %v5749_v17, 0.0 }
 0xaf7   : > { %1951 = vadd.xlane.f32.xlu0 %v1950_v4 }
 0xb04   : > { %2081 = vrot.lane.b32.xlu1 %v5038_v36, %s4792_s30 }
 0xb08   : > { %2083 = vrot.lane.b32.xlu1 %v5046_v45, %s4792_s30 }
 0xb12   : > { %v1913_v1 = vpop.xlane.xlu1 %1912 }
 0xb13   : > { %v1921_v50 = vsub.f32 %v5723_v25, %v1913_v1 }
 0xb15   : > { %v1936_v51 = vmul.f32 1.442695, %v1921_v50 }
 0xb16   : > { %v1907_v41 = vpop.xlane.xlu1 %1906 }
 0xb17   : > { %4506 = vpow2.f32 %v1936_v51  ;;  %v1919_v16 = vsub.f32 %v5729_v43, %v1907_v41 }
 0xb19   : > { %v1932_v48 = vmul.f32 1.442695, %v1919_v16 }
 0xb1a   : > { %v1989_v63 = vpop.permute.xlu1 %1988 }
 0xb1b   : > { %3939 = vmatprep.subr.bf16.mxu1 %v1989_v63  ;;  %4508 = vpow2.f32 %v1932_v48 }
 0xb1c   : > { %3940 = vmatpush3.bf16.msra.mxu1 %v1989_v63 }
 0xb21   : > { %v4507_v0 = vpop.eup %4506 }
 0xb22   : > { %v1959_v3 = vsel %vm713_vm3, %v4507_v0, 0.0 }
 0xb23   : > { %1960 = vadd.xlane.f32.xlu0 %v1959_v3 }
 0xb25   : > { %v4509_v15 = vpop.eup %4508 }
 0xb26   : > { %v1953_v40 = vsel %vm713_vm3, %v4509_v15, 0.0 }
 0xb2c   : > { %1954 = vadd.xlane.f32.xlu1 %v1953_v40 }
 0xb39   : > { %2079 = vrot.lane.b32.xlu0 %v5028_v27, %s4792_s30 }
 0xb3d   : > { %2071 = vrot.lane.b32.xlu0 %v5030_v28, %s4792_s30  ;;  %2085 = vrot.lane.b32.xlu1 %v5054_v54, %s4792_s30 }
 0xb41   : > { %2075 = vrot.lane.b32.xlu0 %v5048_v46, %s4792_s30  ;;  %2073 = vrot.lane.b32.xlu1 %v5040_v37, %s4792_s30 }
 0xb45   : > { %2077 = vrot.lane.b32.xlu1 %v5056_v55, %s4792_s30 }
 0xb74   : > { %v1946_v25 = vpop.xlane.xlu0 %1945 }
 0xb78   : > { %v1940_v20 = vpop.xlane.xlu0 %1939 }
 0xb7c   : > { %v1949_v43 = vpop.xlane.xlu1 %1948 }
 0xb7d   : > { %4510 = vrcp.f32 %v1949_v43 }
 0xb7e   : > { %4512 = vrcp.f32 %v1940_v20 }
 0xb7f   : > { %4514 = vrcp.f32 %v1946_v25 }
 0xb80   : > { %v1943_v11 = vpop.xlane.xlu1 %1942  ;;  %v1958_v3 = vpop.xlane.xlu0 %1957 }
 0xb81   : > { %4516 = vrcp.f32 %v1943_v11 }
 0xb84   : > { %v1952_v40 = vpop.xlane.xlu0 %1951  ;;  %v2082_v25 = vpop.permute.xlu1 %2081 }
 0xb87   : > { %v4511_v42 = vpop.eup %4510 }
 0xb88   : > { %v4513_v26 = vpop.eup %4512  ;;  %v1973_v50 = vmul.f32 %v4511_v42, %v4499_v53  ;;  %v2084_v11 = vpop.permute.xlu1 %2083 }
 0xb89   : > { %v4515_v4 = vpop.eup %4514  ;;  %v1970_v51 = vmul.f32 %v4513_v26, %v5739_v12  ;;  %v2103_v12 = vsel %vm615_vm0, %v2082_v25, 0 }
 0xb8a   : > { %v1972_v16 = vmul.f32 %v4515_v4, %v5735_v24 }
 0xb8b   : > { %v4517_v1 = vpop.eup %4516 }
 0xb8c   : > { %v1971_v41 = vmul.f32 %v4517_v1, %v4501_v6  ;;  %v1979_v63 = vpack.c.bf16 %v1973_v50, %v1972_v16  ;;  %v2106_v50 = vsel %vm615_vm0, %v2084_v11, 0 }
 0xb8e   : > { %v1978_v48 = vpack.c.bf16 %v1971_v41, %v1970_v51 }
 0xb90   : > { %3941 = vmatprep.mubr.msk.bf16.mxu1 %vm713_vm3, %v1978_v48 }
 0xb91   : > { %3942 = vmatmul.mubr.msk.bf16.vlgmr.msra.gmra.mrb[48].mxu1 %vm713_vm3, %v1979_v63 }
 0xbb0   : > { %v1961_v43 = vpop.xlane.xlu0 %1960 }
 0xbb1   : > { %4518 = vrcp.f32 %v1961_v43 }
 0xbb2   : > { %4520 = vrcp.f32 %v1952_v40 }
 0xbb3   : > { %4522 = vrcp.f32 %v1958_v3 }
 0xbb4   : > { %v2080_v20 = vpop.permute.xlu0 %2079 }
 0xbb5   : > { %4089 = vmatprep.subr.msk.bf16.mxu1 %vm615_vm0, %v2080_v20  ;;  %v2100_v53 = vsel %vm615_vm0, %v2080_v20, 0 }
 0xbb6   : > { %3950 = vmatpush3.bf16.xpose.msra.mxu1 %v2100_v53 }
 0xbb7   : > { %4090 = vmatprep.subr.msk.bf16.mxu1 %vm615_vm0, %v2082_v25 }
 0xbb8   : > { %v2072_v40 = vpop.permute.xlu0 %2071 }
 0xbb9   : > { %v1955_v24 = vpop.xlane.xlu1 %1954 }
 0xbba   : > { %4524 = vrcp.f32 %v1955_v24 }
 0xbbb   : > { %v4519_v6 = vpop.eup %4518 }
 0xbbc   : > { %v4521_v42 = vpop.eup %4520  ;;  %v1977_v1 = vmul.f32 %v4519_v6, %v4507_v0 }
 0xbbd   : > { %v4523_v26 = vpop.eup %4522  ;;  %v1974_v51 = vmul.f32 %v4521_v42, %v5749_v17  ;;  %v2086_v16 = vpop.permute.xlu1 %2085 }
 0xbbe   : > { %3952 = vmatpush3.bf16.xpose.msra.mxu1 %v2103_v12  ;;  %v1976_v48 = vmul.f32 %v4523_v26, %v5744_v52  ;;  %v2109_v0 = vsel %vm615_vm0, %v2086_v16, 0 }
 0xbbf   : > { %4091 = vmatprep.subr.msk.bf16.mxu1 %vm615_vm0, %v2084_v11 }
 0xbc0   : > { %v1981_v3 = vpack.c.bf16 %v1977_v1, %v1976_v48 }
 0xbc1   : > { %v2074_v17 = vpop.permute.xlu1 %2073 }
 0xbc4   : > { %v4525_v4 = vpop.eup %4524 }
 0xbc5   : > { %v1975_v41 = vmul.f32 %v4525_v4, %v4509_v15  ;;  %v2076_v15 = vpop.permute.xlu0 %2075  ;;  %v2078_v52 = vpop.permute.xlu1 %2077 }
 0xbc6   : > { %3954 = vmatpush3.bf16.xpose.msra.mxu1 %v2106_v50 }
 0xbc7   : > { %4092 = vmatprep.subr.msk.bf16.mxu1 %vm615_vm0, %v2086_v16  ;;  %v1980_v63 = vpack.c.bf16 %v1975_v41, %v1974_v51 }
 0xbc9   : > { %3945 = vmatprep.mubr.msk.bf16.mxu1 %vm713_vm3, %v1980_v63 }
 0xbca   : > { %3946 = vmatmul.mubr.msk.bf16.gmra.mrb[52].mxu1 %vm713_vm3, %v1981_v3 }
 0xbcb   : > { %3957 = vmatprep.mubr.msk.bf16.mxu1 %vm615_vm0, %v2072_v40 }
 0xbce   : > { %3956 = vmatpush3.bf16.xpose.msra.mxu1 %v2109_v0 }
 0xbd5   : > { %3958 = vmatmul.mubr.msk.bf16.vlgmr.msra.gmra.mrb[56].mxu1 %vm615_vm0, %v2074_v17 }
 0xbd6   : > { %3961 = vmatprep.mubr.msk.bf16.mxu1 %vm615_vm0, %v2076_v15 }
 0xbdd   : > { %3962 = vmatmul.mubr.msk.bf16.gmra.mrb[60].mxu1 %vm615_vm0, %v2078_v52 }
 0xc64   : > { %v5793_v25 = vpop.f32.mrb[48].mxu1 }
 0xc65   : > { %6475 = vst [vmem:[#allocation32_spill] sm:$0xff] %v5793_v25  ;;  %v5795_v43 = vpop.f32.mrb[49].mxu1 }
 0xc66   : > { %v5797_v20 = vpop.f32.mrb[50].mxu1 }
 0xc67   : > { %6476 = vst [vmem:[#allocation33_spill] sm:$0xff] %v5797_v20  ;;  %v5801_v53 = vpop.f32.mrb[51].mxu1 }
 0xc9d   : > { %v5805_v12 = vpop.f32.mrb[52].mxu1 }
 0xc9e   : > { %6477 = vst [vmem:[#allocation34_spill] sm:$0xff] %v5805_v12  ;;  %v5807_v6 = vpop.f32.mrb[53].mxu1 }
 0xc9f   : > { %v5809_v42 = vpop.f32.mrb[54].mxu1 }
 0xca0   : > { %6478 = vst [vmem:[#allocation35_spill] sm:$0xff] %v5809_v42  ;;  %v5813_v4 = vpop.f32.mrb[55].mxu1 }
 0xca8   : > { %v3959_v50 = vpop.f32.mrb[56].mxu1 }
 0xca9   : > { %v2178_v51 = vsel %vm5071_vm1, %v3959_v50, -inf  ;;  %v2145_v41 = vpop.f32.mrb[57].mxu1 }
 0xcaa   : > { %v2190_v16 = vsel %vm713_vm3, %v2178_v51, -inf  ;;  %v3960_v48 = vpop.f32.mrb[58].mxu1  ;;  %v2176_v63 = vsel %vm5075_vm2, %v2145_v41, -inf }
 0xcab   : > { %2191 = vmax.xlane.f32.xlu0 %v2190_v16  ;;  %v2148_v3 = vpop.f32.mrb[59].mxu1  ;;  %v2184_v17 = vsel %vm713_vm3, %v2176_v63, -inf  ;;  %v2179_v15 = vsel %vm5079_vm4, %v3960_v48, -inf }
 0xcac   : > { %v2177_v40 = vsel %vm5085_vm5, %v2148_v3, -inf  ;;  %v2193_v26 = vsel %vm713_vm3, %v2179_v15, -inf }
 0xcad   : > { %v2187_v0 = vsel %vm713_vm3, %v2177_v40, -inf }
 0xcae   : > { %2188 = vmax.xlane.f32.xlu1 %v2187_v0 }
 0xcaf   : > { %2185 = vmax.xlane.f32.xlu0 %v2184_v17 }
 0xcb0   : > { %v3963_v52 = vpop.f32.mrb[60].mxu1 }
 0xcb1   : > { %v2161_v50 = vpop.f32.mrb[61].mxu1  ;;  %v2182_v41 = vsel %vm5107_vm8, %v3963_v52, -inf }
 0xcb2   : > { %v3964_v11 = vpop.f32.mrb[62].mxu1  ;;  %v2202_v3 = vsel %vm713_vm3, %v2182_v41, -inf  ;;  %v2180_v1 = vsel %vm5099_vm6, %v2161_v50, -inf }
 0xcb3   : > { %2194 = vmax.xlane.f32.xlu0 %v2193_v26  ;;  %v2164_v16 = vpop.f32.mrb[63].mxu1  ;;  %v2196_v0 = vsel %vm713_vm3, %v2180_v1, -inf  ;;  %v5843_v26 = vsel %vm5103_vm7, %v3964_v11, -inf }
 0xcb4   : > { %v2205_v48 = vsel %vm713_vm3, %v5843_v26, -inf  ;;  %v5849_v17 = vsel %vm5115_vm9, %v2164_v16, -inf }
 0xcb5   : > { %v2199_v52 = vsel %vm713_vm3, %v5849_v17, -inf }
 0xcb7   : > { %2203 = vmax.xlane.f32.xlu0 %v2202_v3 }
 0xcbb   : > { %2197 = vmax.xlane.f32.xlu0 %v2196_v0 }
 0xcbf   : > { %2278 = vrot.lane.b32.xlu1 %v5143_v2, %s4792_s30 }
 0xcc3   : > { %2280 = vrot.lane.b32.xlu1 %v5167_v21, %s4792_s30 }
 0xcd1   : > { %2276 = vrot.lane.b32.xlu0 %v5147_v5, %s4792_s30 }
 0xce7   : > { %2206 = vmax.xlane.f32.xlu1 %v2205_v48 }
 0xceb   : > { %2200 = vmax.xlane.f32.xlu1 %v2199_v52 }
 0xcfc   : > { %2282 = vrot.lane.b32.xlu1 %v5164_v19, %s4792_s30 }
 0xd38   : > { %v2192_v50 = vpop.xlane.xlu0 %2191 }
 0xd39   : > { %v2210_v3 = vsub.f32 %v2178_v51, %v2192_v50 }
 0xd3b   : > { %v2220_v0 = vmul.f32 1.442695, %v2210_v3  ;;  %v2189_v11 = vpop.xlane.xlu1 %2188 }
 0xd3c   : > { %v2186_v24 = vpop.xlane.xlu0 %2185  ;;  %v2209_v42 = vsub.f32 %v2177_v40, %v2189_v11 }
 0xd3d   : > { %4526 = vpow2.f32 %v2220_v0  ;;  %v2208_v12 = vsub.f32 %v2176_v63, %v2186_v24 }
 0xd3e   : > { %v2218_v48 = vmul.f32 1.442695, %v2209_v42 }
 0xd3f   : > { %v2216_v57 = vmul.f32 1.442695, %v2208_v12 }
 0xd40   : > { %v2195_v23 = vpop.xlane.xlu0 %2194 }
 0xd41   : > { %4528 = vpow2.f32 %v2216_v57  ;;  %v2211_v16 = vsub.f32 %v2179_v15, %v2195_v23  ;;  %v2279_v23 = vpop.permute.xlu1 %2278 }
 0xd43   : > { %v2222_v25 = vmul.f32 1.442695, %v2211_v16 }
 0xd44   : > { %v2204_v20 = vpop.xlane.xlu0 %2203 }
 0xd45   : > { %4530 = vpow2.f32 %v2222_v25  ;;  %v2214_v52 = vsub.f32 %v2182_v41, %v2204_v20 }
 0xd46   : > { %4532 = vpow2.f32 %v2218_v48 }
 0xd47   : > { %v5855_v56 = vpop.eup %4526  ;;  %v2228_v39 = vmul.f32 1.442695, %v2214_v52 }
 0xd48   : > { %v2198_v51 = vpop.xlane.xlu0 %2197  ;;  %v2238_v50 = vsel %vm713_vm3, %v5855_v56, 0.0 }
 0xd49   : > { %4534 = vpow2.f32 %v2228_v39  ;;  %v2212_v24 = vsub.f32 %v2180_v1, %v2198_v51  ;;  %2239 = vadd.xlane.f32.xlu0 %v2238_v50  ;;  %v2281_v39 = vpop.permute.xlu1 %2280 }
 0xd4b   : > { %v5859_v12 = vpop.eup %4528  ;;  %v2224_v57 = vmul.f32 1.442695, %v2212_v24 }
 0xd4c   : > { %v2277_v42 = vpop.permute.xlu0 %2276  ;;  %v2232_v25 = vsel %vm713_vm3, %v5859_v12, 0.0 }
 0xd4d   : > { %4536 = vpow2.f32 %v2224_v57  ;;  %2233 = vadd.xlane.f32.xlu0 %v2232_v25  ;;  %3965 = vmatprep.subr.bf16.mxu0 %v2277_v42 }
 0xd4e   : > { %3966 = vmatpush3.bf16.msra.mxu0 %v2277_v42 }
 0xd4f   : > { %v4531_v20 = vpop.eup %4530  ;;  %3967 = vmatprep.subr.bf16.mxu0 %v2279_v23 }
 0xd50   : > { %v2241_v63 = vsel %vm713_vm3, %v4531_v20, 0.0  ;;  %v4533_v40 = vpop.eup %4532 }
 0xd51   : > { %2242 = vadd.xlane.f32.xlu1 %v2241_v63  ;;  %v2235_v41 = vsel %vm713_vm3, %v4533_v40, 0.0 }
 0xd52   : > { %3968 = vmatpush3.bf16.msra.mxu0 %v2279_v23 }
 0xd53   : > { %v5864_v1 = vpop.eup %4534  ;;  %3969 = vmatprep.subr.bf16.mxu0 %v2281_v39 }
 0xd54   : > { %v2250_v15 = vsel %vm713_vm3, %v5864_v1, 0.0 }
 0xd55   : > { %2251 = vadd.xlane.f32.xlu0 %v2250_v15  ;;  %2236 = vadd.xlane.f32.xlu1 %v2235_v41 }
 0xd56   : > { %3970 = vmatpush3.bf16.msra.mxu0 %v2281_v39 }
 0xd57   : > { %v5869_v3 = vpop.eup %4536 }
 0xd58   : > { %v2244_v0 = vsel %vm713_vm3, %v5869_v3, 0.0 }
 0xd59   : > { %2245 = vadd.xlane.f32.xlu0 %v2244_v0 }
 0xd66   : > { %2375 = vrot.lane.b32.xlu1 %v5038_v36, %s4793_s6 }
 0xd6a   : > { %2377 = vrot.lane.b32.xlu1 %v5046_v45, %s4793_s6 }
 0xd74   : > { %v2207_v11 = vpop.xlane.xlu1 %2206 }
 0xd75   : > { %v2215_v16 = vsub.f32 %v5843_v26, %v2207_v11 }
 0xd77   : > { %v2230_v48 = vmul.f32 1.442695, %v2215_v16 }
 0xd78   : > { %v2201_v52 = vpop.xlane.xlu1 %2200 }
 0xd79   : > { %4538 = vpow2.f32 %v2230_v48  ;;  %v2213_v51 = vsub.f32 %v5849_v17, %v2201_v52 }
 0xd7b   : > { %v2226_v50 = vmul.f32 1.442695, %v2213_v51 }
 0xd7c   : > { %v2283_v24 = vpop.permute.xlu1 %2282 }
 0xd7d   : > { %3971 = vmatprep.subr.bf16.mxu0 %v2283_v24  ;;  %4540 = vpow2.f32 %v2226_v50 }
 0xd7e   : > { %3972 = vmatpush3.bf16.msra.mxu0 %v2283_v24 }
 0xd83   : > { %v4539_v57 = vpop.eup %4538 }
 0xd84   : > { %v2253_v23 = vsel %vm713_vm3, %v4539_v57, 0.0 }
 0xd85   : > { %2254 = vadd.xlane.f32.xlu0 %v2253_v23 }
 0xd87   : > { %v4541_v42 = vpop.eup %4540 }
 0xd88   : > { %v2247_v25 = vsel %vm713_vm3, %v4541_v42, 0.0 }
 0xd8e   : > { %2248 = vadd.xlane.f32.xlu1 %v2247_v25 }
 0xd9b   : > { %2373 = vrot.lane.b32.xlu0 %v5028_v27, %s4793_s6 }
 0xd9f   : > { %2365 = vrot.lane.b32.xlu0 %v5030_v28, %s4793_s6  ;;  %2379 = vrot.lane.b32.xlu1 %v5054_v54, %s4793_s6 }
 0xda3   : > { %2369 = vrot.lane.b32.xlu0 %v5048_v46, %s4793_s6  ;;  %2367 = vrot.lane.b32.xlu1 %v5040_v37, %s4793_s6 }
 0xda7   : > { %2371 = vrot.lane.b32.xlu1 %v5056_v55, %s4793_s6 }
 0xdd6   : > { %v2240_v26 = vpop.xlane.xlu0 %2239 }
 0xdda   : > { %v2234_v63 = vpop.xlane.xlu0 %2233 }
 0xdde   : > { %v2243_v17 = vpop.xlane.xlu1 %2242 }
 0xddf   : > { %4542 = vrcp.f32 %v2243_v17 }
 0xde0   : > { %4544 = vrcp.f32 %v2234_v63 }
 0xde1   : > { %4546 = vrcp.f32 %v2240_v26 }
 0xde2   : > { %v2237_v39 = vpop.xlane.xlu1 %2236  ;;  %v2252_v23 = vpop.xlane.xlu0 %2251 }
 0xde3   : > { %4548 = vrcp.f32 %v2237_v39 }
 0xde6   : > { %v2246_v25 = vpop.xlane.xlu0 %2245  ;;  %v2376_v26 = vpop.permute.xlu1 %2375 }
 0xde9   : > { %v4543_v15 = vpop.eup %4542 }
 0xdea   : > { %v4545_v41 = vpop.eup %4544  ;;  %v2267_v16 = vmul.f32 %v4543_v15, %v4531_v20  ;;  %v2378_v39 = vpop.permute.xlu1 %2377 }
 0xdeb   : > { %v4547_v0 = vpop.eup %4546  ;;  %v2264_v48 = vmul.f32 %v4545_v41, %v5859_v12  ;;  %v2397_v12 = vsel %vm615_vm0, %v2376_v26, 0 }
 0xdec   : > { %v2266_v51 = vmul.f32 %v4547_v0, %v5855_v56 }
 0xded   : > { %v4549_v11 = vpop.eup %4548 }
 0xdee   : > { %v2265_v52 = vmul.f32 %v4549_v11, %v4533_v40  ;;  %v2273_v24 = vpack.c.bf16 %v2267_v16, %v2266_v51  ;;  %v2400_v11 = vsel %vm615_vm0, %v2378_v39, 0 }
 0xdf0   : > { %v2272_v50 = vpack.c.bf16 %v2265_v52, %v2264_v48 }
 0xdf2   : > { %3973 = vmatprep.mubr.msk.bf16.mxu0 %vm713_vm3, %v2272_v50 }
 0xdf3   : > { %3974 = vmatmul.mubr.msk.bf16.vlgmr.msra.gmra.mrb[48].mxu0 %vm713_vm3, %v2273_v24 }
 0xe12   : > { %v2255_v17 = vpop.xlane.xlu0 %2254 }
 0xe13   : > { %4550 = vrcp.f32 %v2255_v17 }
 0xe14   : > { %4552 = vrcp.f32 %v2246_v25 }
 0xe15   : > { %4554 = vrcp.f32 %v2252_v23 }
 0xe16   : > { %v2374_v63 = vpop.permute.xlu0 %2373 }
 0xe17   : > { %v2394_v44 = vsel %vm615_vm0, %v2374_v63, 0  ;;  %4093 = vmatprep.subr.msk.bf16.mxu0 %vm615_vm0, %v2374_v63 }
 0xe18   : > { %3982 = vmatpush3.bf16.xpose.msra.mxu0 %v2394_v44 }
 0xe19   : > { %4094 = vmatprep.subr.msk.bf16.mxu0 %vm615_vm0, %v2376_v26 }
 0xe1a   : > { %v2366_v24 = vpop.permute.xlu0 %2365 }
 0xe1b   : > { %v2249_v56 = vpop.xlane.xlu1 %2248 }
 0xe1c   : > { %4556 = vrcp.f32 %v2249_v56 }
 0xe1d   : > { %v4551_v20 = vpop.eup %4550 }
 0xe1e   : > { %v4553_v40 = vpop.eup %4552  ;;  %v2271_v0 = vmul.f32 %v4551_v20, %v4539_v57 }
 0xe1f   : > { %v4555_v15 = vpop.eup %4554  ;;  %v2268_v44 = vmul.f32 %v4553_v40, %v5869_v3  ;;  %v2380_v48 = vpop.permute.xlu1 %2379 }
 0xe20   : > { %3984 = vmatpush3.bf16.xpose.msra.mxu0 %v2397_v12  ;;  %v2270_v52 = vmul.f32 %v4555_v15, %v5864_v1  ;;  %v2403_v57 = vsel %vm615_vm0, %v2380_v48, 0 }
 0xe21   : > { %4095 = vmatprep.subr.msk.bf16.mxu0 %vm615_vm0, %v2378_v39 }
 0xe22   : > { %v2275_v50 = vpack.c.bf16 %v2271_v0, %v2270_v52 }
 0xe23   : > { %v2368_v3 = vpop.permute.xlu1 %2367 }
 0xe26   : > { %v4557_v41 = vpop.eup %4556 }
 0xe27   : > { %v2269_v16 = vmul.f32 %v4557_v41, %v4541_v42  ;;  %v2370_v42 = vpop.permute.xlu0 %2369  ;;  %v2372_v1 = vpop.permute.xlu1 %2371 }
 0xe28   : > { %3986 = vmatpush3.bf16.xpose.msra.mxu0 %v2400_v11 }
 0xe29   : > { %4096 = vmatprep.subr.msk.bf16.mxu0 %vm615_vm0, %v2380_v48  ;;  %v2274_v51 = vpack.c.bf16 %v2269_v16, %v2268_v44 }
 0xe2b   : > { %3977 = vmatprep.mubr.msk.bf16.mxu0 %vm713_vm3, %v2274_v51 }
 0xe2c   : > { %3978 = vmatmul.mubr.msk.bf16.gmra.mrb[52].mxu0 %vm713_vm3, %v2275_v50 }
 0xe2d   : > { %3989 = vmatprep.mubr.msk.bf16.mxu0 %vm615_vm0, %v2366_v24 }
 0xe30   : > { %3988 = vmatpush3.bf16.xpose.msra.mxu0 %v2403_v57 }
 0xe37   : > { %3990 = vmatmul.mubr.msk.bf16.vlgmr.msra.gmra.mrb[56].mxu0 %vm615_vm0, %v2368_v3 }
 0xe38   : > { %3993 = vmatprep.mubr.msk.bf16.mxu0 %vm615_vm0, %v2370_v42 }
 0xe3f   : > { %3994 = vmatmul.mubr.msk.bf16.gmra.mrb[60].mxu0 %vm615_vm0, %v2372_v1 }
 0xec6   : > { %v5913_v23 = vpop.f32.mrb[48].mxu0 }
 0xec7   : > { %6479 = vst [vmem:[#allocation36_spill] sm:$0xff] %v5913_v23  ;;  %v5915_v25 = vpop.f32.mrb[49].mxu0 }
 0xec8   : > { %v5917_v26 = vpop.f32.mrb[50].mxu0 }
 0xec9   : > { %6480 = vst [vmem:[#allocation37_spill] sm:$0xff] %v5917_v26  ;;  %v5921_v63 = vpop.f32.mrb[51].mxu0 }
 0xeff   : > { %v5925_v56 = vpop.f32.mrb[52].mxu0 }
 0xf00   : > { %6481 = vst [vmem:[#allocation38_spill] sm:$0xff] %v5925_v56  ;;  %v5927_v12 = vpop.f32.mrb[53].mxu0 }
 0xf01   : > { %v5929_v20 = vpop.f32.mrb[54].mxu0 }
 0xf02   : > { %6482 = vst [vmem:[#allocation39_spill] sm:$0xff] %v5929_v20  ;;  %v5933_v15 = vpop.f32.mrb[55].mxu0 }
 0xf0a   : > { %v3991_v0 = vpop.f32.mrb[56].mxu0 }
 0xf0b   : > { %v2472_v11 = vsel %vm5071_vm1, %v3991_v0, -inf  ;;  %v2439_v44 = vpop.f32.mrb[57].mxu0 }
 0xf0c   : > { %v2484_v16 = vsel %vm713_vm3, %v2472_v11, -inf  ;;  %v3992_v48 = vpop.f32.mrb[58].mxu0  ;;  %v2470_v52 = vsel %vm5075_vm2, %v2439_v44, -inf }
 0xf0d   : > { %2485 = vmax.xlane.f32.xlu0 %v2484_v16  ;;  %v2442_v51 = vpop.f32.mrb[59].mxu0  ;;  %v2478_v57 = vsel %vm713_vm3, %v2470_v52, -inf  ;;  %v2473_v3 = vsel %vm5079_vm4, %v3992_v48, -inf }
 0xf0e   : > { %v2471_v50 = vsel %vm5085_vm5, %v2442_v51, -inf  ;;  %v2487_v0 = vsel %vm713_vm3, %v2473_v3, -inf }
 0xf0f   : > { %v2481_v24 = vsel %vm713_vm3, %v2471_v50, -inf }
 0xf10   : > { %2482 = vmax.xlane.f32.xlu1 %v2481_v24 }
 0xf11   : > { %2479 = vmax.xlane.f32.xlu0 %v2478_v57 }
 0xf12   : > { %v3995_v42 = vpop.f32.mrb[60].mxu0 }
 0xf13   : > { %v2455_v1 = vpop.f32.mrb[61].mxu0  ;;  %v2476_v44 = vsel %vm5107_vm8, %v3995_v42, -inf }
 0xf14   : > { %v3996_v40 = vpop.f32.mrb[62].mxu0  ;;  %v2496_v51 = vsel %vm713_vm3, %v2476_v44, -inf  ;;  %v2474_v17 = vsel %vm5099_vm6, %v2455_v1, -inf }
 0xf15   : > { %2488 = vmax.xlane.f32.xlu0 %v2487_v0  ;;  %v2458_v16 = vpop.f32.mrb[63].mxu0  ;;  %v2490_v24 = vsel %vm713_vm3, %v2474_v17, -inf  ;;  %v5963_v48 = vsel %vm5103_vm7, %v3996_v40, -inf }
 0xf16   : > { %v2499_v57 = vsel %vm713_vm3, %v5963_v48, -inf  ;;  %v5969_v42 = vsel %vm5115_vm9, %v2458_v16, -inf }
 0xf17   : > { %v2493_v1 = vsel %vm713_vm3, %v5969_v42, -inf }
 0xf19   : > { %2497 = vmax.xlane.f32.xlu0 %v2496_v51 }
 0xf1d   : > { %2491 = vmax.xlane.f32.xlu0 %v2490_v24 }
 0xf21   : > { %2572 = vrot.lane.b32.xlu1 %v5143_v2, %s4793_s6 }
 0xf25   : > { %2574 = vrot.lane.b32.xlu1 %v5167_v21, %s4793_s6 }
 0xf33   : > { %2570 = vrot.lane.b32.xlu0 %v5147_v5, %s4793_s6 }
 0xf49   : > { %2500 = vmax.xlane.f32.xlu1 %v2499_v57 }
 0xf4d   : > { %2494 = vmax.xlane.f32.xlu1 %v2493_v1 }
 0xf5e   : > { %2576 = vrot.lane.b32.xlu1 %v5164_v19, %s4793_s6 }
 0xf9a   : > { %v2486_v0 = vpop.xlane.xlu0 %2485 }
 0xf9b   : > { %v2504_v51 = vsub.f32 %v2472_v11, %v2486_v0 }
 0xf9d   : > { %v2514_v24 = vmul.f32 1.442695, %v2504_v51  ;;  %v2483_v40 = vpop.xlane.xlu1 %2482 }
 0xf9e   : > { %v2480_v41 = vpop.xlane.xlu0 %2479  ;;  %v2503_v56 = vsub.f32 %v2471_v50, %v2483_v40 }
 0xf9f   : > { %4558 = vpow2.f32 %v2514_v24  ;;  %v2502_v39 = vsub.f32 %v2470_v52, %v2480_v41 }
 0xfa0   : > { %v2512_v57 = vmul.f32 1.442695, %v2503_v56 }
 0xfa1   : > { %v2510_v20 = vmul.f32 1.442695, %v2502_v39 }
 0xfa2   : > { %v2489_v23 = vpop.xlane.xlu0 %2488 }
 0xfa3   : > { %4560 = vpow2.f32 %v2510_v20  ;;  %v2505_v16 = vsub.f32 %v2473_v3, %v2489_v23  ;;  %v2573_v23 = vpop.permute.xlu1 %2572 }
 0xfa5   : > { %v2516_v26 = vmul.f32 1.442695, %v2505_v16 }
 0xfa6   : > { %v2498_v59 = vpop.xlane.xlu0 %2497 }
 0xfa7   : > { %4562 = vpow2.f32 %v2516_v26  ;;  %v2508_v1 = vsub.f32 %v2476_v44, %v2498_v59 }
 0xfa8   : > { %4564 = vpow2.f32 %v2512_v57 }
 0xfa9   : > { %v5975_v22 = vpop.eup %4558  ;;  %v2522_v62 = vmul.f32 1.442695, %v2508_v1 }
 0xfaa   : > { %v2492_v11 = vpop.xlane.xlu0 %2491  ;;  %v2532_v0 = vsel %vm713_vm3, %v5975_v22, 0.0 }
 0xfab   : > { %4566 = vpow2.f32 %v2522_v62  ;;  %v2506_v41 = vsub.f32 %v2474_v17, %v2492_v11  ;;  %2533 = vadd.xlane.f32.xlu0 %v2532_v0  ;;  %v2575_v62 = vpop.permute.xlu1 %2574 }
 0xfad   : > { %v5979_v39 = vpop.eup %4560  ;;  %v2518_v20 = vmul.f32 1.442695, %v2506_v41 }
 0xfae   : > { %v2571_v56 = vpop.permute.xlu0 %2570  ;;  %v2526_v26 = vsel %vm713_vm3, %v5979_v39, 0.0 }
 0xfaf   : > { %4568 = vpow2.f32 %v2518_v20  ;;  %2527 = vadd.xlane.f32.xlu0 %v2526_v26  ;;  %3997 = vmatprep.subr.bf16.mxu1 %v2571_v56 }
 0xfb0   : > { %3998 = vmatpush3.bf16.msra.mxu1 %v2571_v56 }
 0xfb1   : > { %v4563_v59 = vpop.eup %4562  ;;  %3999 = vmatprep.subr.bf16.mxu1 %v2573_v23 }
 0xfb2   : > { %v2535_v52 = vsel %vm713_vm3, %v4563_v59, 0.0  ;;  %v4565_v50 = vpop.eup %4564 }
 0xfb3   : > { %2536 = vadd.xlane.f32.xlu1 %v2535_v52  ;;  %v2529_v44 = vsel %vm713_vm3, %v4565_v50, 0.0 }
 0xfb4   : > { %4000 = vmatpush3.bf16.msra.mxu1 %v2573_v23 }
 0xfb5   : > { %v5984_v17 = vpop.eup %4566  ;;  %4001 = vmatprep.subr.bf16.mxu1 %v2575_v62 }
 0xfb6   : > { %v2544_v3 = vsel %vm713_vm3, %v5984_v17, 0.0 }
 0xfb7   : > { %2545 = vadd.xlane.f32.xlu0 %v2544_v3  ;;  %2530 = vadd.xlane.f32.xlu1 %v2529_v44 }
 0xfb8   : > { %4002 = vmatpush3.bf16.msra.mxu1 %v2575_v62 }
 0xfb9   : > { %v5989_v51 = vpop.eup %4568 }
 0xfba   : > { %v2538_v24 = vsel %vm713_vm3, %v5989_v51, 0.0 }
 0xfbb   : > { %2539 = vadd.xlane.f32.xlu0 %v2538_v24 }
 0xfc8   : > { %2669 = vrot.lane.b32.xlu1 %v5038_v36, %s4794_s25 }
 0xfcc   : > { %2671 = vrot.lane.b32.xlu1 %v5046_v45, %s4794_s25 }
 0xfd6   : > { %v2501_v40 = vpop.xlane.xlu1 %2500 }
 0xfd7   : > { %v2509_v16 = vsub.f32 %v5963_v48, %v2501_v40 }
 0xfd9   : > { %v2524_v57 = vmul.f32 1.442695, %v2509_v16 }
 0xfda   : > { %v2495_v1 = vpop.xlane.xlu1 %2494 }
 0xfdb   : > { %4570 = vpow2.f32 %v2524_v57  ;;  %v2507_v11 = vsub.f32 %v5969_v42, %v2495_v1 }
 0xfdd   : > { %v2520_v0 = vmul.f32 1.442695, %v2507_v11 }
 0xfde   : > { %v2577_v41 = vpop.permute.xlu1 %2576 }
 0xfdf   : > { %4003 = vmatprep.subr.bf16.mxu1 %v2577_v41  ;;  %4572 = vpow2.f32 %v2520_v0 }
 0xfe0   : > { %4004 = vmatpush3.bf16.msra.mxu1 %v2577_v41 }
 0xfe5   : > { %v4571_v20 = vpop.eup %4570 }
 0xfe6   : > { %v2547_v23 = vsel %vm713_vm3, %v4571_v20, 0.0 }
 0xfe7   : > { %2548 = vadd.xlane.f32.xlu0 %v2547_v23 }
 0xfe9   : > { %v4573_v36 = vpop.eup %4572 }
 0xfea   : > { %v2541_v45 = vsel %vm713_vm3, %v4573_v36, 0.0 }
 0xff0   : > { %2542 = vadd.xlane.f32.xlu1 %v2541_v45 }
 0xffd   : > { %2667 = vrot.lane.b32.xlu0 %v5028_v27, %s4794_s25 }
0x1001   : > { %2659 = vrot.lane.b32.xlu0 %v5030_v28, %s4794_s25  ;;  %2673 = vrot.lane.b32.xlu1 %v5054_v54, %s4794_s25 }
0x1005   : > { %2663 = vrot.lane.b32.xlu0 %v5048_v46, %s4794_s25  ;;  %2661 = vrot.lane.b32.xlu1 %v5040_v37, %s4794_s25 }
0x1009   : > { %2665 = vrot.lane.b32.xlu1 %v5056_v55, %s4794_s25 }
0x1038   : > { %v2534_v48 = vpop.xlane.xlu0 %2533 }
0x103c   : > { %v2528_v56 = vpop.xlane.xlu0 %2527 }
0x1040   : > { %v2537_v42 = vpop.xlane.xlu1 %2536 }
0x1041   : > { %4574 = vrcp.f32 %v2537_v42 }
0x1042   : > { %4576 = vrcp.f32 %v2528_v56 }
0x1043   : > { %4578 = vrcp.f32 %v2534_v48 }
0x1044   : > { %v2531_v27 = vpop.xlane.xlu1 %2530  ;;  %v2546_v24 = vpop.xlane.xlu0 %2545 }
0x1045   : > { %4580 = vrcp.f32 %v2531_v27 }
0x1048   : > { %v2540_v40 = vpop.xlane.xlu0 %2539  ;;  %v2670_v16 = vpop.permute.xlu1 %2669 }
0x104b   : > { %v4575_v28 = vpop.eup %4574 }
0x104c   : > { %v4577_v26 = vpop.eup %4576  ;;  %v2561_v62 = vmul.f32 %v4575_v28, %v4563_v59  ;;  %v2672_v11 = vpop.permute.xlu1 %2671 }
0x104d   : > { %v4579_v54 = vpop.eup %4578  ;;  %v2558_v46 = vmul.f32 %v4577_v26, %v5979_v39  ;;  %v2691_v39 = vsel %vm615_vm0, %v2670_v16, 0  ;;  %v2694_v48 = vsel %vm615_vm0, %v2672_v11, 0 }
0x104e   : > { %v2560_v37 = vmul.f32 %v4579_v54, %v5975_v22 }
0x104f   : > { %v4581_v52 = vpop.eup %4580 }
0x1050   : > { %v2559_v3 = vmul.f32 %v4581_v52, %v4565_v50  ;;  %v2567_v55 = vpack.c.bf16 %v2561_v62, %v2560_v37 }
0x1052   : > { %v2566_v44 = vpack.c.bf16 %v2559_v3, %v2558_v46 }
0x1054   : > { %4005 = vmatprep.mubr.msk.bf16.mxu1 %vm713_vm3, %v2566_v44 }
0x1055   : > { %4006 = vmatmul.mubr.msk.bf16.vlgmr.msra.gmra.mrb[64].mxu1 %vm713_vm3, %v2567_v55 }
0x1074   : > { %v2549_v57 = vpop.xlane.xlu0 %2548 }
0x1075   : > { %4582 = vrcp.f32 %v2549_v57 }
0x1076   : > { %4584 = vrcp.f32 %v2540_v40 }
0x1077   : > { %4586 = vrcp.f32 %v2546_v24 }
0x1078   : > { %v2668_v1 = vpop.permute.xlu0 %2667 }
0x1079   : > { %v2688_v0 = vsel %vm615_vm0, %v2668_v1, 0  ;;  %4097 = vmatprep.subr.msk.bf16.mxu1 %vm615_vm0, %v2668_v1 }
0x107a   : > { %4014 = vmatpush3.bf16.xpose.msra.mxu1 %v2688_v0 }
0x107b   : > { %4098 = vmatprep.subr.msk.bf16.mxu1 %vm615_vm0, %v2670_v16 }
0x107c   : > { %v2660_v52 = vpop.permute.xlu0 %2659 }
0x107d   : > { %v2543_v22 = vpop.xlane.xlu1 %2542 }
0x107e   : > { %4588 = vrcp.f32 %v2543_v22 }
0x107f   : > { %v4583_v59 = vpop.eup %4582 }
0x1080   : > { %v4585_v50 = vpop.eup %4584  ;;  %v2565_v45 = vmul.f32 %v4583_v59, %v4571_v20 }
0x1081   : > { %v4587_v41 = vpop.eup %4586  ;;  %v2562_v42 = vmul.f32 %v4585_v50, %v5989_v51  ;;  %v2674_v27 = vpop.permute.xlu1 %2673 }
0x1082   : > { %4016 = vmatpush3.bf16.xpose.msra.mxu1 %v2691_v39  ;;  %v2564_v28 = vmul.f32 %v4587_v41, %v5984_v17  ;;  %v2697_v20 = vsel %vm615_vm0, %v2674_v27, 0 }
0x1083   : > { %4099 = vmatprep.subr.msk.bf16.mxu1 %vm615_vm0, %v2672_v11 }
0x1084   : > { %v2569_v54 = vpack.c.bf16 %v2565_v45, %v2564_v28 }
0x1085   : > { %v2662_v51 = vpop.permute.xlu1 %2661 }
0x1088   : > { %v4589_v23 = vpop.eup %4588 }
0x1089   : > { %v2563_v56 = vmul.f32 %v4589_v23, %v4573_v36  ;;  %v2664_v36 = vpop.permute.xlu0 %2663  ;;  %v2666_v17 = vpop.permute.xlu1 %2665 }
0x108a   : > { %4018 = vmatpush3.bf16.xpose.msra.mxu1 %v2694_v48 }
0x108b   : > { %4100 = vmatprep.subr.msk.bf16.mxu1 %vm615_vm0, %v2674_v27  ;;  %v2568_v26 = vpack.c.bf16 %v2563_v56, %v2562_v42 }
0x108d   : > { %4009 = vmatprep.mubr.msk.bf16.mxu1 %vm713_vm3, %v2568_v26 }
0x108e   : > { %4010 = vmatmul.mubr.msk.bf16.gmra.mrb[68].mxu1 %vm713_vm3, %v2569_v54 }
0x108f   : > { %4021 = vmatprep.mubr.msk.bf16.mxu1 %vm615_vm0, %v2660_v52 }
0x1092   : > { %4020 = vmatpush3.bf16.xpose.msra.mxu1 %v2697_v20 }
0x1099   : > { %4022 = vmatmul.mubr.msk.bf16.vlgmr.msra.gmra.mrb[72].mxu1 %vm615_vm0, %v2662_v51 }
0x109a   : > { %4025 = vmatprep.mubr.msk.bf16.mxu1 %vm615_vm0, %v2664_v36 }
0x10a1   : > { %4026 = vmatmul.mubr.msk.bf16.gmra.mrb[76].mxu1 %vm615_vm0, %v2666_v17 }
0x1128   : > { %v6033_v62 = vpop.f32.mrb[64].mxu1 }
0x1129   : > { %v6035_v46 = vpop.f32.mrb[65].mxu1 }
0x112a   : > { %v6037_v3 = vpop.f32.mrb[66].mxu1 }
0x112b   : > { %v4237_v37 = vpack.i.bf16 %v6037_v3, %v6033_v62  ;;  %v6041_v44 = vpop.f32.mrb[67].mxu1  ;;  %v6520_v3 = vld [vmem:[#allocation39_spill] sm:$0xff] }
0x112c   : > { %v4232_v55 = vpack.i.bf16 %v6041_v44, %v6035_v46 }
0x1161   : > { %v6045_v24 = vpop.f32.mrb[68].mxu1 }
0x1162   : > { %v6047_v40 = vpop.f32.mrb[69].mxu1 }
0x1163   : > { %v6049_v16 = vpop.f32.mrb[70].mxu1 }
0x1164   : > { %v4307_v57 = vpack.i.bf16 %v6049_v16, %v6045_v24  ;;  %v6053_v1 = vpop.f32.mrb[71].mxu1 }
0x1165   : > { %v4302_v11 = vpack.i.bf16 %v6053_v1, %v6047_v40 }
0x116c   : > { %v4023_v0 = vpop.f32.mrb[72].mxu1 }
0x116d   : > { %v2733_v22 = vpop.f32.mrb[73].mxu1  ;;  %v2766_v23 = vsel %vm5071_vm1, %v4023_v0, -inf }
0x116e   : > { %v2764_v39 = vsel %vm5075_vm2, %v2733_v22, -inf  ;;  %v4024_v59 = vpop.f32.mrb[74].mxu1  ;;  %v2778_v42 = vsel %vm713_vm3, %v2766_v23, -inf }
0x116f   : > { %v2772_v50 = vsel %vm713_vm3, %v2764_v39, -inf  ;;  %v2736_v41 = vpop.f32.mrb[75].mxu1  ;;  %v2767_v8 = vsel %vm5079_vm4, %v4024_v59, -inf }
0x1170   : > { %v2765_v45 = vsel %vm5085_vm5, %v2736_v41, -inf  ;;  %2773 = vmax.xlane.f32.xlu0 %v2772_v50  ;;  %v2781_v26 = vsel %vm713_vm3, %v2767_v8, -inf }
0x1171   : > { %v2775_v48 = vsel %vm713_vm3, %v2765_v45, -inf }
0x1172   : > { %2776 = vmax.xlane.f32.xlu1 %v2775_v48 }
0x1174   : > { %2779 = vmax.xlane.f32.xlu0 %v2778_v42  ;;  %v4027_v56 = vpop.f32.mrb[76].mxu1 }
0x1175   : > { %v2749_v27 = vpop.f32.mrb[77].mxu1  ;;  %v2770_v51 = vsel %vm5107_vm8, %v4027_v56, -inf }
0x1176   : > { %v4028_v28 = vpop.f32.mrb[78].mxu1  ;;  %v2768_v13 = vsel %vm5099_vm6, %v2749_v27, -inf  ;;  %v2790_v38 = vsel %vm713_vm3, %v2770_v51, -inf }
0x1177   : > { %v2752_v7 = vpop.f32.mrb[79].mxu1  ;;  %v2771_v10 = vsel %vm5103_vm7, %v4028_v28, -inf  ;;  %v2784_v20 = vsel %vm713_vm3, %v2768_v13, -inf }
0x1178   : > { %v6073_v54 = vsel %vm5115_vm9, %v2752_v7, -inf  ;;  %2782 = vmax.xlane.f32.xlu0 %v2781_v26  ;;  %v2793_v29 = vsel %vm713_vm3, %v2771_v10, -inf }
0x1179   : > { %v2787_v52 = vsel %vm713_vm3, %v6073_v54, -inf }
0x117a   : > { %2788 = vmax.xlane.f32.xlu1 %v2787_v52 }
0x117c   : > { %2785 = vmax.xlane.f32.xlu0 %v2784_v20 }
0x117e   : > { %2794 = vmax.xlane.f32.xlu1 %v2793_v29 }
0x1180   : > { %2791 = vmax.xlane.f32.xlu0 %v2790_v38 }
0x11fd   : > { %v2774_v36 = vpop.xlane.xlu0 %2773 }
0x11fe   : > { %v2796_v17 = vsub.f32 %v2764_v39, %v2774_v36 }
0x11ff   : > { %v2777_v0 = vpop.xlane.xlu1 %2776 }
0x1200   : > { %v2804_v31 = vmul.f32 1.442695, %v2796_v17  ;;  %v2797_v50 = vsub.f32 %v2765_v45, %v2777_v0 }
0x1201   : > { %v2780_v22 = vpop.xlane.xlu0 %2779 }
0x1202   : > { %v2798_v59 = vsub.f32 %v2766_v23, %v2780_v22  ;;  %v2806_v32 = vmul.f32 1.442695, %v2797_v50  ;;  %v6483_v50 = vpack.i.bf16 %v5537_v61, %v5531_v58  ;;  %v6486_v58 = vpack.i.bf16 %v5801_v53, %v5795_v43 }
0x1203   : > { %v6487_v61 = vpack.i.bf16 %v5921_v63, %v5915_v25  ;;  %v6489_v53 = vpack.i.bf16 %v5573_v33, %v5567_v34  ;;  %v6490_v25 = vpack.i.bf16 %v5693_v18, %v5687_v60  ;;  %v6491_v63 = vpack.i.bf16 %v5813_v4, %v5807_v6  ;;  %v6494_v34 = vld [vmem:[#allocation20_spill] sm:$0xff]  ;;  %v6496_v60 = vld [vmem:[#allocation25_spill] sm:$0xff] }
0x1204   : > { %v2808_v41 = vmul.f32 1.442695, %v2798_v59  ;;  %v6497_v18 = vld [vmem:[#allocation24_spill] sm:$0xff]  ;;  %v6499_v6 = vld [vmem:[#allocation29_spill] sm:$0xff] }
0x1205   : > { %v2783_v48 = vpop.xlane.xlu0 %2782  ;;  %v6498_v46 = vpack.i.bf16 %v6496_v60, %v6497_v18  ;;  %v6500_v4 = vld [vmem:[#allocation28_spill] sm:$0xff] }
0x1206   : > { %4590 = vpow2.f32 %v2808_v41  ;;  %v2799_v42 = vsub.f32 %v2767_v8, %v2783_v48  ;;  %v6484_v48 = vpack.i.bf16 %v5561_v47, %v5555_v9  ;;  %v6501_v44 = vpack.i.bf16 %v6499_v6, %v6500_v4 }
0x1207   : > { %4592 = vpow2.f32 %v2804_v31  ;;  %v2789_v59 = vpop.xlane.xlu1 %2788 }
0x1208   : > { %v2810_v56 = vmul.f32 1.442695, %v2799_v42 }
0x1209   : > { %v2786_v27 = vpop.xlane.xlu0 %2785 }
0x120a   : > { %4594 = vpow2.f32 %v2810_v56  ;;  %v2800_v28 = vsub.f32 %v2768_v13, %v2786_v27  ;;  %v6509_v56 = vld [vmem:[#allocation22_spill] sm:$0xff] }
0x120b   : > { %4596 = vpow2.f32 %v2806_v32  ;;  %v2795_v31 = vpop.xlane.xlu1 %2794  ;;  %v6508_v32 = vld [vmem:[#allocation23_spill] sm:$0xff] }
0x120c   : > { %v2812_v39 = vmul.f32 1.442695, %v2800_v28  ;;  %v2803_v41 = vsub.f32 %v2771_v10, %v2795_v31  ;;  %v6510_v27 = vpack.i.bf16 %v6508_v32, %v6509_v56  ;;  %v6511_v28 = vld [vmem:[#allocation27_spill] sm:$0xff] }
0x120d   : > { %v2792_v26 = vpop.xlane.xlu0 %2791 }
0x120e   : > { %v2802_v7 = vsub.f32 %v2770_v51, %v2792_v26  ;;  %v2818_v42 = vmul.f32 1.442695, %v2803_v41  ;;  %v6512_v26 = vld [vmem:[#allocation26_spill] sm:$0xff] }
0x1210   : > { %v6084_v52 = vpop.eup %4590  ;;  %v2816_v20 = vmul.f32 1.442695, %v2802_v7  ;;  %v6513_v7 = vpack.i.bf16 %v6511_v28, %v6512_v26 }
0x1211   : > { %v2826_v23 = vsel %vm713_vm3, %v6084_v52, 0.0  ;;  %v6088_v45 = vpop.eup %4592 }
0x1212   : > { %4598 = vpow2.f32 %v2816_v20  ;;  %2827 = vadd.xlane.f32.xlu0 %v2826_v23  ;;  %v2820_v29 = vsel %vm713_vm3, %v6088_v45, 0.0  ;;  %v6515_v20 = vld [vmem:[#allocation30_spill] sm:$0xff] }
0x1213   : > { %4600 = vpow2.f32 %v2812_v39  ;;  %v6514_v39 = vld [vmem:[#allocation31_spill] sm:$0xff] }
0x1214   : > { %v6090_v8 = vpop.eup %4594  ;;  %4602 = vpow2.f32 %v2818_v42  ;;  %v6516_v23 = vpack.i.bf16 %v6514_v39, %v6515_v20 }
0x1215   : > { %v2829_v13 = vsel %vm713_vm3, %v6090_v8, 0.0  ;;  %v6096_v51 = vpop.eup %4596 }
0x1216   : > { %2821 = vadd.xlane.f32.xlu0 %v2820_v29  ;;  %2830 = vadd.xlane.f32.xlu1 %v2829_v13  ;;  %v2823_v38 = vsel %vm713_vm3, %v6096_v51, 0.0  ;;  %v6517_v29 = vld [vmem:[#allocation35_spill] sm:$0xff]  ;;  %v6518_v13 = vld [vmem:[#allocation34_spill] sm:$0xff] }
0x1217   : > { %v6519_v62 = vpack.i.bf16 %v6517_v29, %v6518_v13 }
0x121a   : > { %2824 = vadd.xlane.f32.xlu1 %v2823_v38 }
0x121c   : > { %v6100_v36 = vpop.eup %4598 }
0x121d   : > { %v2838_v17 = vsel %vm713_vm3, %v6100_v36, 0.0  ;;  %v6104_v0 = vpop.eup %4600 }
0x121e   : > { %2839 = vadd.xlane.f32.xlu0 %v2838_v17  ;;  %v2832_v22 = vsel %vm713_vm3, %v6104_v0, 0.0  ;;  %v6135_v9 = vpop.eup %4602 }
0x121f   : > { %v2841_v47 = vsel %vm713_vm3, %v6135_v9, 0.0 }
0x1222   : > { %2833 = vadd.xlane.f32.xlu0 %v2832_v22 }
0x122b   : > { %2866 = vrot.lane.b32.xlu1 %v5143_v2, %s4794_s25  ;;  %v2801_v2 = vsub.f32 %v6073_v54, %v2789_v59  ;;  %v6506_v54 = vld [vmem:[#allocation36_spill] sm:$0xff] }
0x122f   : > { %2868 = vrot.lane.b32.xlu1 %v5167_v21, %s4794_s25  ;;  %v6485_v21 = vpack.i.bf16 %v5681_v14, %v5675_v35  ;;  %v6488_v14 = vpack.i.bf16 %v5549_v49, %v5543_v30  ;;  %v6492_v30 = vpack.i.bf16 %v5933_v15, %v5927_v12  ;;  %v6493_v49 = vld [vmem:[#allocation21_spill] sm:$0xff]  ;;  %v6503_v15 = vld [vmem:[#allocation32_spill] sm:$0xff] }
0x1230   : > { %v6495_v33 = vpack.i.bf16 %v6493_v49, %v6494_v34  ;;  %v6502_v12 = vld [vmem:[#allocation33_spill] sm:$0xff] }
0x1238   : > { %2864 = vrot.lane.b32.xlu0 %v5147_v5, %s4794_s25  ;;  %v2814_v5 = vmul.f32 1.442695, %v2801_v2 }
0x123a   : > { %4604 = vpow2.f32 %v2814_v5 }
0x123c   : > { %4183 = vrot.lane.b32.xlu0 %v6483_v50, %s4794_s25 }
0x1240   : > { %4193 = vrot.lane.b32.xlu0 %v6484_v48, %s4793_s6 }
0x1244   : > { %4203 = vrot.lane.b32.xlu0 %v6485_v21, %s4792_s30  ;;  %v6143_v35 = vpop.eup %4604 }
0x1245   : > { %v2835_v43 = vsel %vm713_vm3, %v6143_v35, 0.0 }
0x1248   : > { %4213 = vrot.lane.b32.xlu0 %v6486_v58, %s4791_s8 }
0x124c   : > { %4223 = vrot.lane.b32.xlu0 %v6487_v61, %s4790_s7 }
0x1250   : > { %4233 = vrot.lane.b32.xlu0 %v4232_v55, %s4789_s23  ;;  %v6504_v55 = vpack.i.bf16 %v6502_v12, %v6503_v15  ;;  %v4359_v12 = vld [vmem:[#allocation7 + $0x8] sm:$0xff]   ;;  %v4360_v15 = vld [vmem:[#allocation7 + $0x10] sm:$0xff]  }
0x1253   : > { %2842 = vadd.xlane.f32.xlu1 %v2841_v47 }
0x1254   : > { %4243 = vrot.lane.b32.xlu0 %v6488_v14, %s4794_s25 }
0x1257   : > { %2836 = vadd.xlane.f32.xlu1 %v2835_v43 }
0x1258   : > { %4253 = vrot.lane.b32.xlu0 %v6489_v53, %s4793_s6 }
0x125c   : > { %4263 = vrot.lane.b32.xlu0 %v6490_v25, %s4792_s30 }
0x1260   : > { %4273 = vrot.lane.b32.xlu0 %v6491_v63, %s4791_s8 }
0x1264   : > { %4283 = vrot.lane.b32.xlu0 %v6492_v30, %s4790_s7 }
0x1268   : > { %2870 = vrot.lane.b32.xlu1 %v5164_v19, %s4794_s25  ;;  %v6505_v19 = vld [vmem:[#allocation37_spill] sm:$0xff] }
0x1269   : > { %v6507_v10 = vpack.i.bf16 %v6505_v19, %v6506_v54 }
0x126c   : > { %4188 = vrot.lane.b32.xlu1 %v6495_v33, %s4794_s25 }
0x1270   : > { %4198 = vrot.lane.b32.xlu1 %v6498_v46, %s4793_s6 }
0x1274   : > { %4208 = vrot.lane.b32.xlu1 %v6501_v44, %s4792_s30 }
0x1278   : > { %4218 = vrot.lane.b32.xlu1 %v6504_v55, %s4791_s8  ;;  %v4365_v55 = vld [vmem:[#allocation7 + $0x38] sm:$0xff]  }
0x127c   : > { %4228 = vrot.lane.b32.xlu1 %v6507_v10, %s4790_s7 }
0x1280   : > { %4238 = vrot.lane.b32.xlu1 %v4237_v37, %s4789_s23  ;;  %v6521_v37 = vld [vmem:[#allocation38_spill] sm:$0xff] }
0x1281   : > { %v6522_v38 = vpack.i.bf16 %v6520_v3, %v6521_v37 }
0x1284   : > { %4248 = vrot.lane.b32.xlu1 %v6510_v27, %s4794_s25 }
0x1288   : > { %4258 = vrot.lane.b32.xlu1 %v6513_v7, %s4793_s6 }
0x128c   : > { %4268 = vrot.lane.b32.xlu1 %v6516_v23, %s4792_s30 }
0x1290   : > { %4278 = vrot.lane.b32.xlu1 %v6519_v62, %s4791_s8 }
0x1294   : > { %4288 = vrot.lane.b32.xlu1 %v6522_v38, %s4790_s7 }
0x129f   : > { %v2828_v17 = vpop.xlane.xlu0 %2827 }
0x12a3   : > { %v2822_v22 = vpop.xlane.xlu0 %2821  ;;  %v2831_v59 = vpop.xlane.xlu1 %2830 }
0x12a4   : > { %4606 = vrcp.f32 %v2822_v22 }
0x12a7   : > { %v2825_v31 = vpop.xlane.xlu1 %2824 }
0x12a8   : > { %4608 = vrcp.f32 %v2825_v31 }
0x12a9   : > { %4610 = vrcp.f32 %v2831_v59 }
0x12aa   : > { %4612 = vrcp.f32 %v2828_v17 }
0x12ab   : > { %v2840_v50 = vpop.xlane.xlu0 %2839  ;;  %v2867_v42 = vpop.permute.xlu1 %2866 }
0x12ae   : > { %v4607_v48 = vpop.eup %4606 }
0x12af   : > { %v2834_v41 = vpop.xlane.xlu0 %2833  ;;  %v2852_v5 = vmul.f32 %v4607_v48, %v6088_v45  ;;  %v2869_v47 = vpop.permute.xlu1 %2868 }
0x12b2   : > { %v4609_v2 = vpop.eup %4608 }
0x12b3   : > { %v2865_v21 = vpop.permute.xlu0 %2864  ;;  %v2853_v58 = vmul.f32 %v4609_v2, %v6096_v51  ;;  %v4611_v43 = vpop.eup %4610 }
0x12b4   : > { %4029 = vmatprep.subr.bf16.mxu0 %v2865_v21  ;;  %v4613_v51 = vpop.eup %4612  ;;  %v2855_v53 = vmul.f32 %v4611_v43, %v6090_v8 }
0x12b5   : > { %4030 = vmatpush3.bf16.msra.mxu0 %v2865_v21  ;;  %v2860_v61 = vpack.c.bf16 %v2853_v58, %v2852_v5  ;;  %v2854_v63 = vmul.f32 %v4613_v51, %v6084_v52  ;;  %v4358_v52 = vld [vmem:[#allocation7] sm:$0xff]  }
0x12b6   : > { %4031 = vmatprep.subr.bf16.mxu0 %v2867_v42 }
0x12b7   : > { %4037 = vmatprep.mubr.msk.bf16.mxu0 %vm713_vm3, %v2860_v61  ;;  %v2861_v30 = vpack.c.bf16 %v2855_v53, %v2854_v63  ;;  %v4184_v29 = vpop.permute.xlu0 %4183 }
0x12b9   : > { %4032 = vmatpush3.bf16.msra.mxu0 %v2867_v42 }
0x12ba   : > { %4033 = vmatprep.subr.bf16.mxu0 %v2869_v47 }
0x12bb   : > { %v4194_v62 = vpop.permute.xlu0 %4193 }
0x12bc   : > { %v4196_v48 = vunpack.i.h.bf16 %v4194_v62  ;;  %v4195_v2 = vunpack.i.l.bf16 %v4194_v62 }
0x12bd   : > { %4034 = vmatpush3.bf16.msra.mxu0 %v2869_v47 }
0x12bf   : > { %v4204_v16 = vpop.permute.xlu0 %4203 }
0x12c0   : > { %v4206_v42 = vunpack.i.h.bf16 %v4204_v16  ;;  %v4205_v21 = vunpack.i.l.bf16 %v4204_v16 }
0x12c3   : > { %v4214_v3 = vpop.permute.xlu0 %4213 }
0x12c4   : > { %v4216_v5 = vunpack.i.h.bf16 %v4214_v3  ;;  %v4215_v58 = vunpack.i.l.bf16 %v4214_v3 }
0x12c7   : > { %v4224_v1 = vpop.permute.xlu0 %4223 }
0x12c8   : > { %v4226_v53 = vunpack.i.h.bf16 %v4224_v1 }
0x12cb   : > { %v4234_v37 = vpop.permute.xlu0 %4233 }
0x12cf   : > { %v4244_v17 = vpop.permute.xlu0 %4243 }
0x12d3   : > { %v4254_v59 = vpop.permute.xlu0 %4253 }
0x12d7   : > { %v4264_v61 = vpop.permute.xlu0 %4263 }
0x12e0   : > { %v2843_v14 = vpop.xlane.xlu1 %2842 }
0x12e1   : > { %4614 = vrcp.f32 %v2843_v14  ;;  %v6523_v14 = vld [vmem:[#allocation15_spill] sm:$0xff] }
0x12e2   : > { %4616 = vrcp.f32 %v2834_v41  ;;  %v4185_v41 = vunpack.i.l.bf16 %v4184_v29 }
0x12e3   : > { %4618 = vrcp.f32 %v2840_v50  ;;  %v4186_v50 = vunpack.i.h.bf16 %v4184_v29 }
0x12e4   : > { %v2837_v45 = vpop.xlane.xlu1 %2836 }
0x12e5   : > { %4620 = vrcp.f32 %v2837_v45  ;;  %v3178_v43 = vsel %vm615_vm0, %v6523_v14, %v4186_v50  ;;  %v6524_v45 = vld [vmem:[#allocation13_spill] sm:$0xff] }
0x12e6   : > { %v3177_v51 = vsel %vm615_vm0, %v6524_v45, %v4185_v41 }
0x12e7   : > { %v3186_v63 = vsel %vm3185_vm10, %v3177_v51, %v4195_v2 }
0x12e8   : > { %v2871_v25 = vpop.permute.xlu1 %2870 }
0x12e9   : > { %4035 = vmatprep.subr.bf16.mxu0 %v2871_v25 }
0x12ea   : > { %4036 = vmatpush3.bf16.msra.mxu0 %v2871_v25  ;;  %v4225_v25 = vunpack.i.l.bf16 %v4224_v1  ;;  %v6527_v1 = vld [vmem:[#allocation14_spill] sm:$0xff] }
0x12eb   : > { %v4615_v49 = vpop.eup %4614  ;;  %4045 = vmatprep.subr.bf16.mxu0 %v4358_v52 }
0x12ec   : > { %v4617_v34 = vpop.eup %4616  ;;  %v2859_v18 = vmul.f32 %v4615_v49, %v6135_v9  ;;  %v4361_v9 = vld [vmem:[#allocation7 + $0x18] sm:$0xff]   ;;  %v6237_v13 = vpop.permute.xlu1 %4188  ;;  %v4236_v49 = vunpack.i.h.bf16 %v4234_v37 }
0x12ed   : > { %4038 = vmatmul.mubr.msk.bf16.vlgmr.msra.gmra.mrb[64].mxu0 %vm713_vm3, %v2861_v30  ;;  %v4619_v33 = vpop.eup %4618  ;;  %v2856_v46 = vmul.f32 %v4617_v34, %v6104_v0  ;;  %v4362_v0 = vld [vmem:[#allocation7 + $0x20] sm:$0xff]   ;;  %v3187_v30 = vsel %vm3185_vm10, %v3178_v43, %v4196_v48  ;;  %v4235_v34 = vunpack.i.l.bf16 %v4234_v37 }
0x12ee   : > { %v2858_v8 = vmul.f32 %v4619_v33, %v6100_v36  ;;  %4046 = vmatpush3.bf16.msra.mxu0 %v4358_v52  ;;  %v4363_v36 = vld [vmem:[#allocation7 + $0x28] sm:$0xff]   ;;  %v3195_v33 = vsel %vm3194_vm11, %v3186_v63, %v4205_v21 }
0x12ef   : > { %v4621_v60 = vpop.eup %4620  ;;  %4047 = vmatprep.subr.bf16.mxu0 %v4359_v12 }
0x12f0   : > { %v2857_v6 = vmul.f32 %v4621_v60, %v6143_v35  ;;  %v2863_v44 = vpack.c.bf16 %v2859_v18, %v2858_v8  ;;  %v4364_v35 = vld [vmem:[#allocation7 + $0x30] sm:$0xff]   ;;  %v6239_v24 = vpop.permute.xlu1 %4198  ;;  %v3196_v60 = vsel %vm3194_vm11, %v3187_v30, %v4206_v42  ;;  %v4246_v18 = vunpack.i.h.bf16 %v4244_v17 }
0x12f1   : > { %v3204_v8 = vsel %vm713_vm3, %v3196_v60, %v4216_v5 }
0x12f2   : > { %v2862_v4 = vpack.c.bf16 %v2857_v6, %v2856_v46  ;;  %4048 = vmatpush3.bf16.msra.mxu0 %v4359_v12  ;;  %v4245_v46 = vunpack.i.l.bf16 %v4244_v17  ;;  %v3203_v6 = vsel %vm713_vm3, %v3195_v33, %v4215_v58  ;;  %v3213_v12 = vsel %vm3211_vm12, %v3204_v8, %v4226_v53  ;;  %v6528_v17 = vld [vmem:[#allocation12_spill] sm:$0xff]  ;;  %v6529_v33 = vld [vmem:[#allocation18_spill] sm:$0xff] }
0x12f3   : > { %4049 = vmatprep.subr.bf16.mxu0 %v4360_v15  ;;  %v3212_v52 = vsel %vm3211_vm12, %v3203_v6, %v4225_v25 }
0x12f4   : > { %4041 = vmatprep.mubr.msk.bf16.mxu0 %vm713_vm3, %v2862_v4  ;;  %v4256_v4 = vunpack.i.h.bf16 %v4254_v59 }
0x12f5   : > { %4042 = vmatmul.mubr.msk.bf16.gmra.mrb[68].mxu0 %vm713_vm3, %v2863_v44  ;;  %v4255_v44 = vunpack.i.l.bf16 %v4254_v59 }
0x12f6   : > { %4050 = vmatpush3.bf16.msra.mxu0 %v4360_v15  ;;  %v4265_v15 = vunpack.i.l.bf16 %v4264_v61 }
0x12f7   : > { %4051 = vmatprep.subr.bf16.mxu0 %v4361_v9 }
0x12fa   : > { %4052 = vmatpush3.bf16.msra.mxu0 %v4361_v9  ;;  %v6268_v9 = vsel %vm3220_vm13, %v3212_v52, %v4235_v34 }
0x12fb   : > { %4053 = vmatprep.subr.bf16.mxu0 %v4362_v0 }
0x12fe   : > { %4054 = vmatpush3.bf16.msra.mxu0 %v4362_v0  ;;  %v6271_v0 = vsel %vm3220_vm13, %v3213_v12, %v4236_v49 }
0x12ff   : > { %4055 = vmatprep.subr.bf16.mxu0 %v4363_v36 }
0x1302   : > { %4056 = vmatpush3.bf16.msra.mxu0 %v4363_v36  ;;  %v4274_v36 = vpop.permute.xlu0 %4273 }
0x1303   : > { %4057 = vmatprep.subr.bf16.mxu0 %v4364_v35  ;;  %v4276_v62 = vunpack.i.h.bf16 %v4274_v36  ;;  %v4275_v16 = vunpack.i.l.bf16 %v4274_v36 }
0x1306   : > { %4058 = vmatpush3.bf16.msra.mxu0 %v4364_v35  ;;  %v4284_v41 = vpop.permute.xlu0 %4283 }
0x1307   : > { %4059 = vmatprep.subr.bf16.mxu0 %v4365_v55  ;;  %v4286_v51 = vunpack.i.h.bf16 %v4284_v41  ;;  %v4285_v53 = vunpack.i.l.bf16 %v4284_v41 }
0x130a   : > { %4060 = vmatpush3.bf16.msra.mxu0 %v4365_v55  ;;  %v6525_v55 = vld [vmem:[#allocation19_spill] sm:$0xff] }
0x13c0   : > { %v4039_v19 = vpop.f32.mrb[64].mxu0 }
0x13c1   : > { %v2922_v54 = vpop.f32.mrb[65].mxu0 }
0x13c2   : > { %v4040_v10 = vpop.f32.mrb[66].mxu0 }
0x13c3   : > { %v4292_v32 = vpack.i.bf16 %v4040_v10, %v4039_v19  ;;  %v2925_v56 = vpop.f32.mrb[67].mxu0  ;;  %v3182_v19 = vsel %vm615_vm0, %v6525_v55, %v4246_v18 }
0x13c4   : > { %v4297_v27 = vpack.i.bf16 %v2925_v56, %v2922_v54  ;;  %v6526_v54 = vld [vmem:[#allocation17_spill] sm:$0xff]  ;;  %v4190_v56 = vunpack.i.l.bf16 %v6237_v13 }
0x13c5   : > { %4293 = vrot.lane.b32.xlu1 %v4292_v32, %s4788_s21  ;;  %v3181_v10 = vsel %vm615_vm0, %v6526_v54, %v4245_v46  ;;  %v4191_v32 = vunpack.i.h.bf16 %v6237_v13 }
0x13c6   : > { %4298 = vrot.lane.b32.xlu0 %v4297_v27, %s4788_s21  ;;  %v3190_v27 = vsel %vm3185_vm10, %v3181_v10, %v4255_v44  ;;  %v3179_v59 = vsel %vm615_vm0, %v6528_v17, %v4190_v56  ;;  %v6530_v56 = vld [vmem:[#allocation16_spill] sm:$0xff] }
0x13c7   : > { %v3180_v37 = vsel %vm615_vm0, %v6527_v1, %v4191_v32 }
0x13c8   : > { %v4043_v28 = vpop.f32.mrb[68].mxu0 }
0x13c9   : > { %4308 = vrot.lane.b32.xlu1 %v4307_v57, %s4789_s23  ;;  %v2938_v26 = vpop.f32.mrb[69].mxu0  ;;  %v6241_v57 = vpop.permute.xlu1 %4208 }
0x13ca   : > { %4303 = vrot.lane.b32.xlu0 %v4302_v11, %s4789_s23  ;;  %v4044_v7 = vpop.f32.mrb[70].mxu0  ;;  %v4210_v29 = vunpack.i.l.bf16 %v6241_v57  ;;  %s4795_s23 = smov [#allocation8]  }
0x13cb   : > { %v4317_v39 = vpack.i.bf16 %v4044_v7, %v4043_v28  ;;  %v2941_v20 = vpop.f32.mrb[71].mxu0  ;;  %v3191_v28 = vsel %vm3185_vm10, %v3182_v19, %v4256_v4  ;;  %v4200_v7 = vunpack.i.l.bf16 %v6239_v24  ;;  %s4712_s7 = sshll.u32 %s4795_s23, 4  ;;  %s4713_s7 = int_to_ptr.vmem [resolvable:$false] %s4712_s7 }
0x13cc   : > { %v4312_v23 = vpack.i.bf16 %v2941_v20, %v2938_v26  ;;  %v4201_v26 = vunpack.i.h.bf16 %v6239_v24  ;;  %v3199_v20 = vsel %vm3194_vm11, %v3190_v27, %v4265_v15  ;;  %s4714_s8 = scalar_lea.vmem %s4713_s7, 2048  ;;  %p4715_p5 = scmp.lt.s32.totalorder %s6352_s5, %s4713_s7 }
0x13cd   : > { %4318 = vrot.lane.b32.xlu1 %v4317_v39, %s4788_s21  ;;  %v6243_v40 = vpop.permute.xlu1 %4218  ;;  %v4266_v39 = vunpack.i.h.bf16 %v4264_v61  ;;  %v3188_v48 = vsel %vm3185_vm10, %v3179_v59, %v4200_v7 }
0x13ce   : > { %4313 = vrot.lane.b32.xlu0 %v4312_v23, %s4788_s21  ;;  %v4211_v23 = vunpack.i.h.bf16 %v6241_v57  ;;  %v4221_v3 = vunpack.i.h.bf16 %v6243_v40  ;;  %v4220_v13 = vunpack.i.l.bf16 %v6243_v40  ;;  %v3189_v57 = vsel %vm3185_vm10, %v3180_v37, %v4201_v26  ;;  %s4708_s21 = scalar_lea.vmem %s6352_s5, 1024 }
0x13cf   : > { %v3200_v21 = vsel %vm3194_vm11, %v3191_v28, %v4266_v39  ;;  %v3197_v5 = vsel %vm3194_vm11, %v3188_v48, %v4210_v29  ;;  %p4709_p11 = scmp.ne.s32.totalorder %s6352_s5, %s4708_s21  ;;  %p4716_p9 = scmp.lt.s32.totalorder %s4714_s8, %s4708_s21 }
0x13d0   : > { %v3198_v58 = vsel %vm3194_vm11, %v3189_v57, %v4211_v23  ;;  %v3208_v14 = vsel %vm713_vm3, %v3200_v21, %v4276_v62  ;;  %v3205_v43 = vsel %vm713_vm3, %v3197_v5, %v4220_v13 }
0x13d1   : > { %v6245_v11 = vpop.permute.xlu1 %4228  ;;  %v3206_v45 = vsel %vm713_vm3, %v3198_v58, %v4221_v3  ;;  %v3217_v3 = vsel %vm3211_vm12, %v3208_v14, %v4286_v51  ;;  %p4710_p1 = pnand %p4709_p11, %p6531_p0  ;;  %p4717_p12 = por %p4716_p9, %p4715_p5 }
0x13d2   : > { %v4231_v24 = vunpack.i.h.bf16 %v6245_v11  ;;  %v4230_v50 = vunpack.i.l.bf16 %v6245_v11  ;;  %v3207_v11 = vsel %vm713_vm3, %v3199_v20, %v4275_v16 }
0x13d3   : > { %p4711_p3 = pneg %p4710_p1 }
0x13d4   : > { %v3215_v25 = vsel %vm3211_vm12, %v3206_v45, %v4231_v24  ;;  %v3597_v45 = vld [vmem:[%s6404_s3] ss:$0 sm:$0xff] }
0x13d5   : > { %v6247_v38 = vpop.permute.xlu1 %4238  ;;  %p4718_p2 = pnand %p4717_p12, %p4711_p3 }
0x13d6   : > { %v4241_v2 = vunpack.i.h.bf16 %v6247_v38  ;;  %v4240_v42 = vunpack.i.l.bf16 %v6247_v38  ;;  %v3214_v38 = vsel %vm3211_vm12, %v3205_v43, %v4230_v50 }
0x13d8   : > { %v3223_v63 = vsel %vm3220_vm13, %v3214_v38, %v4240_v42  ;;  %v3224_v30 = vsel %vm3220_vm13, %v3215_v25, %v4241_v2 }
0x13d9   : > { %v6249_v22 = vpop.permute.xlu1 %4248 }
0x13da   : > { %v4251_v61 = vunpack.i.h.bf16 %v6249_v22  ;;  %v4250_v49 = vunpack.i.l.bf16 %v6249_v22 }
0x13dc   : > { %v3184_v60 = vsel %vm615_vm0, %v6529_v33, %v4251_v61  ;;  %v3183_v27 = vsel %vm615_vm0, %v6530_v56, %v4250_v49 }
0x13dd   : > { %v6251_v31 = vpop.permute.xlu1 %4258 }
0x13de   : > { %v4261_v18 = vunpack.i.h.bf16 %v6251_v31  ;;  %v4260_v4 = vunpack.i.l.bf16 %v6251_v31 }
0x13e0   : > { %v3192_v39 = vsel %vm3185_vm10, %v3183_v27, %v4260_v4  ;;  %v3193_v20 = vsel %vm3185_vm10, %v3184_v60, %v4261_v18 }
0x13e1   : > { %v6253_v47 = vpop.permute.xlu1 %4268 }
0x13e2   : > { %v4271_v44 = vunpack.i.h.bf16 %v6253_v47  ;;  %v4270_v15 = vunpack.i.l.bf16 %v6253_v47 }
0x13e4   : > { %v3201_v29 = vsel %vm3194_vm11, %v3192_v39, %v4270_v15 }
0x13e5   : > { %v6273_v35 = vpop.permute.xlu1 %4278 }
0x13e6   : > { %v4281_v22 = vunpack.i.h.bf16 %v6273_v35  ;;  %v4280_v19 = vunpack.i.l.bf16 %v6273_v35 }
0x13e8   : > { %v3209_v13 = vsel %vm713_vm3, %v3201_v29, %v4280_v19 }
0x13e9   : > { %v4289_v40 = vpop.permute.xlu1 %4288 }
0x13ea   : > { %v4291_v47 = vunpack.i.h.bf16 %v4289_v40  ;;  %v4290_v28 = vunpack.i.l.bf16 %v4289_v40 }
0x13ec   : > { %v3218_v17 = vsel %vm3211_vm12, %v3209_v13, %v4290_v28 }
0x1437   : > { %v4294_v34 = vpop.permute.xlu1 %4293 }
0x1438   : > { %v4296_v46 = vunpack.i.h.bf16 %v4294_v34  ;;  %v4295_v6 = vunpack.i.l.bf16 %v4294_v34  ;;  %v4299_v8 = vpop.permute.xlu0 %4298 }
0x1439   : > { %v4301_v52 = vunpack.i.h.bf16 %v4299_v8  ;;  %v4300_v12 = vunpack.i.l.bf16 %v4299_v8 }
0x143a   : > { %v3232_v36 = vsel %vm3229_vm14, %v3223_v63, %v4295_v6  ;;  %v3233_v55 = vsel %vm3229_vm14, %v3224_v30, %v4296_v46 }
0x143b   : > { %v3239_v54 = vpack.c.bf16 %v3233_v55, %v3232_v36  ;;  %v4309_v10 = vpop.permute.xlu1 %4308  ;;  %v3230_v32 = vsel %vm3229_vm14, %v6268_v9, %v4300_v12  ;;  %v3231_v31 = vsel %vm3229_vm14, %v6271_v0, %v4301_v52  ;;  %v3202_v9 = vsel %vm3194_vm11, %v3193_v20, %v4271_v44 }
0x143c   : > { %v4304_v26 = vpop.permute.xlu0 %4303  ;;  %v3238_v7 = vpack.c.bf16 %v3231_v31, %v3230_v32  ;;  %v4311_v35 = vunpack.i.h.bf16 %v4309_v10  ;;  %v4310_v23 = vunpack.i.l.bf16 %v4309_v10  ;;  %v3216_v0 = vsel %vm3211_vm12, %v3207_v11, %v4285_v53 }
0x143d   : > { %v4306_v62 = vunpack.i.h.bf16 %v4304_v26  ;;  %v4305_v16 = vunpack.i.l.bf16 %v4304_v26  ;;  %v3210_v1 = vsel %vm713_vm3, %v3202_v9, %v4281_v22 }
0x143e   : > { %4061 = vmatprep.mubr.bf16.mxu0 %v3238_v7  ;;  %v3219_v59 = vsel %vm3211_vm12, %v3210_v1, %v4291_v47  ;;  %v3227_v48 = vsel %vm3220_vm13, %v3218_v17, %v4310_v23 }
0x143f   : > { %v4319_v37 = vpop.permute.xlu1 %4318  ;;  %4062 = vmatmul.mubr.bf16.vlgmr.msra.gmra.mrb[72].mxu0 %v3239_v54  ;;  %v3228_v57 = vsel %vm3220_vm13, %v3219_v59, %v4311_v35  ;;  %v3226_v40 = vsel %vm3220_vm13, %v3217_v3, %v4306_v62  ;;  %v3225_v21 = vsel %vm3220_vm13, %v3216_v0, %v4305_v16 }
0x1440   : > { %v4321_v24 = vunpack.i.h.bf16 %v4319_v37  ;;  %v4320_v50 = vunpack.i.l.bf16 %v4319_v37  ;;  %v4314_v41 = vpop.permute.xlu0 %4313 }
0x1441   : > { %v4316_v2 = vunpack.i.h.bf16 %v4314_v41  ;;  %v4315_v42 = vunpack.i.l.bf16 %v4314_v41 }
0x1442   : > { %v3236_v5 = vsel %vm3229_vm14, %v3227_v48, %v4320_v50  ;;  %v3237_v58 = vsel %vm3229_vm14, %v3228_v57, %v4321_v24 }
0x1443   : > { %v3234_v61 = vsel %vm3229_vm14, %v3225_v21, %v4315_v42  ;;  %v3235_v11 = vsel %vm3229_vm14, %v3226_v40, %v4316_v2  ;;  %v3241_v14 = vpack.c.bf16 %v3237_v58, %v3236_v5 }
0x1444   : > { %v3240_v43 = vpack.c.bf16 %v3235_v11, %v3234_v61 }
0x1446   : > { %4065 = vmatprep.mubr.bf16.mxu0 %v3240_v43 }
0x1447   : > { %4066 = vmatmul.mubr.bf16.gmra.mrb[76].mxu0 %v3241_v14 }
0x1512   : > { %v4063_v51 = vpop.f32.mrb[72].mxu0 }
0x1513   : > { %v3356_v53 = vadd.f32 %v4063_v51, %v3597_v45  ;;  %v3347_v38 = vpop.f32.mrb[73].mxu0 }
0x1514   : > { %v3348_v25 = vadd.f32 %v3597_v45, %v3347_v38  ;;  %v4064_v63 = vpop.f32.mrb[74].mxu0 }
0x1515   : > { %3380 = vst [vmem:[%s244_s29 + $0x10] sm:$0xff] %v3356_v53  ;;  %v3359_v30 = vadd.f32 %v4064_v63, %v3597_v45  ;;  %v3350_v49 = vpop.f32.mrb[75].mxu0 }
0x1516   : > { %3378 = vst [vmem:[%s244_s29] sm:$0xff] %v3348_v25  ;;  %v3351_v34 = vadd.f32 %v3597_v45, %v3350_v49 }
0x1517   : > { %3381 = vst [vmem:[%s244_s29 + $0x18] sm:$0xff] %v3359_v30 }
0x1518   : > { %3379 = vst [vmem:[%s244_s29 + $0x8] sm:$0xff] %v3351_v34 }
0x151a   : > { %v4067_v33 = vpop.f32.mrb[76].mxu0 }
0x151b   : > { %v3372_v60 = vadd.f32 %v4067_v33, %v3597_v45  ;;  %v3363_v18 = vpop.f32.mrb[77].mxu0 }
0x151c   : > { %v3364_v46 = vadd.f32 %v3597_v45, %v3363_v18  ;;  %v4068_v6 = vpop.f32.mrb[78].mxu0 }
0x151d   : > { %3384 = vst [vmem:[%s244_s29 + $0x30] sm:$0xff] %v3372_v60  ;;  %v3375_v8 = vadd.f32 %v4068_v6, %v3597_v45  ;;  %v3366_v4 = vpop.f32.mrb[79].mxu0 }
0x151e   : > { %3382 = vst [vmem:[%s244_s29 + $0x20] sm:$0xff] %v3364_v46  ;;  %v3367_v44 = vadd.f32 %v3597_v45, %v3366_v4 }
0x151f   : > { %3385 = vst [vmem:[%s244_s29 + $0x38] sm:$0xff] %v3375_v8 }
0x1520   : > { %3383 = vst [vmem:[%s244_s29 + $0x28] sm:$0xff] %v3367_v44 }
0x1521   : > { %4721 = shalt.err (!%p4718_p2)
}
0x1522   : > { %s4722_s30 = scalar_lea.hbm %s6357_s28, 1024  ;;  %s4726_s9 = scalar_lea.hbm %s6405_s4, 2048 }
0x1523   : > { %p4723_p13 = scmp.ne.s32.totalorder %s6357_s28, %s4722_s30  ;;  %p4727_p4 = scmp.lt.u32.totalorder %s6357_s28, %s6405_s4 }
0x1524   : > { %p4728_p7 = scmp.lt.u32.totalorder %s4726_s9, %s4722_s30  ;;  %p4730_p11 = scmp.lt.u32.totalorder %s4722_s30, %s6357_s28 }
0x1525   : > { %p4724_p6 = pnand %p4723_p13, %p6531_p0 }
0x1526   : > { %p4729_p8 = por %p4728_p7, %p4727_p4 }
0x1527   : > { %p4725_p10 = pneg %p4724_p6 }
0x1528   : > { %p4731_p1 = por %p4730_p11, %p4729_p8 }
0x152a   : > { %p4732_p3 = pnand %p4731_p1, %p4725_p10 }
0x152c   : > { %4735 = shalt.err (!%p4732_p3)
}
0x152d   : > { %s4796_s29 = smov 128   ;;  %s4797_s12 = smov 8  }
0x152e   : > { %4111 = dma.vmem_to_hbm [thread:$0]  (%p6531_p0), %s6352_s5, 1024, %s6357_s28, %s3387_s19, %s4796_s29, %s4796_s29, %s4797_s12  }
0x152f PF: > { %s3415_s13 = sand.u32 1, %s4766_s15   ;;  %p6532_p5 = scmp.ne.s32.totalorder %s6430_s22, 0 }
0x1530   : > { %p6533_p9 = scmp.ge.s32.totalorder %s4778_s18, 2  ;;  %s3416_s24 = scalar_lea.sflag [#allocation4], %s3415_s13 }
0x1532   : > { %p4125_p12 = pnand %p6533_p9, %p6532_p5 }
0x1534   : > { %4761 = dma.done.wait (!%p4125_p12), %s3416_s24, 1024  }
0x1535   : > { %4763 = vsyncadd (!%p4125_p12), %s3416_s24, 4294966272  ;;  %p18_p2 = scmp.ge.s32.totalorder %s4936_s11, 4   ;;  %s6534_s15 = smov %s4770_s16 }
0x1536   : > { %s6535_s16 = smov %s4774_s17  ;;  %s6536_s17 = smov %s4945_s14 }
0x1537   : > { %s6537_s18 = smov %s4936_s11  ;;  %20 = sbr.rel (!%p18_p2) target bundleno = 6 (0x6), region = 89 }
0x153e   :  { %3421 = vsyncpa [#allocation3], 1 }
0x153f   :  { %3423 = vsyncpa [#allocation3 + $0x1], 1 }
0x1540   :  { %3424 = vsyncpa [#allocation6], 1 }
0x1541   :  { %3425 = vsyncpa [#allocation4], 1 }
0x1542   :  { %3427 = vsyncpa [#allocation4 + $0x1], 1 }

</bundles_post_ra>
